<compile_context>
chip_gen: v5e
topology: v5e:2x2
jax: 0.10.0
libtpu: 0.0.40
codegen_flags: <defaults>
</compile_context>

<pallas_src>
import functools

import jax
import jax.numpy as jnp
from jax.experimental import pallas as pl
from jax.experimental.pallas import tpu as pltpu

LANE = 128  # TPU lane width; all feature axes and N are padded to multiples of this


def _leaky(x, slope):
    return jnp.where(x >= 0, x, slope * x)


def _gat_layer(x, w_ref, att_ref, b_ref, mask, *, heads, att_slope, out_slope):
    """One GATConv(concat=False) + output leaky_relu, fully VMEM resident.

    x:       (Np, LANE)        f32   node features (zero padded)
    w_ref:   (LANE, heads*LANE) bf16  per-head projection, head hd in cols [hd*LANE, hd*LANE+Fout)
    att_ref: (heads*LANE, LANE) bf16  col hd = a_src[hd], col heads+hd = a_dst[hd] (block layout)
    b_ref:   (1, LANE)          f32   output bias
    mask:    (Np, Np)           bool  adjacency (j -> i) incl. self loops
    """
    n = x.shape[0]
    xb = x.astype(jnp.bfloat16)
    # all-head projection on the MXU (bf16 in, f32 accumulate)
    h = jnp.dot(xb, w_ref[...], preferred_element_type=jnp.float32)    # (Np, heads*LANE)
    hb = h.astype(jnp.bfloat16)
    # batched attention scores for ALL heads in one matmul:
    #   s[:, hd]        = a_src[hd] . h_head_hd   (source score)
    #   s[:, heads+hd]  = a_dst[hd] . h_head_hd   (destination score)
    s = jnp.dot(hb, att_ref[...], preferred_element_type=jnp.float32)  # (Np, LANE)
    s_t = jnp.transpose(s)                                             # (LANE, Np), one XLU pass

    acc = jnp.zeros((n, LANE), jnp.float32)
    for hd in range(heads):                                            # static, small head loop
        # e[i, j] = leaky_relu(a_dst . h_i + a_src . h_j)
        e = _leaky(s[:, heads + hd:heads + hd + 1] + s_t[hd:hd + 1, :], att_slope)
        e = jnp.where(mask, e, -1e30)                                  # mask non-edges (f32 safe)
        m = jnp.max(e, axis=1, keepdims=True)
        p = jnp.exp(e - m)                                             # unnormalized attention
        rsum = jnp.sum(p, axis=1, keepdims=True)
        hh = hb[:, hd * LANE:(hd + 1) * LANE]                          # (Np, LANE), lane-aligned
        num = jnp.dot(p.astype(jnp.bfloat16), hh, preferred_element_type=jnp.float32)
        # normalize the (Np, LANE) numerator instead of the (Np, Np) probability matrix
        acc = acc + num * pl.reciprocal(rsum, approx=True)
        # TODO(synk): GATConv attention-dropout skipped (eval-mode identity).

    out = acc * (1.0 / heads) + b_ref[...]                             # concat=False -> mean; +bias
    return _leaky(out, out_slope)


def fused_kernel(x_ref, adj_ref,
                 w1_ref, att1_ref, b1_ref,
                 w2_ref, att2_ref, b2_ref,
                 wp_ref, bp_ref, wl_ref, bl_ref,
                 out_ref, *, heads, nclass):
    mask = adj_ref[...] > 0.0                                          # hoisted, reused by both layers

    # gnn1 + F.leaky_relu(., 0.2)
    h1 = _gat_layer(x_ref[...], w1_ref, att1_ref, b1_ref, mask,
                    heads=heads, att_slope=0.2, out_slope=0.2)
    # gnn2 + F.leaky_relu(.)  (default slope 0.01)
    h2 = _gat_layer(h1, w2_ref, att2_ref, b2_ref, mask,
                    heads=heads, att_slope=0.2, out_slope=0.01)

    # linear_pass -> reshape (identity for T=1) -> leaky_relu(0.2) -> dropout -> linear
    z = jnp.dot(h2.astype(jnp.bfloat16), wp_ref[...],
                preferred_element_type=jnp.float32) + bp_ref[...]
    z = _leaky(z, 0.2)
    # TODO(synk): nn.Dropout skipped (eval-mode identity).
    logits = jnp.dot(z.astype(jnp.bfloat16), wl_ref[...],
                     preferred_element_type=jnp.float32) + bl_ref[...]

    # mask padded class lanes then log_softmax over classes (dim=1), all in f32
    col = jax.lax.broadcasted_iota(jnp.int32, logits.shape, 1)
    logits = jnp.where(col < nclass, logits, -1e30)
    m = jnp.max(logits, axis=1, keepdims=True)
    lse = m + jnp.log(jnp.sum(jnp.exp(logits - m), axis=1, keepdims=True))
    out_ref[...] = logits - lse


# ------------------------------ wrapper / packing -----------------------------
def _round_up(v, m):
    return (v + m - 1) // m * m


def _pad2(x, rows, cols):
    return jnp.zeros((rows, cols), x.dtype).at[:x.shape[0], :x.shape[1]].set(x)


def _pack_gat_params(w, a_src, a_dst, heads, f_in, f_out):
    """Pack GAT weights into lane-padded, head-block layout (bf16 for the MXU)."""
    w_p = jnp.zeros((LANE, heads * LANE), jnp.float32)
    att_p = jnp.zeros((heads * LANE, LANE), jnp.float32)
    for hd in range(heads):
        w_p = w_p.at[:f_in, hd * LANE:hd * LANE + f_out].set(w[:, hd * f_out:(hd + 1) * f_out])
        att_p = att_p.at[hd * LANE:hd * LANE + f_out, hd].set(a_src[hd])
        att_p = att_p.at[hd * LANE:hd * LANE + f_out, heads + hd].set(a_dst[hd])
    return w_p.astype(jnp.bfloat16), att_p.astype(jnp.bfloat16)


def gat_classification_forward(graph, fts, time_steps, params, *, nheads,
                               nfeat, nhid_graph, nhid, nclass):
    (w1, a_src1, a_dst1, b1,
     w2, a_src2, a_dst2, b2,
     wp, bp, wl, bl) = params
    T, N, _ = fts.shape
    assert T == time_steps
    # The module's final nn.Linear(nhid, nclass) only type-checks when T * nhid == nhid,
    # i.e. time_steps == 1; the fused kernel implements exactly that case.
    assert time_steps == 1

    n_pad = _round_up(N, LANE)   # lane-dense attention matrices and output block

    x_p = _pad2(fts[0], n_pad, LANE)
    adj_p = _pad2(graph[0], n_pad, n_pad)

    w1_p, att1_p = _pack_gat_params(w1, a_src1, a_dst1, nheads, nfeat, nfeat)
    w2_p, att2_p = _pack_gat_params(w2, a_src2, a_dst2, nheads, nfeat, nhid_graph)
    b1_p = _pad2(b1, 1, LANE)
    b2_p = _pad2(b2, 1, LANE)
    wp_p = _pad2(wp, LANE, LANE).astype(jnp.bfloat16)
    bp_p = _pad2(bp, 1, LANE)
    wl_p = _pad2(wl, LANE, LANE).astype(jnp.bfloat16)
    bl_p = _pad2(bl, 1, LANE)

    kern = functools.partial(fused_kernel, heads=nheads, nclass=nclass)
    out_p = pl.pallas_call(
        kern,
        out_shape=jax.ShapeDtypeStruct((n_pad, LANE), jnp.float32),
        in_specs=[pl.BlockSpec(memory_space=pltpu.MemorySpace.VMEM)] * 12,
        out_specs=pl.BlockSpec(memory_space=pltpu.MemorySpace.VMEM),
        compiler_params=pltpu.CompilerParams(vmem_limit_bytes=32 * 1024 * 1024),
    )(x_p, adj_p, w1_p, att1_p, b1_p, w2_p, att2_p, b2_p, wp_p, bp_p, wl_p, bl_p)

    return out_p[:N, :nclass]


if __name__ == "__main__":
    # small shapes consistent with the module's forward (T must be 1, see above)
    T, N = 1, 16
    nfeat, nhid_graph, nhid, nclass, nheads = 8, 16, 32, 4, 2

    key = jax.random.PRNGKey(0)
    ks = jax.random.split(key, 12)

    # inputs
    fts = jax.random.normal(ks[0], (T, N, nfeat), jnp.float32)
    adj_raw = (jax.random.uniform(ks[1], (T, N, N)) > 0.7).astype(jnp.float32)
    graph = jnp.clip(adj_raw + jnp.eye(N, dtype=jnp.float32)[None], 0.0, 1.0)  # + self loops

    # deterministic parameter init (shapes follow the module's __init__)
    s = 0.1
    w1     = s * jax.random.normal(ks[2], (nfeat, nheads * nfeat), jnp.float32)
    a_src1 = s * jax.random.normal(ks[3], (nheads, nfeat), jnp.float32)
    a_dst1 = s * jax.random.normal(ks[4], (nheads, nfeat), jnp.float32)
    b1     = jnp.zeros((1, nfeat), jnp.float32)
    w2     = s * jax.random.normal(ks[5], (nfeat, nheads * nhid_graph), jnp.float32)
    a_src2 = s * jax.random.normal(ks[6], (nheads, nhid_graph), jnp.float32)
    a_dst2 = s * jax.random.normal(ks[7], (nheads, nhid_graph), jnp.float32)
    b2     = jnp.zeros((1, nhid_graph), jnp.float32)
    wp     = s * jax.random.normal(ks[8], (nhid_graph, nhid), jnp.float32)
    bp     = s * jax.random.normal(ks[9], (1, nhid), jnp.float32)
    wl     = s * jax.random.normal(ks[10], (nhid, nclass), jnp.float32)
    bl     = s * jax.random.normal(ks[11], (1, nclass), jnp.float32)

    params = (w1, a_src1, a_dst1, b1, w2, a_src2, a_dst2, b2, wp, bp, wl, bl)

    out = gat_classification_forward(graph, fts, T, params, nheads=nheads,
                                     nfeat=nfeat, nhid_graph=nhid_graph,
                                     nhid=nhid, nclass=nclass)
    out = jax.block_until_ready(out)
    assert out.shape == (N, nclass)
    # log_softmax rows must sum to 1 in prob space
    assert jnp.allclose(jnp.sum(jnp.exp(out), axis=1), 1.0, atol=1e-4)
    print("KERNEL_OK")
</pallas_src>

<mosaic_0001>
module attributes {stable_mosaic.version = 11 : i64} {
  func.func @fused_kernel(%arg0: memref<128x128xf32, #tpu.memory_space<vmem>>, %arg1: memref<128x128xf32, #tpu.memory_space<vmem>>, %arg2: memref<128x256xbf16, #tpu.memory_space<vmem>>, %arg3: memref<256x128xbf16, #tpu.memory_space<vmem>>, %arg4: memref<1x128xf32, #tpu.memory_space<vmem>>, %arg5: memref<128x256xbf16, #tpu.memory_space<vmem>>, %arg6: memref<256x128xbf16, #tpu.memory_space<vmem>>, %arg7: memref<1x128xf32, #tpu.memory_space<vmem>>, %arg8: memref<128x128xbf16, #tpu.memory_space<vmem>>, %arg9: memref<1x128xf32, #tpu.memory_space<vmem>>, %arg10: memref<128x128xbf16, #tpu.memory_space<vmem>>, %arg11: memref<1x128xf32, #tpu.memory_space<vmem>>, %arg12: memref<128x128xf32, #tpu.memory_space<vmem>>) attributes {dimension_semantics = [], scalar_prefetch = 0 : i64, scratch_operands = 0 : i64, tpu.core_type = #tpu.core_type<tc>} {
    %c0 = arith.constant 0 : index
    %c0_0 = arith.constant 0 : index
    %0 = vector.load %arg1[%c0, %c0_0] : memref<128x128xf32, #tpu.memory_space<vmem>>, vector<128x128xf32>
    %cst = arith.constant 0.000000e+00 : f32
    %1 = vector.broadcast %cst : f32 to vector<128x128xf32>
    %2 = arith.cmpf ogt, %0, %1 : vector<128x128xf32>
    %c0_1 = arith.constant 0 : index
    %c0_2 = arith.constant 0 : index
    %3 = vector.load %arg0[%c0_1, %c0_2] : memref<128x128xf32, #tpu.memory_space<vmem>>, vector<128x128xf32>
    %4 = arith.truncf %3 : vector<128x128xf32> to vector<128x128xbf16>
    %c0_3 = arith.constant 0 : index
    %c0_4 = arith.constant 0 : index
    %5 = vector.load %arg2[%c0_3, %c0_4] : memref<128x256xbf16, #tpu.memory_space<vmem>>, vector<128x256xbf16>
    %cst_5 = arith.constant dense<0.000000e+00> : vector<128x256xf32>
    %6 = tpu.matmul %4, %5, %cst_5 {dimension_numbers = #tpu.dot_dimension_numbers<[1], [0], [0], [1], [0, 0, 1, 1], [], []>} : vector<128x128xbf16>, vector<128x256xbf16>, vector<128x256xf32> -> vector<128x256xf32>
    %7 = arith.truncf %6 : vector<128x256xf32> to vector<128x256xbf16>
    %c0_6 = arith.constant 0 : index
    %c0_7 = arith.constant 0 : index
    %8 = vector.load %arg3[%c0_6, %c0_7] : memref<256x128xbf16, #tpu.memory_space<vmem>>, vector<256x128xbf16>
    %cst_8 = arith.constant dense<0.000000e+00> : vector<128x128xf32>
    %9 = tpu.matmul %7, %8, %cst_8 {dimension_numbers = #tpu.dot_dimension_numbers<[1], [0], [0], [1], [0, 0, 1, 1], [], []>} : vector<128x256xbf16>, vector<256x128xbf16>, vector<128x128xf32> -> vector<128x128xf32>
    %10 = tpu.transpose %9, [1, 0] : vector<128x128xf32> -> vector<128x128xf32>
    %cst_9 = arith.constant 0.000000e+00 : f32
    %11 = vector.broadcast %cst_9 : f32 to vector<128x128xf32>
    %12 = vector.extract_strided_slice %9 {offsets = [0, 2], sizes = [128, 1], strides = [1, 1]} : vector<128x128xf32> to vector<128x1xf32>
    %13 = vector.extract_strided_slice %10 {offsets = [0, 0], sizes = [1, 128], strides = [1, 1]} : vector<128x128xf32> to vector<1x128xf32>
    %14 = vector.broadcast %12 : vector<128x1xf32> to vector<128x128xf32>
    %15 = vector.broadcast %13 : vector<1x128xf32> to vector<128x128xf32>
    %16 = arith.addf %14, %15 : vector<128x128xf32>
    %cst_10 = arith.constant 0.000000e+00 : f32
    %17 = vector.broadcast %cst_10 : f32 to vector<128x128xf32>
    %18 = arith.cmpf oge, %16, %17 : vector<128x128xf32>
    %cst_11 = arith.constant 2.000000e-01 : f32
    %19 = vector.broadcast %cst_11 : f32 to vector<128x128xf32>
    %20 = arith.mulf %19, %16 : vector<128x128xf32>
    %21 = arith.select %18, %16, %20 : vector<128x128xi1>, vector<128x128xf32>
    %cst_12 = arith.constant -1.000000e+30 : f32
    %22 = vector.broadcast %cst_12 : f32 to vector<128x128xf32>
    %23 = arith.select %2, %21, %22 : vector<128x128xi1>, vector<128x128xf32>
    %cst_13 = arith.constant dense<0xFF800000> : vector<128xf32>
    %24 = vector.multi_reduction <maximumf>, %23, %cst_13 [1] : vector<128x128xf32> to vector<128xf32>
    %25 = vector.shape_cast %24 : vector<128xf32> to vector<128x1xf32>
    %26 = vector.broadcast %25 : vector<128x1xf32> to vector<128x128xf32>
    %27 = arith.subf %23, %26 : vector<128x128xf32>
    %28 = math.exp %27 : vector<128x128xf32>
    %cst_14 = arith.constant dense<0.000000e+00> : vector<128xf32>
    %29 = vector.multi_reduction <add>, %28, %cst_14 [1] : vector<128x128xf32> to vector<128xf32>
    %30 = vector.shape_cast %29 : vector<128xf32> to vector<128x1xf32>
    %31 = vector.extract_strided_slice %7 {offsets = [0, 0], sizes = [128, 128], strides = [1, 1]} : vector<128x256xbf16> to vector<128x128xbf16>
    %32 = arith.truncf %28 : vector<128x128xf32> to vector<128x128xbf16>
    %cst_15 = arith.constant dense<0.000000e+00> : vector<128x128xf32>
    %33 = tpu.matmul %32, %31, %cst_15 {dimension_numbers = #tpu.dot_dimension_numbers<[1], [0], [0], [1], [0, 0, 1, 1], [], []>} : vector<128x128xbf16>, vector<128x128xbf16>, vector<128x128xf32> -> vector<128x128xf32>
    %34 = tpu.reciprocal %30 {approx = true} : vector<128x1xf32> -> vector<128x1xf32>
    %35 = vector.broadcast %34 : vector<128x1xf32> to vector<128x128xf32>
    %36 = arith.mulf %33, %35 : vector<128x128xf32>
    %37 = arith.addf %11, %36 : vector<128x128xf32>
    %38 = vector.extract_strided_slice %9 {offsets = [0, 3], sizes = [128, 1], strides = [1, 1]} : vector<128x128xf32> to vector<128x1xf32>
    %39 = vector.extract_strided_slice %10 {offsets = [1, 0], sizes = [1, 128], strides = [1, 1]} : vector<128x128xf32> to vector<1x128xf32>
    %40 = vector.broadcast %38 : vector<128x1xf32> to vector<128x128xf32>
    %41 = vector.broadcast %39 : vector<1x128xf32> to vector<128x128xf32>
    %42 = arith.addf %40, %41 : vector<128x128xf32>
    %cst_16 = arith.constant 0.000000e+00 : f32
    %43 = vector.broadcast %cst_16 : f32 to vector<128x128xf32>
    %44 = arith.cmpf oge, %42, %43 : vector<128x128xf32>
    %cst_17 = arith.constant 2.000000e-01 : f32
    %45 = vector.broadcast %cst_17 : f32 to vector<128x128xf32>
    %46 = arith.mulf %45, %42 : vector<128x128xf32>
    %47 = arith.select %44, %42, %46 : vector<128x128xi1>, vector<128x128xf32>
    %cst_18 = arith.constant -1.000000e+30 : f32
    %48 = vector.broadcast %cst_18 : f32 to vector<128x128xf32>
    %49 = arith.select %2, %47, %48 : vector<128x128xi1>, vector<128x128xf32>
    %cst_19 = arith.constant dense<0xFF800000> : vector<128xf32>
    %50 = vector.multi_reduction <maximumf>, %49, %cst_19 [1] : vector<128x128xf32> to vector<128xf32>
    %51 = vector.shape_cast %50 : vector<128xf32> to vector<128x1xf32>
    %52 = vector.broadcast %51 : vector<128x1xf32> to vector<128x128xf32>
    %53 = arith.subf %49, %52 : vector<128x128xf32>
    %54 = math.exp %53 : vector<128x128xf32>
    %cst_20 = arith.constant dense<0.000000e+00> : vector<128xf32>
    %55 = vector.multi_reduction <add>, %54, %cst_20 [1] : vector<128x128xf32> to vector<128xf32>
    %56 = vector.shape_cast %55 : vector<128xf32> to vector<128x1xf32>
    %57 = vector.extract_strided_slice %7 {offsets = [0, 128], sizes = [128, 128], strides = [1, 1]} : vector<128x256xbf16> to vector<128x128xbf16>
    %58 = arith.truncf %54 : vector<128x128xf32> to vector<128x128xbf16>
    %cst_21 = arith.constant dense<0.000000e+00> : vector<128x128xf32>
    %59 = tpu.matmul %58, %57, %cst_21 {dimension_numbers = #tpu.dot_dimension_numbers<[1], [0], [0], [1], [0, 0, 1, 1], [], []>} : vector<128x128xbf16>, vector<128x128xbf16>, vector<128x128xf32> -> vector<128x128xf32>
    %60 = tpu.reciprocal %56 {approx = true} : vector<128x1xf32> -> vector<128x1xf32>
    %61 = vector.broadcast %60 : vector<128x1xf32> to vector<128x128xf32>
    %62 = arith.mulf %59, %61 : vector<128x128xf32>
    %63 = arith.addf %37, %62 : vector<128x128xf32>
    %cst_22 = arith.constant 5.000000e-01 : f32
    %64 = vector.broadcast %cst_22 : f32 to vector<128x128xf32>
    %65 = arith.mulf %63, %64 : vector<128x128xf32>
    %c0_23 = arith.constant 0 : index
    %c0_24 = arith.constant 0 : index
    %66 = vector.load %arg4[%c0_23, %c0_24] : memref<1x128xf32, #tpu.memory_space<vmem>>, vector<1x128xf32>
    %67 = vector.broadcast %66 : vector<1x128xf32> to vector<128x128xf32>
    %68 = arith.addf %65, %67 : vector<128x128xf32>
    %cst_25 = arith.constant 0.000000e+00 : f32
    %69 = vector.broadcast %cst_25 : f32 to vector<128x128xf32>
    %70 = arith.cmpf oge, %68, %69 : vector<128x128xf32>
    %cst_26 = arith.constant 2.000000e-01 : f32
    %71 = vector.broadcast %cst_26 : f32 to vector<128x128xf32>
    %72 = arith.mulf %71, %68 : vector<128x128xf32>
    %73 = arith.select %70, %68, %72 : vector<128x128xi1>, vector<128x128xf32>
    %74 = arith.truncf %73 : vector<128x128xf32> to vector<128x128xbf16>
    %c0_27 = arith.constant 0 : index
    %c0_28 = arith.constant 0 : index
    %75 = vector.load %arg5[%c0_27, %c0_28] : memref<128x256xbf16, #tpu.memory_space<vmem>>, vector<128x256xbf16>
    %cst_29 = arith.constant dense<0.000000e+00> : vector<128x256xf32>
    %76 = tpu.matmul %74, %75, %cst_29 {dimension_numbers = #tpu.dot_dimension_numbers<[1], [0], [0], [1], [0, 0, 1, 1], [], []>} : vector<128x128xbf16>, vector<128x256xbf16>, vector<128x256xf32> -> vector<128x256xf32>
    %77 = arith.truncf %76 : vector<128x256xf32> to vector<128x256xbf16>
    %c0_30 = arith.constant 0 : index
    %c0_31 = arith.constant 0 : index
    %78 = vector.load %arg6[%c0_30, %c0_31] : memref<256x128xbf16, #tpu.memory_space<vmem>>, vector<256x128xbf16>
    %cst_32 = arith.constant dense<0.000000e+00> : vector<128x128xf32>
    %79 = tpu.matmul %77, %78, %cst_32 {dimension_numbers = #tpu.dot_dimension_numbers<[1], [0], [0], [1], [0, 0, 1, 1], [], []>} : vector<128x256xbf16>, vector<256x128xbf16>, vector<128x128xf32> -> vector<128x128xf32>
    %80 = tpu.transpose %79, [1, 0] : vector<128x128xf32> -> vector<128x128xf32>
    %cst_33 = arith.constant 0.000000e+00 : f32
    %81 = vector.broadcast %cst_33 : f32 to vector<128x128xf32>
    %82 = vector.extract_strided_slice %79 {offsets = [0, 2], sizes = [128, 1], strides = [1, 1]} : vector<128x128xf32> to vector<128x1xf32>
    %83 = vector.extract_strided_slice %80 {offsets = [0, 0], sizes = [1, 128], strides = [1, 1]} : vector<128x128xf32> to vector<1x128xf32>
    %84 = vector.broadcast %82 : vector<128x1xf32> to vector<128x128xf32>
    %85 = vector.broadcast %83 : vector<1x128xf32> to vector<128x128xf32>
    %86 = arith.addf %84, %85 : vector<128x128xf32>
    %cst_34 = arith.constant 0.000000e+00 : f32
    %87 = vector.broadcast %cst_34 : f32 to vector<128x128xf32>
    %88 = arith.cmpf oge, %86, %87 : vector<128x128xf32>
    %cst_35 = arith.constant 2.000000e-01 : f32
    %89 = vector.broadcast %cst_35 : f32 to vector<128x128xf32>
    %90 = arith.mulf %89, %86 : vector<128x128xf32>
    %91 = arith.select %88, %86, %90 : vector<128x128xi1>, vector<128x128xf32>
    %cst_36 = arith.constant -1.000000e+30 : f32
    %92 = vector.broadcast %cst_36 : f32 to vector<128x128xf32>
    %93 = arith.select %2, %91, %92 : vector<128x128xi1>, vector<128x128xf32>
    %cst_37 = arith.constant dense<0xFF800000> : vector<128xf32>
    %94 = vector.multi_reduction <maximumf>, %93, %cst_37 [1] : vector<128x128xf32> to vector<128xf32>
    %95 = vector.shape_cast %94 : vector<128xf32> to vector<128x1xf32>
    %96 = vector.broadcast %95 : vector<128x1xf32> to vector<128x128xf32>
    %97 = arith.subf %93, %96 : vector<128x128xf32>
    %98 = math.exp %97 : vector<128x128xf32>
    %cst_38 = arith.constant dense<0.000000e+00> : vector<128xf32>
    %99 = vector.multi_reduction <add>, %98, %cst_38 [1] : vector<128x128xf32> to vector<128xf32>
    %100 = vector.shape_cast %99 : vector<128xf32> to vector<128x1xf32>
    %101 = vector.extract_strided_slice %77 {offsets = [0, 0], sizes = [128, 128], strides = [1, 1]} : vector<128x256xbf16> to vector<128x128xbf16>
    %102 = arith.truncf %98 : vector<128x128xf32> to vector<128x128xbf16>
    %cst_39 = arith.constant dense<0.000000e+00> : vector<128x128xf32>
    %103 = tpu.matmul %102, %101, %cst_39 {dimension_numbers = #tpu.dot_dimension_numbers<[1], [0], [0], [1], [0, 0, 1, 1], [], []>} : vector<128x128xbf16>, vector<128x128xbf16>, vector<128x128xf32> -> vector<128x128xf32>
    %104 = tpu.reciprocal %100 {approx = true} : vector<128x1xf32> -> vector<128x1xf32>
    %105 = vector.broadcast %104 : vector<128x1xf32> to vector<128x128xf32>
    %106 = arith.mulf %103, %105 : vector<128x128xf32>
    %107 = arith.addf %81, %106 : vector<128x128xf32>
    %108 = vector.extract_strided_slice %79 {offsets = [0, 3], sizes = [128, 1], strides = [1, 1]} : vector<128x128xf32> to vector<128x1xf32>
    %109 = vector.extract_strided_slice %80 {offsets = [1, 0], sizes = [1, 128], strides = [1, 1]} : vector<128x128xf32> to vector<1x128xf32>
    %110 = vector.broadcast %108 : vector<128x1xf32> to vector<128x128xf32>
    %111 = vector.broadcast %109 : vector<1x128xf32> to vector<128x128xf32>
    %112 = arith.addf %110, %111 : vector<128x128xf32>
    %cst_40 = arith.constant 0.000000e+00 : f32
    %113 = vector.broadcast %cst_40 : f32 to vector<128x128xf32>
    %114 = arith.cmpf oge, %112, %113 : vector<128x128xf32>
    %cst_41 = arith.constant 2.000000e-01 : f32
    %115 = vector.broadcast %cst_41 : f32 to vector<128x128xf32>
    %116 = arith.mulf %115, %112 : vector<128x128xf32>
    %117 = arith.select %114, %112, %116 : vector<128x128xi1>, vector<128x128xf32>
    %cst_42 = arith.constant -1.000000e+30 : f32
    %118 = vector.broadcast %cst_42 : f32 to vector<128x128xf32>
    %119 = arith.select %2, %117, %118 : vector<128x128xi1>, vector<128x128xf32>
    %cst_43 = arith.constant dense<0xFF800000> : vector<128xf32>
    %120 = vector.multi_reduction <maximumf>, %119, %cst_43 [1] : vector<128x128xf32> to vector<128xf32>
    %121 = vector.shape_cast %120 : vector<128xf32> to vector<128x1xf32>
    %122 = vector.broadcast %121 : vector<128x1xf32> to vector<128x128xf32>
    %123 = arith.subf %119, %122 : vector<128x128xf32>
    %124 = math.exp %123 : vector<128x128xf32>
    %cst_44 = arith.constant dense<0.000000e+00> : vector<128xf32>
    %125 = vector.multi_reduction <add>, %124, %cst_44 [1] : vector<128x128xf32> to vector<128xf32>
    %126 = vector.shape_cast %125 : vector<128xf32> to vector<128x1xf32>
    %127 = vector.extract_strided_slice %77 {offsets = [0, 128], sizes = [128, 128], strides = [1, 1]} : vector<128x256xbf16> to vector<128x128xbf16>
    %128 = arith.truncf %124 : vector<128x128xf32> to vector<128x128xbf16>
    %cst_45 = arith.constant dense<0.000000e+00> : vector<128x128xf32>
    %129 = tpu.matmul %128, %127, %cst_45 {dimension_numbers = #tpu.dot_dimension_numbers<[1], [0], [0], [1], [0, 0, 1, 1], [], []>} : vector<128x128xbf16>, vector<128x128xbf16>, vector<128x128xf32> -> vector<128x128xf32>
    %130 = tpu.reciprocal %126 {approx = true} : vector<128x1xf32> -> vector<128x1xf32>
    %131 = vector.broadcast %130 : vector<128x1xf32> to vector<128x128xf32>
    %132 = arith.mulf %129, %131 : vector<128x128xf32>
    %133 = arith.addf %107, %132 : vector<128x128xf32>
    %cst_46 = arith.constant 5.000000e-01 : f32
    %134 = vector.broadcast %cst_46 : f32 to vector<128x128xf32>
    %135 = arith.mulf %133, %134 : vector<128x128xf32>
    %c0_47 = arith.constant 0 : index
    %c0_48 = arith.constant 0 : index
    %136 = vector.load %arg7[%c0_47, %c0_48] : memref<1x128xf32, #tpu.memory_space<vmem>>, vector<1x128xf32>
    %137 = vector.broadcast %136 : vector<1x128xf32> to vector<128x128xf32>
    %138 = arith.addf %135, %137 : vector<128x128xf32>
    %cst_49 = arith.constant 0.000000e+00 : f32
    %139 = vector.broadcast %cst_49 : f32 to vector<128x128xf32>
    %140 = arith.cmpf oge, %138, %139 : vector<128x128xf32>
    %cst_50 = arith.constant 0.00999999977 : f32
    %141 = vector.broadcast %cst_50 : f32 to vector<128x128xf32>
    %142 = arith.mulf %141, %138 : vector<128x128xf32>
    %143 = arith.select %140, %138, %142 : vector<128x128xi1>, vector<128x128xf32>
    %144 = arith.truncf %143 : vector<128x128xf32> to vector<128x128xbf16>
    %c0_51 = arith.constant 0 : index
    %c0_52 = arith.constant 0 : index
    %145 = vector.load %arg8[%c0_51, %c0_52] : memref<128x128xbf16, #tpu.memory_space<vmem>>, vector<128x128xbf16>
    %cst_53 = arith.constant dense<0.000000e+00> : vector<128x128xf32>
    %146 = tpu.matmul %144, %145, %cst_53 {dimension_numbers = #tpu.dot_dimension_numbers<[1], [0], [0], [1], [0, 0, 1, 1], [], []>} : vector<128x128xbf16>, vector<128x128xbf16>, vector<128x128xf32> -> vector<128x128xf32>
    %c0_54 = arith.constant 0 : index
    %c0_55 = arith.constant 0 : index
    %147 = vector.load %arg9[%c0_54, %c0_55] : memref<1x128xf32, #tpu.memory_space<vmem>>, vector<1x128xf32>
    %148 = vector.broadcast %147 : vector<1x128xf32> to vector<128x128xf32>
    %149 = arith.addf %146, %148 : vector<128x128xf32>
    %cst_56 = arith.constant 0.000000e+00 : f32
    %150 = vector.broadcast %cst_56 : f32 to vector<128x128xf32>
    %151 = arith.cmpf oge, %149, %150 : vector<128x128xf32>
    %cst_57 = arith.constant 2.000000e-01 : f32
    %152 = vector.broadcast %cst_57 : f32 to vector<128x128xf32>
    %153 = arith.mulf %152, %149 : vector<128x128xf32>
    %154 = arith.select %151, %149, %153 : vector<128x128xi1>, vector<128x128xf32>
    %155 = arith.truncf %154 : vector<128x128xf32> to vector<128x128xbf16>
    %c0_58 = arith.constant 0 : index
    %c0_59 = arith.constant 0 : index
    %156 = vector.load %arg10[%c0_58, %c0_59] : memref<128x128xbf16, #tpu.memory_space<vmem>>, vector<128x128xbf16>
    %cst_60 = arith.constant dense<0.000000e+00> : vector<128x128xf32>
    %157 = tpu.matmul %155, %156, %cst_60 {dimension_numbers = #tpu.dot_dimension_numbers<[1], [0], [0], [1], [0, 0, 1, 1], [], []>} : vector<128x128xbf16>, vector<128x128xbf16>, vector<128x128xf32> -> vector<128x128xf32>
    %c0_61 = arith.constant 0 : index
    %c0_62 = arith.constant 0 : index
    %158 = vector.load %arg11[%c0_61, %c0_62] : memref<1x128xf32, #tpu.memory_space<vmem>>, vector<1x128xf32>
    %159 = vector.broadcast %158 : vector<1x128xf32> to vector<128x128xf32>
    %160 = arith.addf %157, %159 : vector<128x128xf32>
    %161 = tpu.iota {dimensions = array<i32: 1>} : vector<128x128xi32>
    %c4_i32 = arith.constant 4 : i32
    %162 = vector.broadcast %c4_i32 : i32 to vector<128x128xi32>
    %163 = arith.cmpi slt, %161, %162 : vector<128x128xi32>
    %cst_63 = arith.constant -1.000000e+30 : f32
    %164 = vector.broadcast %cst_63 : f32 to vector<128x128xf32>
    %165 = arith.select %163, %160, %164 : vector<128x128xi1>, vector<128x128xf32>
    %cst_64 = arith.constant dense<0xFF800000> : vector<128xf32>
    %166 = vector.multi_reduction <maximumf>, %165, %cst_64 [1] : vector<128x128xf32> to vector<128xf32>
    %167 = vector.shape_cast %166 : vector<128xf32> to vector<128x1xf32>
    %168 = vector.broadcast %167 : vector<128x1xf32> to vector<128x128xf32>
    %169 = arith.subf %165, %168 : vector<128x128xf32>
    %170 = math.exp %169 : vector<128x128xf32>
    %cst_65 = arith.constant dense<0.000000e+00> : vector<128xf32>
    %171 = vector.multi_reduction <add>, %170, %cst_65 [1] : vector<128x128xf32> to vector<128xf32>
    %172 = vector.shape_cast %171 : vector<128xf32> to vector<128x1xf32>
    %173 = math.log %172 : vector<128x1xf32>
    %174 = arith.addf %167, %173 : vector<128x1xf32>
    %175 = vector.broadcast %174 : vector<128x1xf32> to vector<128x128xf32>
    %176 = arith.subf %165, %175 : vector<128x128xf32>
    %c0_66 = arith.constant 0 : index
    %c0_67 = arith.constant 0 : index
    %177 = vector.load %arg12[%c0_66, %c0_67] : memref<128x128xf32, #tpu.memory_space<vmem>>, vector<128x128xf32>
    tpu.vector_store %arg12[%c0_66, %c0_67], %176 {strides = array<i32>} : memref<128x128xf32, #tpu.memory_space<vmem>>, vector<128x128xf32>,
    return
  }
}

</mosaic_0001>

<bundles_post_ra>
// kernel: tpu_custom_call.1
= control target key start
LH: loop header
LB: loop body
LE: loop exit
PB: predicated region body
PF: predicated region fallthrough
CT: control target
= control target key end

     0   :  { %17 = vsyncpa [#allocation3], 0  ;;  %s5776_s0 = inlined_call_operand.hbm [shape: f32[128,128], index: 0, kind: input, shape index: {}]   ;;  %s5777_s1 = inlined_call_operand.hbm [shape: f32[128,128], index: 1, kind: input, shape index: {}]   ;;  %s5778_s2 = inlined_call_operand.hbm [shape: bf16[128,256], index: 2, kind: input, shape index: {}]   ;;  %s5779_s3 = inlined_call_operand.hbm [shape: bf16[256,128], index: 3, kind: input, shape index: {}]   ;;  %s5780_s4 = inlined_call_operand.vmem [shape: f32[1,128], index: 4, kind: input, shape index: {}]   ;;  %s5781_s5 = inlined_call_operand.hbm [shape: bf16[128,256], index: 5, kind: input, shape index: {}]   ;;  %s5782_s6 = inlined_call_operand.hbm [shape: bf16[256,128], index: 6, kind: input, shape index: {}]   ;;  %s5783_s7 = inlined_call_operand.vmem [shape: f32[1,128], index: 7, kind: input, shape index: {}]   ;;  %s5784_s8 = inlined_call_operand.hbm [shape: bf16[128,128], index: 8, kind: input, shape index: {}]   ;;  %s5785_s9 = inlined_call_operand.vmem [shape: f32[1,128], index: 9, kind: input, shape index: {}]   ;;  %s5786_s10 = inlined_call_operand.hbm [shape: bf16[128,128], index: 10, kind: input, shape index: {}]   ;;  %s5787_s11 = inlined_call_operand.vmem [shape: f32[1,128], index: 11, kind: input, shape index: {}]   ;;  %s5788_s12 = inlined_call_operand.hbm [shape: f32[128,128], index: 12, kind: output, shape index: {}]  }
   0x1   :  { %18 = vsyncpa [#allocation6], 0 }
   0x2   :  { %19 = vsyncpa [#allocation9], 0 }
   0x3   :  { %20 = vsyncpa [#allocation12], 0 }
   0x4   :  { %21 = vsyncpa [#allocation15], 0 }
   0x5   :  { %22 = vsyncpa [#allocation4], 0  ;;  %s40_s23 = sshll.u32 %s5777_s1, 4  ;;  %s4534_s24 = smov [#allocation5]   ;;  %s41_s23 = int_to_ptr.hbm [resolvable:$true] %s40_s23 }
   0x6   :  { %s42_s25 = sshll.u32 %s4534_s24, 4  ;;  %s66_s28 = sshll.u32 %s5779_s3, 4  ;;  %s43_s25 = int_to_ptr.vmem [resolvable:$true] %s42_s25  ;;  %s67_s28 = int_to_ptr.hbm [resolvable:$true] %s66_s28 }
   0x7   :  { %s4535_s29 = smov 128   ;;  %s4536_s30 = smov 8  }
   0x8   :  { %48 = dma.hbm_to_vmem [thread:$0]  %s41_s23, 2048, %s43_s25, [#allocation6], %s4535_s29, %s4535_s29, %s4536_s30  }
   0x9   :  { %s4537_s13 = smov [#allocation8]   ;;  %s4538_s15 = smov 64  }
   0xa   :  { %s68_s14 = sshll.u32 %s4537_s13, 4  ;;  %s4539_s1 = smov 4   ;;  %s69_s14 = int_to_ptr.vmem [resolvable:$true] %s68_s14 }
   0xb   :  { %74 = dma.hbm_to_vmem [thread:$0]  %s67_s28, 2048, %s69_s14, [#allocation9], %s4538_s15, %s4538_s15, %s4539_s1  }
   0xc   :  { %s94_s3 = sshll.u32 %s5782_s6, 4  ;;  %s4540_s18 = smov [#allocation11]   ;;  %s95_s3 = int_to_ptr.hbm [resolvable:$true] %s94_s3 }
   0xd   :  { %s96_s19 = sshll.u32 %s4540_s18, 4  ;;  %s27_s22 = sshll.u32 %s5776_s0, 4  ;;  %s97_s19 = int_to_ptr.vmem [resolvable:$true] %s96_s19  ;;  %s28_s22 = int_to_ptr.hbm [resolvable:$true] %s27_s22 }
   0xe   :  { %102 = dma.hbm_to_vmem [thread:$0]  %s95_s3, 2048, %s97_s19, [#allocation12], %s4538_s15, %s4538_s15, %s4539_s1  }
   0xf   :  { %s4541_s23 = smov [#allocation2]   ;;  %s53_s27 = sshll.u32 %s5778_s2, 4  ;;  %s54_s27 = int_to_ptr.hbm [resolvable:$true] %s53_s27 }
  0x10   :  { %s29_s24 = sshll.u32 %s4541_s23, 4  ;;  %s81_s0 = sshll.u32 %s5781_s5, 4  ;;  %s30_s24 = int_to_ptr.vmem [resolvable:$true] %s29_s24  ;;  %s82_s0 = int_to_ptr.hbm [resolvable:$true] %s81_s0 }
  0x11   :  { %35 = dma.hbm_to_vmem [thread:$0]  %s28_s22, 2048, %s30_s24, [#allocation3], %s4535_s29, %s4535_s29, %s4536_s30  }
  0x12   :  { %s4542_s13 = smov [#allocation7]   ;;  %s4543_s16 = smov [#allocation10]  }
  0x13   :  { %s55_s14 = sshll.u32 %s4542_s13, 4  ;;  %s83_s2 = sshll.u32 %s4543_s16, 4  ;;  %s56_s14 = int_to_ptr.vmem [resolvable:$true] %s55_s14  ;;  %s84_s2 = int_to_ptr.vmem [resolvable:$true] %s83_s2 }
  0x14   :  { %61 = dma.hbm_to_vmem [thread:$0]  %s54_s27, 2048, %s56_s14, [#allocation6], %s4535_s29, %s4535_s29, %s4536_s30  }
  0x15   :  { %s109_s18 = sshll.u32 %s5784_s8, 4  ;;  %s124_s20 = sshll.u32 %s5786_s10, 4  ;;  %s110_s18 = int_to_ptr.hbm [resolvable:$true] %s109_s18  ;;  %s125_s20 = int_to_ptr.hbm [resolvable:$true] %s124_s20 }
  0x16   :  { %89 = dma.hbm_to_vmem [thread:$0]  %s82_s0, 2048, %s84_s2, [#allocation9], %s4535_s29, %s4535_s29, %s4536_s30  }
  0x17   :  { %s4544_s21 = smov [#allocation13]   ;;  %s4545_s23 = smov [#allocation14]  }
  0x18   :  { %s111_s22 = sshll.u32 %s4544_s21, 4  ;;  %s126_s8 = sshll.u32 %s4545_s23, 4  ;;  %s112_s22 = int_to_ptr.vmem [resolvable:$true] %s111_s22  ;;  %s127_s8 = int_to_ptr.vmem [resolvable:$true] %s126_s8 }
  0x19   :  { %117 = dma.hbm_to_vmem [thread:$0]  %s110_s18, 1024, %s112_s22, [#allocation12], %s4538_s15, %s4538_s15, %s4539_s1  }
  0x1a   :  { %132 = dma.hbm_to_vmem [thread:$0]  %s125_s20, 1024, %s127_s8, [#allocation15], %s4538_s15, %s4538_s15, %s4539_s1  }
  0x1b   :  { %4522 = dma.done.wait [#allocation3], 2048  }
  0x1c   :  { %4523 = vsyncadd [#allocation3], 4294965248 }
  0x1d   :  { %4524 = dma.done.wait [#allocation6], 4096  }
  0x1e   :  { %4525 = vsyncadd [#allocation6], 4294963200 }
  0x1f   :  { %4526 = dma.done.wait [#allocation9], 4096  }
  0x20   :  { %4527 = vsyncadd [#allocation9], 4294963200 }
  0x21   :  { %4528 = dma.done.wait [#allocation12], 3072  }
  0x22   :  { %4529 = vsyncadd [#allocation12], 4294964224 }
  0x23   :  { %4530 = dma.done.wait [#allocation15], 1024  }
  0x24   :  { %4531 = vsyncadd [#allocation15], 4294966272  ;;  %v3565_v0 = vld [vmem:[#allocation7 + $0x70] sm:$0xf]  ;;  %v3842_v1 = vld [vmem:[#allocation7 + $0x74] sm:$0xf0] }
  0x25   :  { %v3841_v2 = vld [vmem:[#allocation7 + $0x74] sm:$0xf]  ;;  %v3566_v3 = vor.u32 %v3842_v1, %v3565_v0  ;;  %v3567_v4 = vld [vmem:[#allocation7 + $0x78] sm:$0xf0]  ;;  %v3557_v5 = vld [vmem:[#allocation7 + $0x60] sm:$0xf] }
  0x26   :  { %v3840_v6 = vld [vmem:[#allocation7 + $0x64] sm:$0xf0]  ;;  %v3570_v7 = vor.u32 %v3841_v2, %v3567_v4  ;;  %v3839_v8 = vld [vmem:[#allocation7 + $0x64] sm:$0xf]  ;;  %v3559_v9 = vld [vmem:[#allocation7 + $0x68] sm:$0xf0] }
  0x27   :  { %319 = vmatpush.bf16.msra.mxu0 %v3566_v3  ;;  %3907 = vmatpush.bf16.msra.mxu2 %v3566_v3  ;;  %v3558_v10 = vor.u32 %v3840_v6, %v3557_v5  ;;  %v3562_v11 = vor.u32 %v3839_v8, %v3559_v9  ;;  %v3549_v12 = vld [vmem:[#allocation7 + $0x50] sm:$0xf]  ;;  %v3838_v13 = vld [vmem:[#allocation7 + $0x54] sm:$0xf0]  ;;  %v3837_v14 = vld [vmem:[#allocation7 + $0x54] sm:$0xf] }
  0x28   :  { %368 = vmatpush.bf16.msra.mxu1 %v3570_v7  ;;  %3915 = vmatpush.bf16.msra.mxu3 %v3570_v7  ;;  %v3551_v15 = vld [vmem:[#allocation7 + $0x58] sm:$0xf0]  ;;  %v3550_v16 = vor.u32 %v3838_v13, %v3549_v12  ;;  %v3541_v18 = vld [vmem:[#allocation7 + $0x40] sm:$0xf]  ;;  %v3836_v19 = vld [vmem:[#allocation7 + $0x44] sm:$0xf0] }
  0x29   :  { %v3554_v17 = vor.u32 %v3837_v14, %v3551_v15  ;;  %v3835_v20 = vld [vmem:[#allocation7 + $0x44] sm:$0xf]  ;;  %v3543_v21 = vld [vmem:[#allocation7 + $0x48] sm:$0xf0]  ;;  %v3542_v22 = vor.u32 %v3836_v19, %v3541_v18  ;;  %v3533_v23 = vld [vmem:[#allocation7 + $0x30] sm:$0xf] }
  0x2a   :  { %v3834_v24 = vld [vmem:[#allocation7 + $0x34] sm:$0xf0]  ;;  %v3546_v25 = vor.u32 %v3835_v20, %v3543_v21  ;;  %v3833_v26 = vld [vmem:[#allocation7 + $0x34] sm:$0xf]  ;;  %v3535_v27 = vld [vmem:[#allocation7 + $0x38] sm:$0xf0] }
  0x2b   :  { %320 = vmatpush.bf16.msra.mxu0 %v3558_v10  ;;  %3908 = vmatpush.bf16.msra.mxu2 %v3558_v10  ;;  %v3534_v28 = vor.u32 %v3834_v24, %v3533_v23  ;;  %v3538_v29 = vor.u32 %v3833_v26, %v3535_v27  ;;  %v3525_v30 = vld [vmem:[#allocation7 + $0x20] sm:$0xf]  ;;  %v3832_v31 = vld [vmem:[#allocation7 + $0x24] sm:$0xf0]  ;;  %v3831_v32 = vld [vmem:[#allocation7 + $0x24] sm:$0xf] }
  0x2c   :  { %369 = vmatpush.bf16.msra.mxu1 %v3562_v11  ;;  %3916 = vmatpush.bf16.msra.mxu3 %v3562_v11  ;;  %v3527_v33 = vld [vmem:[#allocation7 + $0x28] sm:$0xf0]  ;;  %v3526_v34 = vor.u32 %v3832_v31, %v3525_v30  ;;  %v3517_v36 = vld [vmem:[#allocation7 + $0x10] sm:$0xf]  ;;  %v3830_v37 = vld [vmem:[#allocation7 + $0x14] sm:$0xf0] }
  0x2d   :  { %v3530_v35 = vor.u32 %v3831_v32, %v3527_v33  ;;  %v3829_v38 = vld [vmem:[#allocation7 + $0x14] sm:$0xf]  ;;  %v3519_v39 = vld [vmem:[#allocation7 + $0x18] sm:$0xf0]  ;;  %v3518_v40 = vor.u32 %v3830_v37, %v3517_v36  ;;  %v3509_v42 = vld [vmem:[#allocation7] sm:$0xf] }
  0x2e   :  { %v3522_v41 = vor.u32 %v3829_v38, %v3519_v39  ;;  %v3828_v43 = vld [vmem:[#allocation7 + $0x4] sm:$0xf0]  ;;  %v3827_v44 = vld [vmem:[#allocation7 + $0x4] sm:$0xf]  ;;  %v3511_v45 = vld [vmem:[#allocation7 + $0x8] sm:$0xf0] }
  0x2f   :  { %321 = vmatpush.bf16.msra.mxu0 %v3550_v16  ;;  %3909 = vmatpush.bf16.msra.mxu2 %v3550_v16  ;;  %v199_v46 = vld [vmem:[#allocation2] sm:$0xff]  ;;  %v3510_v47 = vor.u32 %v3828_v43, %v3509_v42  ;;  %v200_v48 = vld [vmem:[#allocation2 + $0x8] sm:$0xff]  ;;  %v3514_v51 = vor.u32 %v3827_v44, %v3511_v45  ;;  %v201_v54 = vld [vmem:[#allocation2 + $0x10] sm:$0xff]  ;;  %s3490_s28 = sshll.u32 %s5788_s12, 4  ;;  %s3491_s28 = int_to_ptr.hbm [resolvable:$true] %s3490_s28 }
  0x30   :  { %370 = vmatpush.bf16.msra.mxu1 %v3554_v17  ;;  %3917 = vmatpush.bf16.msra.mxu3 %v3554_v17  ;;  %v207_v49 = vld [vmem:[#allocation2 + $0x40] sm:$0xff]  ;;  %v208_v50 = vld [vmem:[#allocation2 + $0x48] sm:$0xff]  ;;  %v215_v52 = vpack.c.bf16 %v200_v48, %v199_v46  ;;  %v202_v55 = vld [vmem:[#allocation2 + $0x18] sm:$0xff] }
  0x31   :  { %v219_v53 = vpack.c.bf16 %v208_v50, %v207_v49  ;;  %v209_v56 = vld [vmem:[#allocation2 + $0x50] sm:$0xff]  ;;  %v210_v57 = vld [vmem:[#allocation2 + $0x58] sm:$0xff]  ;;  %v216_v58 = vpack.c.bf16 %v202_v55, %v201_v54  ;;  %v3848_v0 = vld [vmem:[#allocation8 + $0x28] sm:$0xff] }
  0x32   :  { %v220_v59 = vpack.c.bf16 %v210_v57, %v209_v56  ;;  %v3850_v60 = vld [vmem:[#allocation8 + $0x38] sm:$0xff]  ;;  %v3849_v62 = vld [vmem:[#allocation8 + $0x30] sm:$0xff]  ;;  %v3856_v1 = vld [vmem:[#allocation8 + $0x68] sm:$0xff] }
  0x33   :  { %322 = vmatpush.bf16.msra.mxu0 %v3542_v22  ;;  %3910 = vmatpush.bf16.msra.mxu2 %v3542_v22  ;;  %v3858_v61 = vld [vmem:[#allocation8 + $0x78] sm:$0xff]  ;;  %v3857_v63 = vld [vmem:[#allocation8 + $0x70] sm:$0xff]  ;;  %v203_v2 = vld [vmem:[#allocation2 + $0x20] sm:$0xff] }
  0x34   :  { %371 = vmatpush.bf16.msra.mxu1 %v3546_v25  ;;  %3918 = vmatpush.bf16.msra.mxu3 %v3546_v25  ;;  %v204_v3 = vld [vmem:[#allocation2 + $0x28] sm:$0xff]  ;;  %v211_v4 = vld [vmem:[#allocation2 + $0x60] sm:$0xff]  ;;  %v3846_v10 = vld [vmem:[#allocation8 + $0x18] sm:$0xff] }
  0x35   :  { %v212_v5 = vld [vmem:[#allocation2 + $0x68] sm:$0xff]  ;;  %v3847_v6 = vld [vmem:[#allocation8 + $0x20] sm:$0xff]  ;;  %v217_v8 = vpack.c.bf16 %v204_v3, %v203_v2  ;;  %v3854_v11 = vld [vmem:[#allocation8 + $0x58] sm:$0xff] }
  0x36   :  { %v3855_v7 = vld [vmem:[#allocation8 + $0x60] sm:$0xff]  ;;  %v221_v9 = vpack.c.bf16 %v212_v5, %v211_v4  ;;  %v3845_v12 = vld [vmem:[#allocation8 + $0x10] sm:$0xff]  ;;  %v3844_v14 = vld [vmem:[#allocation8 + $0x8] sm:$0xff] }
  0x37   :  { %323 = vmatpush.bf16.msra.mxu0 %v3534_v28  ;;  %3911 = vmatpush.bf16.msra.mxu2 %v3534_v28  ;;  %v3853_v13 = vld [vmem:[#allocation8 + $0x50] sm:$0xff]  ;;  %v3852_v15 = vld [vmem:[#allocation8 + $0x48] sm:$0xff]  ;;  %v206_v17 = vld [vmem:[#allocation2 + $0x38] sm:$0xff] }
  0x38   :  { %372 = vmatpush.bf16.msra.mxu1 %v3538_v29  ;;  %3919 = vmatpush.bf16.msra.mxu3 %v3538_v29  ;;  %v205_v16 = vld [vmem:[#allocation2 + $0x30] sm:$0xff]  ;;  %v214_v19 = vld [vmem:[#allocation2 + $0x78] sm:$0xff]  ;;  %v3843_v22 = vld [vmem:[#allocation8] sm:$0xff] }
  0x39   :  { %v213_v18 = vld [vmem:[#allocation2 + $0x70] sm:$0xff]  ;;  %v218_v20 = vpack.c.bf16 %v206_v17, %v205_v16  ;;  %v3851_v23 = vld [vmem:[#allocation8 + $0x40] sm:$0xff] }
  0x3a   :  { %v222_v21 = vpack.c.bf16 %v214_v19, %v213_v18 }
  0x3b   :  { %324 = vmatpush.bf16.msra.mxu0 %v3526_v34  ;;  %3912 = vmatpush.bf16.msra.mxu2 %v3526_v34 }
  0x3c   :  { %373 = vmatpush.bf16.msra.mxu1 %v3530_v35  ;;  %3920 = vmatpush.bf16.msra.mxu3 %v3530_v35 }
  0x3f   :  { %325 = vmatpush.bf16.msra.mxu0 %v3518_v40  ;;  %3913 = vmatpush.bf16.msra.mxu2 %v3518_v40 }
  0x40   :  { %374 = vmatpush.bf16.msra.mxu1 %v3522_v41  ;;  %3921 = vmatpush.bf16.msra.mxu3 %v3522_v41 }
  0x43   :  { %326 = vmatpush.bf16.msra.mxu0 %v3510_v47  ;;  %3914 = vmatpush.bf16.msra.mxu2 %v3510_v47 }
  0x44   :  { %375 = vmatpush.bf16.msra.mxu1 %v3514_v51  ;;  %3922 = vmatpush.bf16.msra.mxu3 %v3514_v51 }
  0x46   :  { %327 = vmatmul.bf16.vlgmr.msra.gmra.mxu0 %v215_v52  ;;  %347 = vmatmul.bf16.vlgmr.msra.gmra.mxu2 %v219_v53 }
  0x47   :  { %376 = vmatmul.bf16.vlgmr.msra.gmra.mxu1 %v215_v52  ;;  %396 = vmatmul.bf16.vlgmr.msra.gmra.mxu3 %v219_v53 }
  0x48   :  { %641 = vmatpush.bf16.msrb.mxu2 %v3850_v60  ;;  %690 = vmatpush.bf16.msrb.mxu3 %v3858_v61 }
  0x4c   :  { %642 = vmatpush.bf16.msrb.mxu2 %v3849_v62  ;;  %691 = vmatpush.bf16.msrb.mxu3 %v3857_v63 }
  0x50   :  { %643 = vmatpush.bf16.msrb.mxu2 %v3848_v0  ;;  %692 = vmatpush.bf16.msrb.mxu3 %v3856_v1 }
  0x54   :  { %644 = vmatpush.bf16.msrb.mxu2 %v3847_v6  ;;  %693 = vmatpush.bf16.msrb.mxu3 %v3855_v7 }
  0x56   :  { %332 = vmatmul.bf16.gmra.mxu0 %v216_v58  ;;  %352 = vmatmul.bf16.gmra.mxu2 %v220_v59 }
  0x57   :  { %381 = vmatmul.bf16.gmra.mxu1 %v216_v58  ;;  %401 = vmatmul.bf16.gmra.mxu3 %v220_v59 }
  0x58   :  { %645 = vmatpush.bf16.msrb.mxu2 %v3846_v10  ;;  %694 = vmatpush.bf16.msrb.mxu3 %v3854_v11 }
  0x5c   :  { %646 = vmatpush.bf16.msrb.mxu2 %v3845_v12  ;;  %695 = vmatpush.bf16.msrb.mxu3 %v3853_v13 }
  0x60   :  { %647 = vmatpush.bf16.msrb.mxu2 %v3844_v14  ;;  %696 = vmatpush.bf16.msrb.mxu3 %v3852_v15 }
  0x64   :  { %648 = vmatpush.bf16.msrb.mxu2 %v3843_v22  ;;  %697 = vmatpush.bf16.msrb.mxu3 %v3851_v23 }
  0x66   :  { %337 = vmatmul.bf16.gmra.mxu0 %v217_v8  ;;  %357 = vmatmul.bf16.gmra.mxu2 %v221_v9 }
  0x67   :  { %386 = vmatmul.bf16.gmra.mxu1 %v217_v8  ;;  %406 = vmatmul.bf16.gmra.mxu3 %v221_v9 }
  0x76   :  { %342 = vmatmul.bf16.gmra.mxu0 %v218_v20  ;;  %362 = vmatmul.bf16.gmra.mxu2 %v222_v21 }
  0x77   :  { %391 = vmatmul.bf16.gmra.mxu1 %v218_v20  ;;  %411 = vmatmul.bf16.gmra.mxu3 %v222_v21 }
  0xc3   :  { %v328_v24 = vpop.f32.mrf.mxu0 }
  0xc4   :  { %v377_v25 = vpop.f32.mrf.mxu1 }
  0xc5   :  { %v417_v28 = vpack.c.bf16 %v377_v25, %v328_v24 }
  0xc7   :  { %v481_v33 = vunpack.c.l.b16 %v417_v28  ;;  %v482_v34 = vunpack.c.h.b16 %v417_v28 }
  0xc9   :  { %v348_v26 = vpop.f32.mrf.mxu2 }
  0xca   :  { %v397_v27 = vpop.f32.mrf.mxu3 }
  0xcb   :  { %v4662_v29 = vpack.c.bf16 %v397_v27, %v348_v26  ;;  %v330_v30 = vpop.f32.mrf.mxu0 }
  0xcc   :  { %v379_v31 = vpop.f32.mrf.mxu1 }
  0xcd   :  { %v418_v32 = vpack.c.bf16 %v379_v31, %v330_v30 }
  0xcf   :  { %v483_v35 = vunpack.c.l.b16 %v418_v32  ;;  %v484_v36 = vunpack.c.h.b16 %v418_v32 }
  0xd1   :  { %v4664_v37 = vpop.f32.mrf.mxu2  ;;  %v4666_v38 = vpack.c.b16 %v483_v35, %v481_v33  ;;  %v4668_v39 = vpack.c.b16 %v484_v36, %v482_v34 }
  0xd2   :  { %v4670_v40 = vpop.f32.mrf.mxu3 }
  0xd3   :  { %649 = vmatmul.bf16.vlgmr.msrb.gmra.mxu2 %v4666_v38  ;;  %698 = vmatmul.bf16.vlgmr.msrb.gmra.mxu3 %v4668_v39  ;;  %v333_v41 = vpop.f32.mrf.mxu0 }
  0xd4   :  { %v382_v42 = vpop.f32.mrf.mxu1 }
  0xd5   :  { %v419_v45 = vpack.c.bf16 %v382_v42, %v333_v41 }
  0xd7   :  { %v485_v49 = vunpack.c.l.b16 %v419_v45  ;;  %v486_v50 = vunpack.c.h.b16 %v419_v45 }
  0xd9   :  { %v353_v43 = vpop.f32.mrf.mxu2 }
  0xda   :  { %v402_v44 = vpop.f32.mrf.mxu3 }
  0xdb   :  { %v335_v46 = vpop.f32.mrf.mxu0  ;;  %v427_v32 = vpack.c.bf16 %v402_v44, %v353_v43  ;;  %v497_v44 = vunpack.c.l.b16 %v4662_v29 }
  0xdc   :  { %v384_v47 = vpop.f32.mrf.mxu1 }
  0xdd   :  { %v420_v48 = vpack.c.bf16 %v384_v47, %v335_v46 }
  0xdf   :  { %v487_v51 = vunpack.c.l.b16 %v420_v48  ;;  %v488_v52 = vunpack.c.h.b16 %v420_v48  ;;  %v426_v48 = vpack.c.bf16 %v4670_v40, %v4664_v37 }
  0xe1   :  { %v355_v53 = vpop.f32.mrf.mxu2  ;;  %v4674_v54 = vpack.c.b16 %v487_v51, %v485_v49  ;;  %v4676_v55 = vpack.c.b16 %v488_v52, %v486_v50  ;;  %v501_v49 = vunpack.c.l.b16 %v427_v32  ;;  %v502_v50 = vunpack.c.h.b16 %v427_v32 }
  0xe2   :  { %v404_v56 = vpop.f32.mrf.mxu3 }
  0xe3   :  { %654 = vmatmul.bf16.gmra.mxu2 %v4674_v54  ;;  %703 = vmatmul.bf16.gmra.mxu3 %v4676_v55  ;;  %v338_v57 = vpop.f32.mrf.mxu0  ;;  %v428_v33 = vpack.c.bf16 %v404_v56, %v355_v53  ;;  %v498_v53 = vunpack.c.h.b16 %v4662_v29  ;;  %v5790_v29 = vmov 3  }
  0xe4   :  { %v387_v58 = vpop.f32.mrf.mxu1  ;;  %3939 = vset.pattern.permute.xlu1 %v5790_v29 }
  0xe5   :  { %v421_v61 = vpack.c.bf16 %v387_v58, %v338_v57  ;;  %v503_v57 = vunpack.c.l.b16 %v428_v33  ;;  %v504_v43 = vunpack.c.h.b16 %v428_v33 }
  0xe7   :  { %v489_v1 = vunpack.c.l.b16 %v421_v61  ;;  %v490_v2 = vunpack.c.h.b16 %v421_v61  ;;  %v523_v56 = vpack.c.b16 %v503_v57, %v501_v49  ;;  %v524_v58 = vpack.c.b16 %v504_v43, %v502_v50 }
  0xe8   :  { %v4547_v61 = vmov 2  }
  0xe9   :  { %v358_v59 = vpop.f32.mrf.mxu2  ;;  %3938 = vset.pattern.permute.xlu0 %v4547_v61  ;;  %3940 = vset.pattern.permute.xlu2 %v4547_v61 }
  0xea   :  { %v407_v60 = vpop.f32.mrf.mxu3 }
  0xeb   :  { %v340_v62 = vpop.f32.mrf.mxu0  ;;  %v429_v22 = vpack.c.bf16 %v407_v60, %v358_v59  ;;  %v499_v59 = vunpack.c.l.b16 %v426_v48  ;;  %v500_v60 = vunpack.c.h.b16 %v426_v48 }
  0xec   :  { %v389_v63 = vpop.f32.mrf.mxu1 }
  0xed   :  { %v422_v0 = vpack.c.bf16 %v389_v63, %v340_v62  ;;  %v505_v34 = vunpack.c.l.b16 %v429_v22  ;;  %v506_v35 = vunpack.c.h.b16 %v429_v22  ;;  %v521_v37 = vpack.c.b16 %v499_v59, %v497_v44 }
  0xee   :  { %v522_v40 = vpack.c.b16 %v500_v60, %v498_v53 }
  0xef   :  { %v491_v3 = vunpack.c.l.b16 %v422_v0  ;;  %v492_v4 = vunpack.c.h.b16 %v422_v0 }
  0xf1   :  { %v360_v5 = vpop.f32.mrf.mxu2  ;;  %v4680_v6 = vpack.c.b16 %v491_v3, %v489_v1  ;;  %v4682_v7 = vpack.c.b16 %v492_v4, %v490_v2 }
  0xf2   :  { %v409_v8 = vpop.f32.mrf.mxu3 }
  0xf3   :  { %659 = vmatmul.bf16.gmra.mxu2 %v4680_v6  ;;  %708 = vmatmul.bf16.gmra.mxu3 %v4682_v7  ;;  %v343_v9 = vpop.f32.mrf.mxu0  ;;  %v430_v23 = vpack.c.bf16 %v409_v8, %v360_v5 }
  0xf4   :  { %v392_v10 = vpop.f32.mrf.mxu1 }
  0xf5   :  { %v423_v12 = vpack.c.bf16 %v392_v10, %v343_v9  ;;  %v507_v42 = vunpack.c.l.b16 %v430_v23  ;;  %v508_v45 = vunpack.c.h.b16 %v430_v23 }
  0xf7   :  { %v493_v17 = vunpack.c.l.b16 %v423_v12  ;;  %v494_v18 = vunpack.c.h.b16 %v423_v12  ;;  %v525_v51 = vpack.c.b16 %v507_v42, %v505_v34  ;;  %v526_v52 = vpack.c.b16 %v508_v45, %v506_v35 }
  0xf9   :  { %v363_v11 = vpop.f32.mrf.mxu2 }
  0xfa   :  { %v412_v13 = vpop.f32.mrf.mxu3 }
  0xfb   :  { %v345_v14 = vpop.f32.mrf.mxu0  ;;  %v431_v19 = vpack.c.bf16 %v412_v13, %v363_v11 }
  0xfc   :  { %v394_v15 = vpop.f32.mrf.mxu1 }
  0xfd   :  { %v424_v16 = vpack.c.bf16 %v394_v15, %v345_v14  ;;  %v509_v28 = vunpack.c.l.b16 %v431_v19  ;;  %v510_v30 = vunpack.c.h.b16 %v431_v19 }
  0xff   :  { %v495_v20 = vunpack.c.l.b16 %v424_v16  ;;  %v496_v21 = vunpack.c.h.b16 %v424_v16 }
 0x101   :  { %v365_v24 = vpop.f32.mrf.mxu2  ;;  %v519_v25 = vpack.c.b16 %v495_v20, %v493_v17  ;;  %v520_v26 = vpack.c.b16 %v496_v21, %v494_v18 }
 0x102   :  { %v414_v27 = vpop.f32.mrf.mxu3 }
 0x103   :  { %v432_v31 = vpack.c.bf16 %v414_v27, %v365_v24  ;;  %664 = vmatmul.bf16.gmra.mxu2 %v519_v25  ;;  %713 = vmatmul.bf16.gmra.mxu3 %v520_v26 }
 0x105   :  { %v511_v36 = vunpack.c.l.b16 %v432_v31  ;;  %v512_v41 = vunpack.c.h.b16 %v432_v31 }
 0x107   :  { %v527_v46 = vpack.c.b16 %v511_v36, %v509_v28  ;;  %v528_v47 = vpack.c.b16 %v512_v41, %v510_v30 }
 0x109   :  { %1052 = vmatpush.bf16.msrb.mxu0 %v527_v46  ;;  %1414 = vmatpush.bf16.msrb.mxu1 %v528_v47 }
 0x10d   :  { %1053 = vmatpush.bf16.msrb.mxu0 %v525_v51  ;;  %1415 = vmatpush.bf16.msrb.mxu1 %v526_v52 }
 0x111   :  { %1054 = vmatpush.bf16.msrb.mxu0 %v523_v56  ;;  %1416 = vmatpush.bf16.msrb.mxu1 %v524_v58 }
 0x113   :  { %669 = vmatmul.bf16.gmra.mxu2 %v521_v37  ;;  %718 = vmatmul.bf16.gmra.mxu3 %v522_v40 }
 0x115   :  { %1055 = vmatpush.bf16.msrb.mxu0 %v521_v37  ;;  %1417 = vmatpush.bf16.msrb.mxu1 %v522_v40  ;;  %v4764_v37 = vld [vmem:[#allocation5 + $0x8] sm:$0xff]  ;;  %v4766_v40 = vld [vmem:[#allocation5] sm:$0xff] }
 0x116   :  { %vm184_vm0 = vcmp.gt.f32.partialorder %v4764_v37, 0.0  ;;  %vm183_vm1 = vcmp.gt.f32.partialorder %v4766_v40, 0.0 }
 0x119   :  { %1056 = vmatpush.bf16.msrb.mxu0 %v519_v25  ;;  %1418 = vmatpush.bf16.msrb.mxu1 %v520_v26 }
 0x11d   :  { %1057 = vmatpush.bf16.msrb.mxu0 %v4680_v6  ;;  %1419 = vmatpush.bf16.msrb.mxu1 %v4682_v7 }
 0x121   :  { %1058 = vmatpush.bf16.msrb.mxu0 %v4674_v54  ;;  %1420 = vmatpush.bf16.msrb.mxu1 %v4676_v55 }
 0x123   :  { %674 = vmatmul.bf16.gmra.mxu2 %v523_v56  ;;  %723 = vmatmul.bf16.gmra.mxu3 %v524_v58 }
 0x125   :  { %1059 = vmatpush.bf16.msrb.mxu0 %v4666_v38  ;;  %1421 = vmatpush.bf16.msrb.mxu1 %v4668_v39 }
 0x133   :  { %679 = vmatmul.bf16.gmra.mxu2 %v525_v51  ;;  %728 = vmatmul.bf16.gmra.mxu3 %v526_v52 }
 0x143   :  { %684 = vmatmul.bf16.gmra.mxu2 %v527_v46  ;;  %733 = vmatmul.bf16.gmra.mxu3 %v528_v47 }
 0x156   :  { %v650_v54 = vpop.f32.mrf.mxu2  ;;  %v699_v55 = vpop.f32.mrf.mxu3 }
 0x157   :  { %v4699_v62 = vadd.f32 %v699_v55, %v650_v54 }
 0x159   :  { %1150 = vperm.xlu1 %3939, %v4699_v62   ;;  %773 = vperm.xlu0 %3938, %v4699_v62  }
 0x15e   :  { %v652_v38 = vpop.f32.mrf.mxu2  ;;  %v701_v39 = vpop.f32.mrf.mxu3 }
 0x15f   :  { %v4703_v63 = vadd.f32 %v701_v39, %v652_v38 }
 0x161   :  { %1154 = vperm.xlu1 %3939, %v4703_v63   ;;  %778 = vperm.xlu0 %3938, %v4703_v63  }
 0x166   :  { %v655_v0 = vpop.f32.mrf.mxu2  ;;  %v704_v1 = vpop.f32.mrf.mxu3 }
 0x167   :  { %v4707_v2 = vadd.f32 %v704_v1, %v655_v0 }
 0x169   :  { %3941 = vset.pattern.permute.xlu0 %v5790_v29  ;;  %783 = vperm.xlu2 %3940, %v4707_v2  }
 0x16a   :  { %1158 = vperm.xlu0 %3941, %v4707_v2  }
 0x16e   :  { %v657_v3 = vpop.f32.mrf.mxu2  ;;  %v706_v4 = vpop.f32.mrf.mxu3 }
 0x16f   :  { %v4712_v5 = vadd.f32 %v706_v4, %v657_v3 }
 0x171   :  { %1162 = vperm.xlu1 %3939, %v4712_v5   ;;  %788 = vperm.xlu2 %3940, %v4712_v5  }
 0x172   :  { %3944 = vset.pattern.permute.xlu0 %v4547_v61 }
 0x176   :  { %v660_v6 = vpop.f32.mrf.mxu2  ;;  %v709_v7 = vpop.f32.mrf.mxu3 }
 0x177   :  { %v4717_v8 = vadd.f32 %v709_v7, %v660_v6 }
 0x179   :  { %3942 = vset.pattern.permute.xlu1 %v4547_v61  ;;  %3953 = vset.pattern.permute.xlu2 %v5790_v29 }
 0x17a   :  { %793 = vperm.xlu1 %3942, %v4717_v8  }
 0x17e   :  { %v662_v9 = vpop.f32.mrf.mxu2  ;;  %v711_v10 = vpop.f32.mrf.mxu3 }
 0x17f   :  { %v4722_v11 = vadd.f32 %v711_v10, %v662_v9 }
 0x181   :  { %798 = vperm.xlu0 %3944, %v4722_v11  }
 0x182   :  { %3943 = vset.pattern.permute.xlu1 %v5790_v29 }
 0x183   :  { %1166 = vperm.xlu1 %3943, %v4717_v8  }
 0x186   :  { %v665_v12 = vpop.f32.mrf.mxu2  ;;  %v714_v13 = vpop.f32.mrf.mxu3 }
 0x187   :  { %v715_v14 = vadd.f32 %v714_v13, %v665_v12 }
 0x189   :  { %803 = vperm.xlu0 %3944, %v715_v14  }
 0x18b   :  { %1170 = vperm.xlu1 %3943, %v4722_v11  }
 0x18e   :  { %v667_v15 = vpop.f32.mrf.mxu2  ;;  %v716_v16 = vpop.f32.mrf.mxu3 }
 0x18f   :  { %v717_v17 = vadd.f32 %v716_v16, %v667_v15  ;;  %v4796_v15 = vld [vmem:[#allocation5 + $0x10] sm:$0xff] }
 0x190   :  { %vm185_vm8 = vcmp.gt.f32.partialorder %v4796_v15, 0.0 }
 0x191   :  { %3945 = vset.pattern.permute.xlu0 %v5790_v29 }
 0x192   :  { %1174 = vperm.xlu0 %3945, %v715_v14  }
 0x193   :  { %3946 = vset.pattern.permute.xlu1 %v4547_v61 }
 0x194   :  { %808 = vperm.xlu1 %3946, %v717_v17  }
 0x196   :  { %v670_v18 = vpop.f32.mrf.mxu2  ;;  %v719_v19 = vpop.f32.mrf.mxu3 }
 0x197   :  { %v720_v20 = vadd.f32 %v719_v19, %v670_v18 }
 0x19a   :  { %3948 = vset.pattern.permute.xlu0 %v4547_v61 }
 0x19b   :  { %813 = vperm.xlu0 %3948, %v720_v20  }
 0x19c   :  { %3947 = vset.pattern.permute.xlu1 %v5790_v29 }
 0x19d   :  { %1178 = vperm.xlu1 %3947, %v717_v17  }
 0x19e   :  { %v672_v21 = vpop.f32.mrf.mxu2  ;;  %v721_v22 = vpop.f32.mrf.mxu3 }
 0x19f   :  { %v722_v26 = vadd.f32 %v721_v22, %v672_v21 }
 0x1a5   :  { %1182 = vperm.xlu1 %3947, %v720_v20  }
 0x1a6   :  { %v675_v23 = vpop.f32.mrf.mxu2  ;;  %v724_v24 = vpop.f32.mrf.mxu3 }
 0x1a7   :  { %v725_v25 = vadd.f32 %v724_v24, %v675_v23 }
 0x1a9   :  { %823 = vperm.xlu0 %3948, %v725_v25  }
 0x1ad   :  { %3949 = vset.pattern.permute.xlu1 %v4547_v61 }
 0x1ae   :  { %v726_v27 = vpop.f32.mrf.mxu3  ;;  %818 = vperm.xlu1 %3949, %v722_v26   ;;  %v677_v28 = vpop.f32.mrf.mxu2 }
 0x1af   :  { %v727_v30 = vadd.f32 %v726_v27, %v677_v28  ;;  %v4814_v28 = vld [vmem:[#allocation5 + $0x20] sm:$0xff] }
 0x1b0   :  { %vm187_vm12 = vcmp.gt.f32.partialorder %v4814_v28, 0.0 }
 0x1b1   :  { %3951 = vset.pattern.permute.xlu0 %v5790_v29  ;;  %1194 = vperm.xlu2 %3953, %v727_v30  }
 0x1b2   :  { %1190 = vperm.xlu0 %3951, %v725_v25  }
 0x1b6   :  { %v729_v31 = vpop.f32.mrf.mxu3  ;;  %3950 = vset.pattern.permute.xlu1 %v5790_v29  ;;  %v680_v32 = vpop.f32.mrf.mxu2 }
 0x1b7   :  { %v730_v33 = vadd.f32 %v729_v31, %v680_v32  ;;  %1186 = vperm.xlu1 %3950, %v722_v26  }
 0x1b9   :  { %1198 = vperm.xlu2 %3953, %v730_v33  }
 0x1ba   :  { %3954 = vset.pattern.permute.xlu0 %v4547_v61 }
 0x1bb   :  { %833 = vperm.xlu0 %3954, %v730_v33  }
 0x1be   :  { %v682_v34 = vpop.f32.mrf.mxu2  ;;  %v731_v35 = vpop.f32.mrf.mxu3 }
 0x1bf   :  { %3952 = vset.pattern.permute.xlu1 %v4547_v61  ;;  %v732_v36 = vadd.f32 %v731_v35, %v682_v34 }
 0x1c0   :  { %828 = vperm.xlu1 %3952, %v727_v30  }
 0x1c3   :  { %3958 = vset.pattern.permute.xlu0 %v5790_v29  ;;  %v784_v48 = vpop.permute.xlu2 %783 }
 0x1c6   :  { %v734_v41 = vpop.f32.mrf.mxu3  ;;  %v685_v42 = vpop.f32.mrf.mxu2 }
 0x1c7   :  { %v4739_v45 = vadd.f32 %v734_v41, %v685_v42  ;;  %v4829_v42 = vld [vmem:[#allocation5 + $0x28] sm:$0xff] }
 0x1c8   :  { %838 = vperm.xlu1 %3952, %v732_v36   ;;  %vm188_vm15 = vcmp.gt.f32.partialorder %v4829_v42, 0.0 }
 0x1cb   :  { %v1151_v50 = vpop.permute.xlu1 %1150  ;;  %v789_v51 = vpop.permute.xlu2 %788 }
 0x1cc   :  { %v774_v44 = vpop.permute.xlu0 %773 }
 0x1ce   :  { %v736_v46 = vpop.f32.mrf.mxu3  ;;  %v687_v47 = vpop.f32.mrf.mxu2 }
 0x1cf   :  { %v4751_v49 = vadd.f32 %v736_v46, %v687_v47 }
 0x1d0   :  { %3955 = vset.pattern.permute.xlu1 %v5790_v29 }
 0x1d1   :  { %1202 = vperm.xlu1 %3955, %v732_v36  }
 0x1d3   :  { %v1155_v52 = vpop.permute.xlu1 %1154 }
 0x1d4   :  { %v779_v54 = vpop.permute.xlu0 %778 }
 0x1d9   :  { %3956 = vset.pattern.permute.xlu1 %v4547_v61 }
 0x1da   :  { %843 = vperm.xlu1 %3956, %v4739_v45  }
 0x1dc   :  { %v1159_v19 = vpop.permute.xlu0 %1158 }
 0x1df   :  { %739 = vxpose.xlu2.b32.start [1/16] (narrow) %v4699_v62, 8 }
 0x1e2   :  { %3959 = vset.pattern.permute.xlu1 %v5790_v29 }
 0x1e3   :  { %v4756_v43 = vpop.permute.xlu1 %1162 }
 0x1e7   :  { %740 = vxpose.xlu2.b32.cont [2/16] (narrow) %v4703_v63, 8 }
 0x1ec   :  { %v794_v56 = vpop.permute.xlu1 %793 }
 0x1ef   :  { %741 = vxpose.xlu2.b32.cont [3/16] (narrow) %v4707_v2, 8 }
 0x1f3   :  { %v799_v31 = vpop.permute.xlu0 %798 }
 0x1f5   :  { %v1167_v38 = vpop.permute.xlu1 %1166 }
 0x1f7   :  { %742 = vxpose.xlu2.b32.cont [4/16] (narrow) %v4712_v5, 8 }
 0x1fd   :  { %v1171_v12 = vpop.permute.xlu1 %1170 }
 0x1ff   :  { %743 = vxpose.xlu2.b32.cont [5/16] (narrow) %v4717_v8, 8 }
 0x206   :  { %v809_v24 = vpop.permute.xlu1 %808 }
 0x207   :  { %744 = vxpose.xlu2.b32.cont [6/16] (narrow) %v4722_v11, 8 }
 0x20b   :  { %v4754_v57 = vpop.permute.xlu2 %1194 }
 0x20f   :  { %745 = vxpose.xlu2.b32.cont [7/16] (narrow) %v715_v14, 8 }
 0x213   :  { %v4758_v53 = vpop.permute.xlu2 %1198 }
 0x217   :  { %746 = vxpose.xlu2.b32.cont [8/16] (narrow) %v717_v17, 8  ;;  %v4798_v17 = vld [vmem:[#allocation5 + $0x18] sm:$0xff] }
 0x218   :  { %vm186_vm9 = vcmp.gt.f32.partialorder %v4798_v17, 0.0 }
 0x21f   :  { %747 = vxpose.xlu2.b32.cont [9/16] (narrow) %v720_v20, 8 }
 0x227   :  { %748 = vxpose.xlu2.b32.cont [10/16] (narrow) %v722_v26, 8 }
 0x22f   :  { %749 = vxpose.xlu2.b32.cont [11/16] (narrow) %v725_v25, 8 }
 0x237   :  { %750 = vxpose.xlu2.b32.cont [12/16] (narrow) %v727_v30, 8 }
 0x23f   :  { %751 = vxpose.xlu2.b32.cont [13/16] (narrow) %v730_v33, 8 }
 0x247   :  { %752 = vxpose.xlu2.b32.cont [14/16] (narrow) %v732_v36, 8 }
 0x24f   :  { %753 = vxpose.xlu2.b32.cont [15/16] (narrow) %v4739_v45, 8 }
 0x257   :  { %754 = vxpose.xlu2.b32.end [16/16] (narrow) %v4751_v49, 8 }
 0x278   :  { %v755_v58 = vpop.trf.xlu2 }
 0x279   :  { %v4760_v59 = vperm.slane %v755_v58, 0  ;;  %v4762_v60 = vperm.slane %v755_v58, 1 }
 0x27b   :  { %v853_v55 = vadd.f32 %v4760_v59, %v779_v54  ;;  %v852_v62 = vadd.f32 %v4760_v59, %v774_v44  ;;  %v1215_v39 = vadd.f32 %v4762_v60, %v1155_v52  ;;  %v1214_v63 = vadd.f32 %v4762_v60, %v1151_v50 }
 0x27c   :  { %v854_v10 = vadd.f32 %v4760_v59, %v784_v48  ;;  %v855_v11 = vadd.f32 %v4760_v59, %v789_v51  ;;  %v1216_v22 = vadd.f32 %v4762_v60, %v1159_v19  ;;  %v856_v23 = vadd.f32 %v4760_v59, %v794_v56  ;;  %v1179_v48 = vpop.permute.xlu1 %1178 }
 0x27d   :  { %vm869_vm2 = vcmp.ge.f32.partialorder %v853_v55, 0.0  ;;  %v885_v0 = vmul.f32 0.2, %v853_v55  ;;  %vm868_vm3 = vcmp.ge.f32.partialorder %v852_v62, 0.0  ;;  %v884_v1 = vmul.f32 0.2, %v852_v62 }
 0x27e   :  { %v1247_v6 = vmul.f32 0.2, %v1215_v39  ;;  %v1246_v7 = vmul.f32 0.2, %v1214_v63  ;;  %vm1231_vm4 = vcmp.ge.f32.partialorder %v1215_v39, 0.0  ;;  %vm1230_vm5 = vcmp.ge.f32.partialorder %v1214_v63, 0.0 }
 0x27f   :  { %v901_v2 = vsel %vm869_vm2, %v853_v55, %v885_v0  ;;  %v900_v3 = vsel %vm868_vm3, %v852_v62, %v884_v1  ;;  %v886_v16 = vmul.f32 0.2, %v854_v10  ;;  %v887_v18 = vmul.f32 0.2, %v855_v11  ;;  %v4844_v55 = vld [vmem:[#allocation5 + $0x38] sm:$0xff] }
 0x280   :  { %v4776_v4 = vsel %vm184_vm0, %v901_v2, -1e+30  ;;  %v4780_v5 = vsel %vm183_vm1, %v900_v3, -1e+30  ;;  %v1263_v8 = vsel %vm1231_vm4, %v1215_v39, %v1247_v6  ;;  %v1262_v9 = vsel %vm1230_vm5, %v1214_v63, %v1246_v7  ;;  %v4859_v7 = vld [vmem:[#allocation5 + $0x30] sm:$0xff] }
 0x281   :  { %934 = vmax.xlane.f32.xlu1 %v4776_v4  ;;  %932 = vmax.xlane.f32.xlu0 %v4780_v5  ;;  %v4788_v13 = vsel %vm184_vm0, %v1263_v8, -1e+30  ;;  %v4792_v14 = vsel %vm183_vm1, %v1262_v9, -1e+30  ;;  %vm870_vm6 = vcmp.ge.f32.partialorder %v854_v10, 0.0  ;;  %vm871_vm7 = vcmp.ge.f32.partialorder %v855_v11, 0.0 }
 0x282   :  { %v902_v20 = vsel %vm870_vm6, %v854_v10, %v886_v16  ;;  %v903_v21 = vsel %vm871_vm7, %v855_v11, %v887_v18  ;;  %v1248_v27 = vmul.f32 0.2, %v1216_v22  ;;  %v888_v30 = vmul.f32 0.2, %v856_v23  ;;  %v4861_v10 = vld [vmem:[#allocation5 + $0x40] sm:$0xff] }
 0x283   :  { %v4806_v25 = vsel %vm185_vm8, %v902_v20, -1e+30  ;;  %v4810_v26 = vsel %vm186_vm9, %v903_v21, -1e+30  ;;  %vm1232_vm10 = vcmp.ge.f32.partialorder %v1216_v22, 0.0  ;;  %vm872_vm11 = vcmp.ge.f32.partialorder %v856_v23, 0.0 }
 0x284   :  { %v1264_v32 = vsel %vm1232_vm10, %v1216_v22, %v1248_v27  ;;  %v904_v33 = vsel %vm872_vm11, %v856_v23, %v888_v30  ;;  %v857_v34 = vadd.f32 %v4760_v59, %v799_v31  ;;  %v1218_v35 = vadd.f32 %v4762_v60, %v1167_v38  ;;  %v804_v38 = vpop.permute.xlu0 %803  ;;  %v1183_v39 = vpop.permute.xlu1 %1182  ;;  %v4883_v30 = vld [vmem:[#allocation5 + $0x48] sm:$0xff] }
 0x285   :  { %v4821_v36 = vsel %vm185_vm8, %v1264_v32, -1e+30  ;;  %v4825_v41 = vsel %vm187_vm12, %v904_v33, -1e+30  ;;  %v1219_v52 = vadd.f32 %v4762_v60, %v1171_v12  ;;  %v859_v44 = vadd.f32 %v4760_v59, %v809_v24 }
 0x286   :  { %v889_v46 = vmul.f32 0.2, %v857_v34  ;;  %v1250_v47 = vmul.f32 0.2, %v1218_v35  ;;  %vm873_vm13 = vcmp.ge.f32.partialorder %v857_v34, 0.0  ;;  %vm1234_vm14 = vcmp.ge.f32.partialorder %v1218_v35, 0.0 }
 0x287   :  { %v1251_v54 = vmul.f32 0.2, %v1219_v52  ;;  %v891_v62 = vmul.f32 0.2, %v859_v44  ;;  %vm1235_vm2 = vcmp.ge.f32.partialorder %v1219_v52, 0.0  ;;  %vm875_vm3 = vcmp.ge.f32.partialorder %v859_v44, 0.0 }
 0x288   :  { %v905_v50 = vsel %vm873_vm13, %v857_v34, %v889_v46  ;;  %v1266_v51 = vsel %vm1234_vm14, %v1218_v35, %v1250_v47  ;;  %vm190_vm4 = vcmp.gt.f32.partialorder %v4844_v55, 0.0  ;;  %v858_v1 = vadd.f32 %v4760_v59, %v804_v38  ;;  %v4912_v38 = vld [vmem:[#allocation5 + $0x50] sm:$0xff] }
 0x289   :  { %1296 = vmax.xlane.f32.xlu1 %v4788_v13  ;;  %1294 = vmax.xlane.f32.xlu0 %v4792_v14  ;;  %v4836_v56 = vsel %vm188_vm15, %v905_v50, -1e+30  ;;  %v4840_v58 = vsel %vm187_vm12, %v1266_v51, -1e+30  ;;  %v1267_v63 = vsel %vm1235_vm2, %v1219_v52, %v1251_v54  ;;  %v907_v0 = vsel %vm875_vm3, %v859_v44, %v891_v62 }
 0x28a   :  { %v1222_v2 = vadd.f32 %v4762_v60, %v1183_v39  ;;  %v4851_v3 = vsel %vm188_vm15, %v1267_v63, -1e+30  ;;  %v4855_v6 = vsel %vm190_vm4, %v907_v0, -1e+30  ;;  %v890_v8 = vmul.f32 0.2, %v858_v1 }
 0x28b   :  { %vm874_vm5 = vcmp.ge.f32.partialorder %v858_v1, 0.0  ;;  %vm189_vm7 = vcmp.gt.f32.partialorder %v4859_v7, 0.0  ;;  %vm191_vm10 = vcmp.gt.f32.partialorder %v4861_v10, 0.0  ;;  %v1221_v16 = vadd.f32 %v4762_v60, %v1179_v48 }
 0x28c   :  { %v1254_v9 = vmul.f32 0.2, %v1222_v2  ;;  %vm1238_vm6 = vcmp.ge.f32.partialorder %v1222_v2, 0.0  ;;  %v906_v11 = vsel %vm874_vm5, %v858_v1, %v890_v8  ;;  %v819_v21 = vpop.permute.xlu1 %818  ;;  %v1217_v31 = vadd.f32 %v4762_v60, %v4756_v43  ;;  %v1175_v47 = vpop.permute.xlu0 %1174  ;;  %v4922_v8 = vld [vmem:[#allocation5 + $0x70] sm:$0xff] }
 0x28d   :  { %v4868_v18 = vsel %vm189_vm7, %v906_v11, -1e+30  ;;  %v1253_v20 = vmul.f32 0.2, %v1221_v16  ;;  %vm1237_vm11 = vcmp.ge.f32.partialorder %v1221_v16, 0.0  ;;  %v861_v23 = vadd.f32 %v4760_v59, %v819_v21 }
 0x28e   :  { %v1270_v12 = vsel %vm1238_vm6, %v1222_v2, %v1254_v9  ;;  %vm192_vm14 = vcmp.gt.f32.partialorder %v4883_v30, 0.0  ;;  %v1249_v34 = vmul.f32 0.2, %v1217_v31  ;;  %vm1233_vm2 = vcmp.ge.f32.partialorder %v1217_v31, 0.0 }
 0x28f   :  { %v4872_v19 = vsel %vm191_vm10, %v1270_v12, -1e+30  ;;  %v1269_v22 = vsel %vm1237_vm11, %v1221_v16, %v1253_v20  ;;  %v893_v27 = vmul.f32 0.2, %v861_v23  ;;  %vm877_vm13 = vcmp.ge.f32.partialorder %v861_v23, 0.0 }
 0x290   :  { %v4879_v24 = vsel %vm190_vm4, %v1269_v22, -1e+30  ;;  %v1265_v46 = vsel %vm1233_vm2, %v1217_v31, %v1249_v34  ;;  %vm5789_vm5 = vcmp.gt.f32.partialorder %v4912_v38, 0.0  ;;  %vm5792_vm11 = vcmp.gt.f32.partialorder %v4922_v8, 0.0 }
 0x291   :  { %936 = vmax.xlane.f32.xlu1 %v4806_v25  ;;  %938 = vmax.xlane.f32.xlu0 %v4810_v26  ;;  %v909_v32 = vsel %vm877_vm13, %v861_v23, %v893_v27  ;;  %v4898_v43 = vsel %vm186_vm9, %v1265_v46, -1e+30 }
 0x292   :  { %v4890_v33 = vsel %vm192_vm14, %v909_v32, -1e+30 }
 0x294   :  { %v4893_v35 = vpop.permute.xlu1 %1186  ;;  %v814_v50 = vpop.permute.xlu0 %813 }
 0x299   :  { %1298 = vmax.xlane.f32.xlu1 %v4821_v36  ;;  %940 = vmax.xlane.f32.xlu0 %v4825_v41 }
 0x29c   :  { %v829_v48 = vpop.permute.xlu1 %828  ;;  %v4904_v52 = vpop.permute.xlu0 %823 }
 0x29d   :  { %v863_v27 = vadd.f32 %v4760_v59, %v829_v48 }
 0x29f   :  { %v895_v34 = vmul.f32 0.2, %v863_v27  ;;  %vm879_vm13 = vcmp.ge.f32.partialorder %v863_v27, 0.0 }
 0x2a1   :  { %942 = vmax.xlane.f32.xlu1 %v4836_v56  ;;  %1302 = vmax.xlane.f32.xlu0 %v4840_v58  ;;  %v911_v48 = vsel %vm879_vm13, %v863_v27, %v895_v34 }
 0x2a4   :  { %v4902_v51 = vpop.permute.xlu1 %838 }
 0x2a9   :  { %1304 = vmax.xlane.f32.xlu1 %v4851_v3  ;;  %946 = vmax.xlane.f32.xlu0 %v4855_v6 }
 0x2ac   :  { %v4907_v44 = vpop.permute.xlu1 %1202 }
 0x2b1   :  { %944 = vmax.xlane.f32.xlu1 %v4868_v18  ;;  %1310 = vmax.xlane.f32.xlu0 %v4872_v19 }
 0x2b4   :  { %v844_v39 = vpop.permute.xlu1 %843 }
 0x2b5   :  { %v866_v0 = vadd.f32 %v4760_v59, %v844_v39 }
 0x2b7   :  { %v898_v2 = vmul.f32 0.2, %v866_v0  ;;  %vm882_vm6 = vcmp.ge.f32.partialorder %v866_v0, 0.0 }
 0x2b9   :  { %1308 = vmax.xlane.f32.xlu1 %v4879_v24  ;;  %3957 = vset.pattern.permute.xlu2 %v4547_v61  ;;  %v914_v9 = vsel %vm882_vm6, %v866_v0, %v898_v2 }
 0x2ba   :  { %v4929_v21 = vsel %vm5792_vm11, %v914_v9, -1e+30 }
 0x2c1   :  { %950 = vmax.xlane.f32.xlu1 %v4890_v33 }
 0x2c5   :  { %1206 = vperm.xlu0 %3958, %v4739_v45   ;;  %v1191_v45 = vpop.permute.xlu0 %1190 }
 0x2c6   :  { %v1224_v54 = vadd.f32 %v4762_v60, %v1191_v45  ;;  %v1220_v45 = vadd.f32 %v4762_v60, %v1175_v47 }
 0x2c8   :  { %1300 = vmax.xlane.f32.xlu2 %v4898_v43  ;;  %v1256_v62 = vmul.f32 0.2, %v1224_v54  ;;  %vm1240_vm3 = vcmp.ge.f32.partialorder %v1224_v54, 0.0 }
 0x2ca   :  { %v1272_v63 = vsel %vm1240_vm3, %v1224_v54, %v1256_v62  ;;  %vm1236_vm3 = vcmp.ge.f32.partialorder %v1220_v45, 0.0 }
 0x2cd   :  { %3960 = vset.pattern.permute.xlu0 %v4547_v61  ;;  %v834_v1 = vpop.permute.xlu0 %833 }
 0x2ce   :  { %v864_v0 = vadd.f32 %v4760_v59, %v834_v1 }
 0x2d0   :  { %vm880_vm6 = vcmp.ge.f32.partialorder %v864_v0, 0.0 }
 0x2da   :  { %1210 = vperm.xlu1 %3959, %v4751_v49  }
 0x2e0   :  { %848 = vperm.xlu2 %3957, %v4751_v49   ;;  %v4919_v49 = vsel %vm5789_vm5, %v1272_v63, -1e+30 }
 0x2e2   :  { %3962 = vset.pattern.permute.xlu1 %v4547_v61 }
 0x2e8   :  { %3961 = vset.pattern.permute.xlu2 %v5790_v29 }
 0x2ef   :  { %1314 = vmax.xlane.f32.xlu0 %v4919_v49 }
 0x2f4   :  { %v935_v11 = vpop.xlane.xlu1 %934  ;;  %v933_v12 = vpop.xlane.xlu0 %932 }
 0x2f5   :  { %v965_v16 = vsub.f32 %v4776_v4, %v935_v11  ;;  %v964_v20 = vsub.f32 %v4780_v5, %v933_v12  ;;  %v4935_v5 = vld [vmem:[#allocation5 + $0x58] sm:$0xff]  ;;  %v896_v11 = vmul.f32 0.2, %v864_v0  ;;  %v860_v12 = vadd.f32 %v4760_v59, %v814_v50 }
 0x2f6   :  { %vm194_vm2 = vcmp.gt.f32.partialorder %v4935_v5, 0.0 }
 0x2f7   :  { %v982_v22 = vmul.f32 1.442695, %v965_v16  ;;  %v980_v23 = vmul.f32 1.442695, %v964_v20  ;;  %960 = vmax.xlane.f32.xlu0 %v4929_v21  ;;  %v4948_v47 = vsel %vm194_vm2, %v911_v48, -1e+30  ;;  %v912_v50 = vsel %vm880_vm6, %v864_v0, %v896_v11 }
 0x2f8   :  { %v1223_v48 = vadd.f32 %v4762_v60, %v4893_v35 }
 0x2f9   :  { %3986 = vpow2.f32 %v982_v22  ;;  %v4954_v22 = vld [vmem:[#allocation5 + $0x60] sm:$0xff] }
 0x2fa   :  { %3988 = vpow2.f32 %v980_v23  ;;  %vm195_vm13 = vcmp.gt.f32.partialorder %v4954_v22, 0.0 }
 0x2fc   :  { %v1297_v31 = vpop.xlane.xlu1 %1296  ;;  %v1295_v32 = vpop.xlane.xlu0 %1294 }
 0x2fd   :  { %v1327_v46 = vsub.f32 %v4788_v13, %v1297_v31  ;;  %v1326_v4 = vsub.f32 %v4792_v14, %v1295_v32  ;;  %v1252_v14 = vmul.f32 0.2, %v1220_v45 }
 0x2ff   :  { %v4938_v54 = vpop.eup %3986  ;;  %v1344_v62 = vmul.f32 1.442695, %v1327_v46  ;;  %v1342_v39 = vmul.f32 1.442695, %v1326_v4  ;;  %v1268_v20 = vsel %vm1236_vm3, %v1220_v45, %v1252_v14  ;;  %v892_v46 = vmul.f32 0.2, %v860_v12 }
 0x300   :  { %v4940_v63 = vpop.eup %3988  ;;  %v4962_v34 = vsel %vm189_vm7, %v1268_v20, -1e+30  ;;  %vm876_vm3 = vcmp.ge.f32.partialorder %v860_v12, 0.0  ;;  %v4972_v4 = vsel %vm195_vm13, %v912_v50, -1e+30 }
 0x301   :  { %3990 = vpow2.f32 %v1344_v62  ;;  %v1044_v13 = vpack.c.bf16 %v4938_v54, %v4940_v63 }
 0x302   :  { %3992 = vpow2.f32 %v1342_v39  ;;  %v908_v39 = vsel %vm876_vm3, %v860_v12, %v892_v46  ;;  %v1255_v12 = vmul.f32 0.2, %v1223_v48  ;;  %vm1239_vm3 = vcmp.ge.f32.partialorder %v1223_v48, 0.0 }
 0x303   :  { %1060 = vmatmul.bf16.vlgmr.msrb.gmra.mxu0 %v1044_v13 }
 0x304   :  { %954 = vmax.xlane.f32.xlu1 %v4948_v47  ;;  %v937_v2 = vpop.xlane.xlu1 %936  ;;  %v939_v9 = vpop.xlane.xlu0 %938 }
 0x305   :  { %v966_v1 = vsub.f32 %v4806_v25, %v937_v2  ;;  %v967_v16 = vsub.f32 %v4810_v26, %v939_v9  ;;  %v1226_v25 = vadd.f32 %v4762_v60, %v4758_v53  ;;  %v4986_v2 = vsel %vm191_vm10, %v908_v39, -1e+30 }
 0x307   :  { %v4956_v23 = vpop.eup %3990  ;;  %v984_v27 = vmul.f32 1.442695, %v966_v1  ;;  %v986_v31 = vmul.f32 1.442695, %v967_v16  ;;  %v1258_v53 = vmul.f32 0.2, %v1226_v25 }
 0x308   :  { %v4958_v32 = vpop.eup %3992  ;;  %vm1242_vm6 = vcmp.ge.f32.partialorder %v1226_v25, 0.0 }
 0x309   :  { %3994 = vpow2.f32 %v984_v27  ;;  %1306 = vmax.xlane.f32.xlu2 %v4962_v34  ;;  %v1406_v26 = vpack.c.bf16 %v4956_v23, %v4958_v32  ;;  %v1274_v9 = vsel %vm1242_vm6, %v1226_v25, %v1258_v53  ;;  %v1271_v27 = vsel %vm1239_vm3, %v1223_v48, %v1255_v12 }
 0x30a   :  { %3996 = vpow2.f32 %v986_v31  ;;  %v4993_v35 = vsel %vm195_vm13, %v1274_v9, -1e+30  ;;  %v862_v31 = vadd.f32 %v4760_v59, %v4904_v52  ;;  %v5003_v25 = vsel %vm192_vm14, %v1271_v27, -1e+30 }
 0x30b   :  { %1422 = vmatmul.bf16.vlgmr.msrb.gmra.mxu1 %v1406_v26 }
 0x30c   :  { %956 = vmax.xlane.f32.xlu1 %v4972_v4  ;;  %v4975_v45 = vpop.xlane.xlu1 %1298  ;;  %v941_v62 = vpop.xlane.xlu0 %940  ;;  %v894_v26 = vmul.f32 0.2, %v862_v31  ;;  %vm878_vm6 = vcmp.ge.f32.partialorder %v862_v31, 0.0 }
 0x30d   :  { %v968_v14 = vsub.f32 %v4825_v41, %v941_v62 }
 0x30e   :  { %v910_v53 = vsel %vm878_vm6, %v862_v31, %v894_v26  ;;  %v1227_v26 = vadd.f32 %v4762_v60, %v4907_v44  ;;  %v1328_v44 = vsub.f32 %v4821_v36, %v4975_v45 }
 0x30f   :  { %v4979_v0 = vpop.eup %3994  ;;  %v988_v1 = vmul.f32 1.442695, %v968_v14  ;;  %v5017_v14 = vsel %vm5789_vm5, %v910_v53, -1e+30 }
 0x310   :  { %v4981_v13 = vpop.eup %3996 }
 0x311   :  { %948 = vmax.xlane.f32.xlu2 %v4986_v2  ;;  %v1045_v11 = vpack.c.bf16 %v4981_v13, %v4979_v0  ;;  %3998 = vpow2.f32 %v988_v1 }
 0x313   :  { %1065 = vmatmul.bf16.gmra.mxu0 %v1045_v11 }
 0x314   :  { %1318 = vmax.xlane.f32.xlu1 %v4993_v35  ;;  %v943_v41 = vpop.xlane.xlu1 %942  ;;  %v4996_v16 = vpop.xlane.xlu0 %1302 }
 0x315   :  { %v969_v20 = vsub.f32 %v4836_v56, %v943_v41  ;;  %v1225_v56 = vadd.f32 %v4762_v60, %v4754_v57 }
 0x317   :  { %v990_v50 = vmul.f32 1.442695, %v969_v20  ;;  %v5010_v39 = vpop.eup %3998  ;;  %v1257_v11 = vmul.f32 0.2, %v1225_v56  ;;  %vm1241_vm3 = vcmp.ge.f32.partialorder %v1225_v56, 0.0 }
 0x319   :  { %4000 = vpow2.f32 %v990_v50  ;;  %1312 = vmax.xlane.f32.xlu2 %v5003_v25  ;;  %v1273_v41 = vsel %vm1241_vm3, %v1225_v56, %v1257_v11  ;;  %v5030_v50 = vld [vmem:[#allocation5 + $0x68] sm:$0xff]  ;;  %vm1243_vm3 = vcmp.ge.f32.partialorder %v1227_v26, 0.0 }
 0x31a   :  { %v5027_v27 = vsel %vm194_vm2, %v1273_v41, -1e+30  ;;  %vm5794_vm5 = vcmp.gt.f32.partialorder %v5030_v50, 0.0 }
 0x31c   :  { %v5006_v46 = vpop.xlane.xlu1 %1304  ;;  %v947_v62 = vpop.xlane.xlu0 %946 }
 0x31d   :  { %v971_v48 = vsub.f32 %v4855_v6, %v947_v62  ;;  %v865_v6 = vadd.f32 %v4760_v59, %v4902_v51 }
 0x31f   :  { %v5012_v52 = vpop.eup %4000  ;;  %v994_v12 = vmul.f32 1.442695, %v971_v48  ;;  %v897_v31 = vmul.f32 0.2, %v865_v6  ;;  %vm881_vm6 = vcmp.ge.f32.partialorder %v865_v6, 0.0 }
 0x320   :  { %v1046_v9 = vpack.c.bf16 %v5012_v52, %v5010_v39 }
 0x321   :  { %952 = vmax.xlane.f32.xlu2 %v5017_v14  ;;  %4002 = vpow2.f32 %v994_v12 }
 0x323   :  { %1070 = vmatmul.bf16.gmra.mxu0 %v1046_v9  ;;  %v1259_v9 = vmul.f32 0.2, %v1227_v26 }
 0x324   :  { %v945_v57 = vpop.xlane.xlu1 %944  ;;  %v5039_v53 = vpop.xlane.xlu0 %1310 }
 0x325   :  { %v970_v1 = vsub.f32 %v4868_v18, %v945_v57  ;;  %v913_v18 = vsel %vm881_vm6, %v865_v6, %v897_v31  ;;  %v1275_v11 = vsel %vm1243_vm3, %v1227_v26, %v1259_v9  ;;  %v5064_v9 = vld [vmem:[#allocation5 + $0x78] sm:$0xff] }
 0x326   :  { %v5043_v56 = vsel %vm5794_vm5, %v913_v18, -1e+30  ;;  %vm5793_vm3 = vcmp.gt.f32.partialorder %v5064_v9, 0.0 }
 0x327   :  { %v992_v20 = vmul.f32 1.442695, %v970_v1  ;;  %v5035_v51 = vpop.eup %4002  ;;  %v5053_v1 = vsel %vm5794_vm5, %v1275_v11, -1e+30 }
 0x329   :  { %4004 = vpow2.f32 %v992_v20  ;;  %1316 = vmax.xlane.f32.xlu2 %v5027_v27  ;;  %v1346_v20 = vmul.f32 1.442695, %v1328_v44 }
 0x32b   :  { %4006 = vpow2.f32 %v1346_v20  ;;  %v1330_v20 = vsub.f32 %v4840_v58, %v4996_v16  ;;  %v3693_v16 = vld [vmem:[#allocation10 + $0x70] sm:$0xf] }
 0x32c   :  { %v5056_v41 = vpop.xlane.xlu1 %1308 }
 0x32f   :  { %v5037_v62 = vpop.eup %4004 }
 0x330   :  { %v1047_v48 = vpack.c.bf16 %v5035_v51, %v5037_v62 }
 0x331   :  { %958 = vmax.xlane.f32.xlu2 %v5043_v56 }
 0x333   :  { %1075 = vmatmul.bf16.gmra.mxu0 %v1047_v48 }
 0x334   :  { %v5066_v11 = vpop.xlane.xlu1 %950 }
 0x337   :  { %v1207_v12 = vpop.permute.xlu0 %1206 }
 0x338   :  { %v1228_v57 = vadd.f32 %v4762_v60, %v1207_v12  ;;  %v4007_v12 = vpop.eup %4006 }
 0x339   :  { %1320 = vmax.xlane.f32.xlu2 %v5053_v1 }
 0x33a   :  { %vm1244_vm6 = vcmp.ge.f32.partialorder %v1228_v57, 0.0  ;;  %v1260_v6 = vmul.f32 0.2, %v1228_v57 }
 0x33b   :  { %v1301_v31 = vpop.xlane.xlu2 %1300 }
 0x33c   :  { %v1329_v18 = vsub.f32 %v4898_v43, %v1301_v31  ;;  %v1276_v26 = vsel %vm1244_vm6, %v1228_v57, %v1260_v6  ;;  %v1331_v43 = vsub.f32 %v4851_v3, %v5006_v46  ;;  %v1350_v3 = vmul.f32 1.442695, %v1330_v20 }
 0x33d   :  { %v5061_v36 = vsel %vm5792_vm11, %v1276_v26, -1e+30 }
 0x33e   :  { %v1348_v48 = vmul.f32 1.442695, %v1329_v18  ;;  %v1352_v18 = vmul.f32 1.442695, %v1331_v43 }
 0x340   :  { %4008 = vpow2.f32 %v1348_v48 }
 0x341   :  { %1322 = vmax.xlane.f32.xlu2 %v5061_v36  ;;  %4010 = vpow2.f32 %v1352_v18  ;;  %v3871_v18 = vld [vmem:[#allocation10 + $0x64] sm:$0xf] }
 0x342   :  { %4012 = vpow2.f32 %v1350_v3 }
 0x343   :  { %v849_v45 = vpop.permute.xlu2 %848 }
 0x344   :  { %v867_v44 = vadd.f32 %v4760_v59, %v849_v45  ;;  %v3874_v45 = vld [vmem:[#allocation10 + $0x74] sm:$0xf0] }
 0x346   :  { %v4009_v29 = vpop.eup %4008  ;;  %vm883_vm6 = vcmp.ge.f32.partialorder %v867_v44, 0.0  ;;  %v899_v57 = vmul.f32 0.2, %v867_v44 }
 0x347   :  { %v1407_v6 = vpack.c.bf16 %v4009_v29, %v4007_v12  ;;  %v4011_v43 = vpop.eup %4010 }
 0x348   :  { %v915_v31 = vsel %vm883_vm6, %v867_v44, %v899_v57  ;;  %v3873_v44 = vld [vmem:[#allocation10 + $0x74] sm:$0xf]  ;;  %v3695_v57 = vld [vmem:[#allocation10 + $0x78] sm:$0xf0]  ;;  %v4013_v20 = vpop.eup %4012 }
 0x349   :  { %1427 = vmatmul.bf16.gmra.mxu1 %v1407_v6  ;;  %1014 = vadd.xlane.f32.xlu2 %v4938_v54  ;;  %v5077_v59 = vsel %vm5793_vm3, %v915_v31, -1e+30  ;;  %v3698_v6 = vor.u32 %v3873_v44, %v3695_v57  ;;  %v1408_v31 = vpack.c.bf16 %v4011_v43, %v4013_v20  ;;  %v973_v44 = vsub.f32 %v4890_v33, %v5066_v11  ;;  %v3669_v33 = vld [vmem:[#allocation10 + $0x40] sm:$0xf]  ;;  %v3868_v11 = vld [vmem:[#allocation10 + $0x44] sm:$0xf0] }
 0x34a   :  { %962 = vmax.xlane.f32.xlu1 %v5077_v59 }
 0x34b   :  { %1748 = vmatpush.bf16.msra.mxu3 %v3698_v6  ;;  %v998_v6 = vmul.f32 1.442695, %v973_v44 }
 0x34c   :  { %v1211_v46 = vpop.permute.xlu1 %1210 }
 0x34d   :  { %v1229_v26 = vadd.f32 %v4762_v60, %v1211_v46  ;;  %v3694_v60 = vor.u32 %v3874_v45, %v3693_v16  ;;  %v3687_v46 = vld [vmem:[#allocation10 + $0x68] sm:$0xf0] }
 0x34f   :  { %vm1245_vm11 = vcmp.ge.f32.partialorder %v1229_v26, 0.0  ;;  %v1261_v48 = vmul.f32 0.2, %v1229_v26  ;;  %1699 = vmatpush.bf16.msra.mxu2 %v3694_v60 }
 0x351   :  { %1016 = vadd.xlane.f32.xlu2 %v4979_v0  ;;  %v1277_v58 = vsel %vm1245_vm11, %v1229_v26, %v1261_v48  ;;  %v3872_v0 = vld [vmem:[#allocation10 + $0x64] sm:$0xf0]  ;;  %v3677_v26 = vld [vmem:[#allocation10 + $0x50] sm:$0xf]  ;;  %v3870_v48 = vld [vmem:[#allocation10 + $0x54] sm:$0xf0] }
 0x352   :  { %1012 = vadd.xlane.f32.xlu1 %v4940_v63  ;;  %v5085_v54 = vsel %vm5793_vm3, %v1277_v58, -1e+30  ;;  %v3685_v63 = vld [vmem:[#allocation10 + $0x60] sm:$0xf]  ;;  %v3869_v58 = vld [vmem:[#allocation10 + $0x54] sm:$0xf] }
 0x353   :  { %1324 = vmax.xlane.f32.xlu0 %v5085_v54  ;;  %v3686_v3 = vor.u32 %v3872_v0, %v3685_v63 }
 0x355   :  { %1700 = vmatpush.bf16.msra.mxu2 %v3686_v3  ;;  %v3867_v3 = vld [vmem:[#allocation10 + $0x44] sm:$0xf] }
 0x359   :  { %1432 = vmatmul.bf16.gmra.mxu1 %v1408_v31  ;;  %1380 = vadd.xlane.f32.xlu2 %v4009_v29  ;;  %v1333_v29 = vsub.f32 %v4879_v24, %v5056_v41  ;;  %v3678_v24 = vor.u32 %v3870_v48, %v3677_v26 }
 0x35a   :  { %1376 = vadd.xlane.f32.xlu1 %v4956_v23  ;;  %v3690_v23 = vor.u32 %v3871_v18, %v3687_v46  ;;  %v3670_v46 = vor.u32 %v3868_v11, %v3669_v33 }
 0x35b   :  { %1374 = vadd.xlane.f32.xlu0 %v4958_v32  ;;  %v1356_v32 = vmul.f32 1.442695, %v1333_v29  ;;  %1701 = vmatpush.bf16.msra.mxu2 %v3678_v24  ;;  %v3671_v29 = vld [vmem:[#allocation10 + $0x48] sm:$0xf0] }
 0x35c   :  { %1749 = vmatpush.bf16.msra.mxu3 %v3690_v23 }
 0x35d   :  { %4014 = vpow2.f32 %v1356_v32 }
 0x35f   :  { %1702 = vmatpush.bf16.msra.mxu2 %v3670_v46 }
 0x361   :  { %1382 = vadd.xlane.f32.xlu2 %v4013_v20 }
 0x362   :  { %1378 = vadd.xlane.f32.xlu1 %v4007_v12 }
 0x363   :  { %1018 = vadd.xlane.f32.xlu0 %v4981_v13  ;;  %v1334_v13 = vsub.f32 %v4872_v19, %v5039_v53  ;;  %v4015_v12 = vpop.eup %4014 }
 0x369   :  { %1026 = vadd.xlane.f32.xlu2 %v5035_v51  ;;  %v1358_v51 = vmul.f32 1.442695, %v1334_v13 }
 0x36a   :  { %1022 = vadd.xlane.f32.xlu1 %v5012_v52 }
 0x36b   :  { %1020 = vadd.xlane.f32.xlu0 %v5010_v39  ;;  %v3679_v39 = vld [vmem:[#allocation10 + $0x58] sm:$0xf0]  ;;  %4016 = vpow2.f32 %v1358_v51 }
 0x36c   :  { %v3682_v16 = vor.u32 %v3869_v58, %v3679_v39 }
 0x36e   :  { %1750 = vmatpush.bf16.msra.mxu3 %v3682_v16 }
 0x371   :  { %v4017_v60 = vpop.eup %4016 }
 0x372   :  { %1024 = vadd.xlane.f32.xlu1 %v5037_v62 }
 0x373   :  { %1384 = vadd.xlane.f32.xlu0 %v4011_v43 }
 0x377   :  { %v955_v52 = vpop.xlane.xlu1 %954 }
 0x378   :  { %v975_v41 = vsub.f32 %v4948_v47, %v955_v52 }
 0x37a   :  { %1388 = vadd.xlane.f32.xlu1 %v4015_v12  ;;  %v1002_v19 = vmul.f32 1.442695, %v975_v41 }
 0x37c   :  { %v1307_v45 = vpop.xlane.xlu2 %1306 }
 0x37d   :  { %v1332_v62 = vsub.f32 %v4962_v34, %v1307_v45  ;;  %v3866_v45 = vld [vmem:[#allocation10 + $0x34] sm:$0xf0] }
 0x37f   :  { %v1354_v53 = vmul.f32 1.442695, %v1332_v62  ;;  %v957_v43 = vpop.xlane.xlu1 %956  ;;  %v3865_v62 = vld [vmem:[#allocation10 + $0x34] sm:$0xf] }
 0x380   :  { %v976_v57 = vsub.f32 %v4972_v4, %v957_v43  ;;  %v3674_v4 = vor.u32 %v3867_v3, %v3671_v29 }
 0x381   :  { %4018 = vpow2.f32 %v1354_v53  ;;  %v3663_v53 = vld [vmem:[#allocation10 + $0x38] sm:$0xf0] }
 0x382   :  { %1390 = vadd.xlane.f32.xlu1 %v4017_v60  ;;  %4020 = vpow2.f32 %v1002_v19  ;;  %v1004_v63 = vmul.f32 1.442695, %v976_v57  ;;  %1751 = vmatpush.bf16.msra.mxu3 %v3674_v4  ;;  %v3666_v44 = vor.u32 %v3865_v62, %v3663_v53  ;;  %v3653_v4 = vld [vmem:[#allocation10 + $0x20] sm:$0xf]  ;;  %v3645_v53 = vld [vmem:[#allocation10 + $0x10] sm:$0xf] }
 0x383   :  { %4022 = vpow2.f32 %v998_v6 }
 0x384   :  { %v949_v47 = vpop.xlane.xlu2 %948 }
 0x385   :  { %v972_v20 = vsub.f32 %v4986_v2, %v949_v47  ;;  %v1315_v2 = vpop.xlane.xlu0 %1314 }
 0x386   :  { %1752 = vmatpush.bf16.msra.mxu3 %v3666_v44  ;;  %v3861_v44 = vld [vmem:[#allocation10 + $0x14] sm:$0xf] }
 0x387   :  { %v4019_v31 = vpop.eup %4018  ;;  %v996_v34 = vmul.f32 1.442695, %v972_v20  ;;  %v1319_v57 = vpop.xlane.xlu1 %1318 }
 0x388   :  { %1386 = vadd.xlane.f32.xlu0 %v4019_v31  ;;  %v1409_v0 = vpack.c.bf16 %v4015_v12, %v4019_v31  ;;  %v4021_v18 = vpop.eup %4020  ;;  %v1336_v12 = vsub.f32 %v4919_v49, %v1315_v2  ;;  %v3661_v49 = vld [vmem:[#allocation10 + $0x30] sm:$0xf]  ;;  %v1338_v31 = vsub.f32 %v4993_v35, %v1319_v57  ;;  %v3863_v2 = vld [vmem:[#allocation10 + $0x24] sm:$0xf]  ;;  %v3647_v57 = vld [vmem:[#allocation10 + $0x18] sm:$0xf0] }
 0x389   :  { %4024 = vpow2.f32 %v996_v34  ;;  %v4023_v13 = vpop.eup %4022  ;;  %v3662_v19 = vor.u32 %v3866_v45, %v3661_v49 }
 0x38a   :  { %1437 = vmatmul.bf16.gmra.mxu1 %v1409_v0  ;;  %1034 = vadd.xlane.f32.xlu1 %v4021_v18  ;;  %4026 = vpow2.f32 %v1004_v63  ;;  %v1362_v58 = vmul.f32 1.442695, %v1336_v12  ;;  %v1366_v63 = vmul.f32 1.442695, %v1338_v31 }
 0x38b   :  { %1703 = vmatpush.bf16.msra.mxu2 %v3662_v19 }
 0x38c   :  { %v1313_v23 = vpop.xlane.xlu2 %1312 }
 0x38d   :  { %v1335_v32 = vsub.f32 %v5003_v25, %v1313_v23  ;;  %v961_v0 = vpop.xlane.xlu0 %960  ;;  %v3864_v23 = vld [vmem:[#allocation10 + $0x24] sm:$0xf0] }
 0x38f   :  { %v4025_v51 = vpop.eup %4024  ;;  %v1360_v52 = vmul.f32 1.442695, %v1335_v32 }
 0x390   :  { %1030 = vadd.xlane.f32.xlu0 %v4023_v13  ;;  %1028 = vadd.xlane.f32.xlu2 %v4025_v51  ;;  %v1048_v26 = vpack.c.bf16 %v4023_v13, %v4025_v51  ;;  %v5107_v48 = vpop.eup %4026  ;;  %v3654_v13 = vor.u32 %v3864_v23, %v3653_v4  ;;  %v3655_v51 = vld [vmem:[#allocation10 + $0x28] sm:$0xf0] }
 0x391   :  { %4028 = vpow2.f32 %v1360_v52  ;;  %v3658_v12 = vor.u32 %v3863_v2, %v3655_v51 }
 0x392   :  { %1080 = vmatmul.bf16.gmra.mxu0 %v1048_v26  ;;  %1036 = vadd.xlane.f32.xlu1 %v5107_v48  ;;  %4030 = vpow2.f32 %v1362_v58 }
 0x393   :  { %1704 = vmatpush.bf16.msra.mxu2 %v3654_v13  ;;  %1753 = vmatpush.bf16.msra.mxu3 %v3658_v12 }
 0x394   :  { %v953_v24 = vpop.xlane.xlu2 %952 }
 0x395   :  { %v974_v39 = vsub.f32 %v5017_v14, %v953_v24 }
 0x397   :  { %v4029_v25 = vpop.eup %4028  ;;  %v1000_v41 = vmul.f32 1.442695, %v974_v39 }
 0x398   :  { %1392 = vadd.xlane.f32.xlu2 %v4029_v25  ;;  %v1410_v16 = vpack.c.bf16 %v4029_v25, %v4017_v60  ;;  %v4031_v14 = vpop.eup %4030 }
 0x399   :  { %4032 = vpow2.f32 %v1000_v41  ;;  %v1061_v41 = vpop.f32.mrf.mxu0 }
 0x39a   :  { %1442 = vmatmul.bf16.gmra.mxu1 %v1410_v16  ;;  %v1423_v16 = vpop.f32.mrf.mxu1 }
 0x39c   :  { %v1317_v43 = vpop.xlane.xlu2 %1316 }
 0x39d   :  { %v1337_v6 = vsub.f32 %v5027_v27, %v1317_v43  ;;  %v978_v27 = vsub.f32 %v4929_v21, %v961_v0 }
 0x39f   :  { %v4033_v47 = vpop.eup %4032  ;;  %v1364_v20 = vmul.f32 1.442695, %v1337_v6  ;;  %v1008_v35 = vmul.f32 1.442695, %v978_v27  ;;  %v3650_v6 = vor.u32 %v3861_v44, %v3647_v57 }
 0x3a0   :  { %1032 = vadd.xlane.f32.xlu0 %v4033_v47  ;;  %1394 = vadd.xlane.f32.xlu2 %v4031_v14  ;;  %v1049_v60 = vpack.c.bf16 %v4021_v18, %v4033_v47 }
 0x3a1   :  { %4034 = vpow2.f32 %v1364_v20  ;;  %1754 = vmatpush.bf16.msra.mxu3 %v3650_v6 }
 0x3a2   :  { %1085 = vmatmul.bf16.gmra.mxu0 %v1049_v60  ;;  %4036 = vpow2.f32 %v1366_v63  ;;  %v1425_v31 = vpop.f32.mrf.mxu1 }
 0x3a4   :  { %v959_v34 = vpop.xlane.xlu2 %958 }
 0x3a5   :  { %v977_v33 = vsub.f32 %v5043_v56, %v959_v34 }
 0x3a7   :  { %v4035_v11 = vpop.eup %4034  ;;  %v1006_v3 = vmul.f32 1.442695, %v977_v33  ;;  %v3637_v33 = vld [vmem:[#allocation10] sm:$0xf] }
 0x3a8   :  { %1396 = vadd.xlane.f32.xlu0 %v4035_v11  ;;  %v1411_v46 = vpack.c.bf16 %v4035_v11, %v4031_v14  ;;  %v4037_v32 = vpop.eup %4036  ;;  %v1063_v14 = vpop.f32.mrf.mxu0  ;;  %v3860_v11 = vld [vmem:[#allocation10 + $0x4] sm:$0xf0] }
 0x3a9   :  { %4038 = vpow2.f32 %v1006_v3  ;;  %v3859_v3 = vld [vmem:[#allocation10 + $0x4] sm:$0xf]  ;;  %v3638_v27 = vor.u32 %v3860_v11, %v3637_v33 }
 0x3aa   :  { %1447 = vmatmul.bf16.gmra.mxu1 %v1411_v46  ;;  %4040 = vpow2.f32 %v1008_v35  ;;  %v3639_v46 = vld [vmem:[#allocation10 + $0x8] sm:$0xf0] }
 0x3ab   :  { %v3642_v35 = vor.u32 %v3859_v3, %v3639_v46 }
 0x3ac   :  { %v1321_v29 = vpop.xlane.xlu2 %1320 }
 0x3ad   :  { %v1339_v18 = vsub.f32 %v5053_v1, %v1321_v29  ;;  %1755 = vmatpush.bf16.msra.mxu3 %v3642_v35 }
 0x3af   :  { %v4039_v56 = vpop.eup %4038  ;;  %v1368_v52 = vmul.f32 1.442695, %v1339_v18 }
 0x3b0   :  { %1398 = vadd.xlane.f32.xlu0 %v4037_v32  ;;  %1038 = vadd.xlane.f32.xlu2 %v4039_v56  ;;  %v1050_v21 = vpack.c.bf16 %v4039_v56, %v5107_v48  ;;  %v4041_v58 = vpop.eup %4040 }
 0x3b1   :  { %4042 = vpow2.f32 %v1368_v52 }
 0x3b2   :  { %1090 = vmatmul.bf16.gmra.mxu0 %v1050_v21 }
 0x3b4   :  { %v1323_v26 = vpop.xlane.xlu2 %1322 }
 0x3b5   :  { %v1340_v1 = vsub.f32 %v5061_v36, %v1323_v26  ;;  %v3862_v36 = vld [vmem:[#allocation10 + $0x14] sm:$0xf0] }
 0x3b6   :  { %v3646_v43 = vor.u32 %v3862_v36, %v3645_v53 }
 0x3b7   :  { %v4043_v24 = vpop.eup %4042  ;;  %v1370_v39 = vmul.f32 1.442695, %v1340_v1 }
 0x3b8   :  { %1400 = vadd.xlane.f32.xlu1 %v4043_v24  ;;  %1040 = vadd.xlane.f32.xlu2 %v4041_v58  ;;  %v1412_v25 = vpack.c.bf16 %v4043_v24, %v4037_v32 }
 0x3b9   :  { %4044 = vpow2.f32 %v1370_v39  ;;  %1705 = vmatpush.bf16.msra.mxu2 %v3646_v43  ;;  %v5123_v39 = vld [vmem:[%s5780_s4] ss:$0 sm:$0xff] }
 0x3ba   :  { %1452 = vmatmul.bf16.gmra.mxu1 %v1412_v25 }
 0x3bc   :  { %v1015_v45 = vpop.xlane.xlu2 %1014 }
 0x3bd   :  { %v963_v49 = vpop.xlane.xlu1 %962  ;;  %1706 = vmatpush.bf16.msra.mxu2 %v3638_v27 }
 0x3be   :  { %v979_v48 = vsub.f32 %v5077_v59, %v963_v49 }
 0x3bf   :  { %v4045_v62 = vpop.eup %4044 }
 0x3c0   :  { %v1010_v19 = vmul.f32 1.442695, %v979_v48  ;;  %1402 = vadd.xlane.f32.xlu1 %v4045_v62 }
 0x3c2   :  { %4046 = vpow2.f32 %v1010_v19 }
 0x3c4   :  { %v1017_v59 = vpop.xlane.xlu2 %1016 }
 0x3c5   :  { %v1013_v47 = vpop.xlane.xlu1 %1012 }
 0x3c6   :  { %v1325_v20 = vpop.xlane.xlu0 %1324  ;;  %v1428_v4 = vpop.f32.mrf.mxu1 }
 0x3c7   :  { %v1341_v60 = vsub.f32 %v5085_v54, %v1325_v20  ;;  %v1066_v54 = vpop.f32.mrf.mxu0 }
 0x3c8   :  { %v4047_v63 = vpop.eup %4046 }
 0x3c9   :  { %v1372_v34 = vmul.f32 1.442695, %v1341_v60  ;;  %1042 = vadd.xlane.f32.xlu0 %v4047_v63  ;;  %v1051_v0 = vpack.c.bf16 %v4047_v63, %v4041_v58 }
 0x3cb   :  { %4048 = vpow2.f32 %v1372_v34  ;;  %1095 = vmatmul.bf16.gmra.mxu0 %v1051_v0 }
 0x3cc   :  { %4050 = vrcp.f32 %v1015_v45  ;;  %v1381_v32 = vpop.xlane.xlu2 %1380 }
 0x3cd   :  { %4052 = vrcp.f32 %v1013_v47  ;;  %v1377_v29 = vpop.xlane.xlu1 %1376 }
 0x3ce   :  { %4054 = vrcp.f32 %v1377_v29  ;;  %v1375_v18 = vpop.xlane.xlu0 %1374 }
 0x3cf   :  { %4056 = vrcp.f32 %v1375_v18  ;;  %v1068_v45 = vpop.f32.mrf.mxu0 }
 0x3d0   :  { %4058 = vrcp.f32 %v1017_v59 }
 0x3d1   :  { %v4049_v23 = vpop.eup %4048  ;;  %4060 = vrcp.f32 %v1381_v32 }
 0x3d2   :  { %v4051_v2 = vpop.eup %4050  ;;  %1404 = vadd.xlane.f32.xlu2 %v4049_v23  ;;  %v1413_v13 = vpack.c.bf16 %v4049_v23, %v4045_v62  ;;  %v1430_v62 = vpop.f32.mrf.mxu1 }
 0x3d3   :  { %v4053_v51 = vpop.eup %4052  ;;  %v1118_v12 = vmul.f32 %v4051_v2, %v1063_v14 }
 0x3d4   :  { %v4055_v56 = vpop.eup %4054  ;;  %1457 = vmatmul.bf16.gmra.mxu1 %v1413_v13  ;;  %v1117_v1 = vmul.f32 %v4053_v51, %v1061_v41  ;;  %v1383_v33 = vpop.xlane.xlu2 %1382 }
 0x3d5   :  { %v4057_v52 = vpop.eup %4056  ;;  %v1480_v21 = vmul.f32 %v4055_v56, %v1425_v31  ;;  %v1379_v26 = vpop.xlane.xlu1 %1378 }
 0x3d6   :  { %v1479_v58 = vmul.f32 %v4057_v52, %v1423_v16  ;;  %4062 = vrcp.f32 %v1379_v26  ;;  %v1019_v24 = vpop.xlane.xlu0 %1018  ;;  %v4059_v19 = vpop.eup %4058 }
 0x3d7   :  { %v1496_v25 = vadd.f32 %v1480_v21, %v1118_v12  ;;  %4064 = vrcp.f32 %v1019_v24  ;;  %v4061_v36 = vpop.eup %4060  ;;  %v1119_v57 = vmul.f32 %v4059_v19, %v1066_v54  ;;  %v1071_v35 = vpop.f32.mrf.mxu0 }
 0x3d8   :  { %v1495_v49 = vadd.f32 %v1479_v58, %v1117_v1  ;;  %v1482_v47 = vmul.f32 %v4061_v36, %v1430_v62 }
 0x3d9   :  { %v1512_v48 = vmul.f32 0.5, %v1496_v25 }
 0x3da   :  { %v1511_v53 = vmul.f32 0.5, %v1495_v49  ;;  %v1433_v29 = vpop.f32.mrf.mxu1  ;;  %v3882_v49 = vld [vmem:[#allocation11 + $0x38] sm:$0xff] }
 0x3db   :  { %v1532_v44 = vadd.f32 %v5123_v39, %v1512_v48  ;;  %2021 = vmatpush.bf16.msra.mxu0 %v3882_v49 }
 0x3dc   :  { %v4063_v41 = vpop.eup %4062  ;;  %v1531_v16 = vadd.f32 %v5123_v39, %v1511_v53 }
 0x3dd   :  { %v4065_v43 = vpop.eup %4064  ;;  %v1564_v6 = vmul.f32 0.2, %v1532_v44  ;;  %v1481_v14 = vmul.f32 %v4063_v41, %v1428_v4  ;;  %vm1548_vm11 = vcmp.ge.f32.partialorder %v1532_v44, 0.0  ;;  %v1023_v46 = vpop.xlane.xlu1 %1022 }
 0x3de   :  { %v1120_v20 = vmul.f32 %v4065_v43, %v1068_v45  ;;  %v1021_v31 = vpop.xlane.xlu0 %1020  ;;  %vm1547_vm6 = vcmp.ge.f32.partialorder %v1531_v16, 0.0  ;;  %v1563_v60 = vmul.f32 0.2, %v1531_v16  ;;  %v3890_v45 = vld [vmem:[#allocation11 + $0x78] sm:$0xff] }
 0x3df   :  { %v1497_v63 = vadd.f32 %v1481_v14, %v1119_v57  ;;  %v1580_v59 = vsel %vm1548_vm11, %v1532_v44, %v1564_v6  ;;  %4066 = vrcp.f32 %v1021_v31  ;;  %v1073_v12 = vpop.f32.mrf.mxu0  ;;  %2070 = vmatpush.bf16.msra.mxu1 %v3890_v45  ;;  %v3889_v31 = vld [vmem:[#allocation11 + $0x70] sm:$0xff] }
 0x3e0   :  { %v1498_v34 = vadd.f32 %v1482_v47, %v1120_v20  ;;  %v1579_v0 = vsel %vm1547_vm6, %v1531_v16, %v1563_v60  ;;  %4068 = vrcp.f32 %v1383_v33  ;;  %v3881_v20 = vld [vmem:[#allocation11 + $0x30] sm:$0xff] }
 0x3e1   :  { %v1595_v11 = vpack.c.bf16 %v1580_v59, %v1579_v0  ;;  %v1513_v3 = vmul.f32 0.5, %v1497_v63  ;;  %4070 = vrcp.f32 %v1023_v46  ;;  %2022 = vmatpush.bf16.msra.mxu0 %v3881_v20  ;;  %v1027_v63 = vpop.xlane.xlu2 %1026  ;;  %v3879_v20 = vld [vmem:[#allocation11 + $0x20] sm:$0xff] }
 0x3e2   :  { %v1514_v27 = vmul.f32 0.5, %v1498_v34  ;;  %v1435_v26 = vpop.f32.mrf.mxu1 }
 0x3e3   :  { %1707 = vmatmul.bf16.vlgmr.msra.gmra.mxu2 %v1595_v11  ;;  %1756 = vmatmul.bf16.vlgmr.msra.gmra.mxu3 %v1595_v11  ;;  %v1533_v54 = vadd.f32 %v5123_v39, %v1513_v3 }
 0x3e4   :  { %v1534_v4 = vadd.f32 %v5123_v39, %v1514_v27  ;;  %2071 = vmatpush.bf16.msra.mxu1 %v3889_v31  ;;  %v3887_v31 = vld [vmem:[#allocation11 + $0x60] sm:$0xff] }
 0x3e5   :  { %v4067_v23 = vpop.eup %4066  ;;  %v1565_v32 = vmul.f32 0.2, %v1533_v54  ;;  %vm1549_vm11 = vcmp.ge.f32.partialorder %v1533_v54, 0.0  ;;  %v1025_v16 = vpop.xlane.xlu1 %1024 }
 0x3e6   :  { %v1385_v18 = vpop.xlane.xlu0 %1384  ;;  %v4069_v2 = vpop.eup %4068  ;;  %v1566_v13 = vmul.f32 0.2, %v1534_v4  ;;  %vm1550_vm6 = vcmp.ge.f32.partialorder %v1534_v4, 0.0  ;;  %v1121_v56 = vmul.f32 %v4067_v23, %v1071_v35  ;;  %v3880_v23 = vld [vmem:[#allocation11 + $0x28] sm:$0xff] }
 0x3e7   :  { %4072 = vrcp.f32 %v1385_v18  ;;  %v4071_v51 = vpop.eup %4070  ;;  %v1483_v21 = vmul.f32 %v4069_v2, %v1433_v29  ;;  %v1581_v24 = vsel %vm1549_vm11, %v1533_v54, %v1565_v32  ;;  %v1076_v6 = vpop.f32.mrf.mxu0  ;;  %v3888_v2 = vld [vmem:[#allocation11 + $0x68] sm:$0xff]  ;;  %2023 = vmatpush.bf16.msra.mxu0 %v3880_v23 }
 0x3e8   :  { %v1122_v1 = vmul.f32 %v4071_v51, %v1073_v12  ;;  %v1582_v25 = vsel %vm1550_vm6, %v1534_v4, %v1566_v13  ;;  %4074 = vrcp.f32 %v1025_v16  ;;  %2072 = vmatpush.bf16.msra.mxu1 %v3888_v2 }
 0x3e9   :  { %v1499_v48 = vadd.f32 %v1483_v21, %v1121_v56  ;;  %v1596_v19 = vpack.c.bf16 %v1582_v25, %v1581_v24 }
 0x3eb   :  { %v1515_v36 = vmul.f32 0.5, %v1499_v48  ;;  %2024 = vmatpush.bf16.msra.mxu0 %v3879_v20 }
 0x3ec   :  { %2073 = vmatpush.bf16.msra.mxu1 %v3887_v31 }
 0x3ed   :  { %v4073_v52 = vpop.eup %4072  ;;  %v1535_v41 = vadd.f32 %v5123_v39, %v1515_v36  ;;  %v1389_v34 = vpop.xlane.xlu1 %1388 }
 0x3ee   :  { %v1484_v58 = vmul.f32 %v4073_v52, %v1435_v26  ;;  %v4075_v0 = vpop.eup %4074 }
 0x3ef   :  { %v1567_v57 = vmul.f32 0.2, %v1535_v41  ;;  %vm1551_vm11 = vcmp.ge.f32.partialorder %v1535_v41, 0.0  ;;  %v1078_v11 = vpop.f32.mrf.mxu0  ;;  %v1123_v27 = vmul.f32 %v4075_v0, %v1076_v6 }
 0x3f0   :  { %v1500_v62 = vadd.f32 %v1484_v58, %v1122_v1 }
 0x3f1   :  { %v1583_v60 = vsel %vm1551_vm11, %v1535_v41, %v1567_v57 }
 0x3f2   :  { %v1516_v53 = vmul.f32 0.5, %v1500_v62 }
 0x3f3   :  { %1712 = vmatmul.bf16.gmra.mxu2 %v1596_v19  ;;  %1761 = vmatmul.bf16.gmra.mxu3 %v1596_v19 }
 0x3f4   :  { %v1536_v44 = vadd.f32 %v5123_v39, %v1516_v53 }
 0x3f5   :  { %v1391_v54 = vpop.xlane.xlu1 %1390 }
 0x3f6   :  { %v1568_v43 = vmul.f32 0.2, %v1536_v44  ;;  %vm1552_vm3 = vcmp.ge.f32.partialorder %v1536_v44, 0.0 }
 0x3f8   :  { %v1584_v47 = vsel %vm1552_vm3, %v1536_v44, %v1568_v43 }
 0x3f9   :  { %v1597_v59 = vpack.c.bf16 %v1584_v47, %v1583_v60 }
 0x3fb   :  { %v1387_v14 = vpop.xlane.xlu0 %1386 }
 0x3fc   :  { %4076 = vrcp.f32 %v1387_v14 }
 0x3fd   :  { %4078 = vrcp.f32 %v1027_v63 }
 0x3fe   :  { %4080 = vrcp.f32 %v1389_v34 }
 0x3ff   :  { %4082 = vrcp.f32 %v1391_v54 }
 0x402   :  { %v4077_v33 = vpop.eup %4076 }
 0x403   :  { %1717 = vmatmul.bf16.gmra.mxu2 %v1597_v59  ;;  %1766 = vmatmul.bf16.gmra.mxu3 %v1597_v59  ;;  %v1029_v35 = vpop.xlane.xlu2 %1028  ;;  %v4079_v18 = vpop.eup %4078 }
 0x404   :  { %v4081_v32 = vpop.eup %4080  ;;  %v1124_v56 = vmul.f32 %v4079_v18, %v1078_v11  ;;  %4084 = vrcp.f32 %v1029_v35  ;;  %v1031_v12 = vpop.xlane.xlu0 %1030 }
 0x405   :  { %v4083_v24 = vpop.eup %4082  ;;  %4086 = vrcp.f32 %v1031_v12 }
 0x407   :  { %v1438_v3 = vpop.f32.mrf.mxu1 }
 0x408   :  { %v1485_v46 = vmul.f32 %v4077_v33, %v1438_v3  ;;  %v1035_v3 = vpop.xlane.xlu1 %1034 }
 0x40a   :  { %v1501_v29 = vadd.f32 %v1485_v46, %v1123_v27  ;;  %v4085_v45 = vpop.eup %4084 }
 0x40b   :  { %v1393_v1 = vpop.xlane.xlu2 %1392  ;;  %v4087_v6 = vpop.eup %4086 }
 0x40c   :  { %v1517_v4 = vmul.f32 0.5, %v1501_v29  ;;  %4088 = vrcp.f32 %v1393_v1 }
 0x40e   :  { %v1537_v21 = vadd.f32 %v5123_v39, %v1517_v4 }
 0x40f   :  { %v1081_v13 = vpop.f32.mrf.mxu0  ;;  %v1440_v51 = vpop.f32.mrf.mxu1 }
 0x410   :  { %v1486_v52 = vmul.f32 %v4081_v32, %v1440_v51  ;;  %v1569_v49 = vmul.f32 0.2, %v1537_v21  ;;  %vm1553_vm3 = vcmp.ge.f32.partialorder %v1537_v21, 0.0  ;;  %v1125_v19 = vmul.f32 %v4085_v45, %v1081_v13  ;;  %v3878_v51 = vld [vmem:[#allocation11 + $0x18] sm:$0xff] }
 0x411   :  { %2025 = vmatpush.bf16.msra.mxu0 %v3878_v51 }
 0x412   :  { %v1502_v26 = vadd.f32 %v1486_v52, %v1124_v56  ;;  %v1585_v16 = vsel %vm1553_vm3, %v1537_v21, %v1569_v49  ;;  %v4089_v60 = vpop.eup %4088  ;;  %v3886_v56 = vld [vmem:[#allocation11 + $0x58] sm:$0xff] }
 0x413   :  { %v1033_v44 = vpop.xlane.xlu0 %1032  ;;  %v1395_v14 = vpop.xlane.xlu2 %1394  ;;  %2074 = vmatpush.bf16.msra.mxu1 %v3886_v56 }
 0x414   :  { %v1518_v58 = vmul.f32 0.5, %v1502_v26  ;;  %4090 = vrcp.f32 %v1395_v14 }
 0x415   :  { %4092 = vrcp.f32 %v1033_v44 }
 0x416   :  { %v1538_v25 = vadd.f32 %v5123_v39, %v1518_v58  ;;  %4094 = vrcp.f32 %v1035_v3  ;;  %v1037_v58 = vpop.xlane.xlu1 %1036 }
 0x417   :  { %v1083_v48 = vpop.f32.mrf.mxu0  ;;  %v1443_v62 = vpop.f32.mrf.mxu1 }
 0x418   :  { %v1487_v53 = vmul.f32 %v4083_v24, %v1443_v62  ;;  %vm1554_vm6 = vcmp.ge.f32.partialorder %v1538_v25, 0.0  ;;  %v1570_v36 = vmul.f32 0.2, %v1538_v25  ;;  %v1126_v34 = vmul.f32 %v4087_v6, %v1083_v48 }
 0x41a   :  { %v1503_v41 = vadd.f32 %v1487_v53, %v1125_v19  ;;  %v1586_v43 = vsel %vm1554_vm6, %v1538_v25, %v1570_v36  ;;  %v4091_v35 = vpop.eup %4090 }
 0x41b   :  { %v1598_v57 = vpack.c.bf16 %v1586_v43, %v1585_v16  ;;  %v1397_v27 = vpop.xlane.xlu0 %1396  ;;  %v4093_v54 = vpop.eup %4092 }
 0x41c   :  { %v1519_v47 = vmul.f32 0.5, %v1503_v41  ;;  %4096 = vrcp.f32 %v1397_v27  ;;  %v4095_v1 = vpop.eup %4094 }
 0x41d   :  { %1722 = vmatmul.bf16.gmra.mxu2 %v1598_v57  ;;  %1771 = vmatmul.bf16.gmra.mxu3 %v1598_v57  ;;  %4098 = vrcp.f32 %v1037_v58 }
 0x41e   :  { %v1539_v33 = vadd.f32 %v5123_v39, %v1519_v47 }
 0x41f   :  { %v1086_v63 = vpop.f32.mrf.mxu0  ;;  %v1445_v59 = vpop.f32.mrf.mxu1 }
 0x420   :  { %v1488_v0 = vmul.f32 %v4089_v60, %v1445_v59  ;;  %v1571_v18 = vmul.f32 0.2, %v1539_v33  ;;  %vm1555_vm11 = vcmp.ge.f32.partialorder %v1539_v33, 0.0  ;;  %v1127_v23 = vmul.f32 %v4093_v54, %v1086_v63  ;;  %v3885_v54 = vld [vmem:[#allocation11 + $0x50] sm:$0xff] }
 0x421   :  { %2075 = vmatpush.bf16.msra.mxu1 %v3885_v54 }
 0x422   :  { %v1504_v11 = vadd.f32 %v1488_v0, %v1126_v34  ;;  %v1587_v12 = vsel %vm1555_vm11, %v1539_v33, %v1571_v18  ;;  %v4097_v49 = vpop.eup %4096  ;;  %v3877_v18 = vld [vmem:[#allocation11 + $0x10] sm:$0xff] }
 0x423   :  { %v1399_v24 = vpop.xlane.xlu0 %1398  ;;  %v1039_v44 = vpop.xlane.xlu2 %1038  ;;  %2026 = vmatpush.bf16.msra.mxu0 %v3877_v18 }
 0x424   :  { %v1520_v46 = vmul.f32 0.5, %v1504_v11  ;;  %4100 = vrcp.f32 %v1399_v24  ;;  %v4099_v16 = vpop.eup %4098 }
 0x425   :  { %4102 = vrcp.f32 %v1039_v44  ;;  %v3883_v44 = vld [vmem:[#allocation11 + $0x40] sm:$0xff] }
 0x426   :  { %v1540_v29 = vadd.f32 %v5123_v39, %v1520_v46 }
 0x427   :  { %v1448_v4 = vpop.f32.mrf.mxu1  ;;  %v1088_v13 = vpop.f32.mrf.mxu0 }
 0x428   :  { %v1489_v2 = vmul.f32 %v4091_v35, %v1448_v4  ;;  %vm1556_vm3 = vcmp.ge.f32.partialorder %v1540_v29, 0.0  ;;  %v1572_v32 = vmul.f32 0.2, %v1540_v29  ;;  %v1128_v48 = vmul.f32 %v4095_v1, %v1088_v13 }
 0x42a   :  { %v1505_v52 = vadd.f32 %v1489_v2, %v1127_v23  ;;  %v1588_v21 = vsel %vm1556_vm3, %v1540_v29, %v1572_v32  ;;  %v4101_v14 = vpop.eup %4100 }
 0x42b   :  { %v1599_v26 = vpack.c.bf16 %v1588_v21, %v1587_v12  ;;  %v1401_v43 = vpop.xlane.xlu1 %1400  ;;  %v4103_v33 = vpop.eup %4102  ;;  %v3876_v12 = vld [vmem:[#allocation11 + $0x8] sm:$0xff] }
 0x42c   :  { %v1521_v25 = vmul.f32 0.5, %v1505_v52  ;;  %4104 = vrcp.f32 %v1401_v43  ;;  %v1041_v51 = vpop.xlane.xlu2 %1040  ;;  %v3884_v21 = vld [vmem:[#allocation11 + $0x48] sm:$0xff]  ;;  %2027 = vmatpush.bf16.msra.mxu0 %v3876_v12 }
 0x42d   :  { %1727 = vmatmul.bf16.gmra.mxu2 %v1599_v26  ;;  %1776 = vmatmul.bf16.gmra.mxu3 %v1599_v26  ;;  %4106 = vrcp.f32 %v1041_v51 }
 0x42e   :  { %v1541_v19 = vadd.f32 %v5123_v39, %v1521_v25  ;;  %2076 = vmatpush.bf16.msra.mxu1 %v3884_v21 }
 0x42f   :  { %v1450_v45 = vpop.f32.mrf.mxu1  ;;  %v1091_v36 = vpop.f32.mrf.mxu0 }
 0x430   :  { %v1490_v62 = vmul.f32 %v4097_v49, %v1450_v45  ;;  %v1573_v6 = vmul.f32 0.2, %v1541_v19  ;;  %vm1557_vm6 = vcmp.ge.f32.partialorder %v1541_v19, 0.0  ;;  %v1129_v20 = vmul.f32 %v4099_v16, %v1091_v36  ;;  %v3875_v36 = vld [vmem:[#allocation11] sm:$0xff] }
 0x431   :  { %2028 = vmatpush.bf16.msra.mxu0 %v3875_v36 }
 0x432   :  { %v1506_v53 = vadd.f32 %v1490_v62, %v1128_v48  ;;  %v1589_v59 = vsel %vm1557_vm6, %v1541_v19, %v1573_v6  ;;  %v4105_v27 = vpop.eup %4104  ;;  %2077 = vmatpush.bf16.msra.mxu1 %v3883_v44 }
 0x433   :  { %v1403_v56 = vpop.xlane.xlu1 %1402  ;;  %v4107_v49 = vpop.eup %4106 }
 0x434   :  { %v1522_v41 = vmul.f32 0.5, %v1506_v53  ;;  %4108 = vrcp.f32 %v1403_v56 }
 0x436   :  { %v1542_v57 = vadd.f32 %v5123_v39, %v1522_v41 }
 0x437   :  { %v1453_v47 = vpop.f32.mrf.mxu1  ;;  %v1093_v11 = vpop.f32.mrf.mxu0 }
 0x438   :  { %v1491_v31 = vmul.f32 %v4101_v14, %v1453_v47  ;;  %vm1558_vm11 = vcmp.ge.f32.partialorder %v1542_v57, 0.0  ;;  %v1574_v60 = vmul.f32 0.2, %v1542_v57  ;;  %v1130_v35 = vmul.f32 %v4103_v33, %v1093_v11 }
 0x43a   :  { %v1507_v63 = vadd.f32 %v1491_v31, %v1129_v20  ;;  %v1590_v34 = vsel %vm1558_vm11, %v1542_v57, %v1574_v60  ;;  %v4109_v48 = vpop.eup %4108 }
 0x43b   :  { %v1600_v0 = vpack.c.bf16 %v1590_v34, %v1589_v59 }
 0x43c   :  { %v1523_v3 = vmul.f32 0.5, %v1507_v63  ;;  %v1043_v25 = vpop.xlane.xlu0 %1042 }
 0x43d   :  { %1732 = vmatmul.bf16.gmra.mxu2 %v1600_v0  ;;  %1781 = vmatmul.bf16.gmra.mxu3 %v1600_v0  ;;  %4110 = vrcp.f32 %v1043_v25 }
 0x43e   :  { %v1543_v4 = vadd.f32 %v5123_v39, %v1523_v3 }
 0x43f   :  { %v1455_v46 = vpop.f32.mrf.mxu1 }
 0x440   :  { %v1492_v29 = vmul.f32 %v4105_v27, %v1455_v46  ;;  %v1575_v13 = vmul.f32 0.2, %v1543_v4  ;;  %vm1559_vm3 = vcmp.ge.f32.partialorder %v1543_v4, 0.0 }
 0x442   :  { %v1508_v23 = vadd.f32 %v1492_v29, %v1130_v35  ;;  %v1591_v26 = vsel %vm1559_vm3, %v1543_v4, %v1575_v13 }
 0x443   :  { %v4111_v43 = vpop.eup %4110 }
 0x444   :  { %v1524_v2 = vmul.f32 0.5, %v1508_v23 }
 0x445   :  { %v1405_v45 = vpop.xlane.xlu2 %1404 }
 0x446   :  { %v1544_v32 = vadd.f32 %v5123_v39, %v1524_v2  ;;  %4112 = vrcp.f32 %v1405_v45 }
 0x448   :  { %vm1560_vm6 = vcmp.ge.f32.partialorder %v1544_v32, 0.0  ;;  %v1576_v52 = vmul.f32 0.2, %v1544_v32  ;;  %v1096_v24 = vpop.f32.mrf.mxu0 }
 0x449   :  { %v1131_v19 = vmul.f32 %v4107_v49, %v1096_v24 }
 0x44a   :  { %v1592_v1 = vsel %vm1560_vm6, %v1544_v32, %v1576_v52 }
 0x44b   :  { %v1601_v58 = vpack.c.bf16 %v1592_v1, %v1591_v26 }
 0x44c   :  { %v4113_v6 = vpop.eup %4112 }
 0x44d   :  { %1737 = vmatmul.bf16.gmra.mxu2 %v1601_v58  ;;  %1786 = vmatmul.bf16.gmra.mxu3 %v1601_v58 }
 0x450   :  { %v1098_v16 = vpop.f32.mrf.mxu0 }
 0x451   :  { %v1458_v62 = vpop.f32.mrf.mxu1  ;;  %v1132_v47 = vmul.f32 %v4111_v43, %v1098_v16 }
 0x452   :  { %v1493_v53 = vmul.f32 %v4109_v48, %v1458_v62 }
 0x454   :  { %v1509_v41 = vadd.f32 %v1493_v53, %v1131_v19 }
 0x456   :  { %v1525_v57 = vmul.f32 0.5, %v1509_v41 }
 0x458   :  { %v1545_v31 = vadd.f32 %v5123_v39, %v1525_v57 }
 0x459   :  { %v1460_v14 = vpop.f32.mrf.mxu1 }
 0x45a   :  { %v1494_v20 = vmul.f32 %v4113_v6, %v1460_v14  ;;  %v1577_v34 = vmul.f32 0.2, %v1545_v31  ;;  %vm1561_vm11 = vcmp.ge.f32.partialorder %v1545_v31, 0.0 }
 0x45c   :  { %v1510_v60 = vadd.f32 %v1494_v20, %v1132_v47  ;;  %v1593_v33 = vsel %vm1561_vm11, %v1545_v31, %v1577_v34 }
 0x45e   :  { %v1526_v63 = vmul.f32 0.5, %v1510_v60 }
 0x460   :  { %v1546_v59 = vadd.f32 %v5123_v39, %v1526_v63 }
 0x462   :  { %vm1562_vm3 = vcmp.ge.f32.partialorder %v1546_v59, 0.0  ;;  %v1578_v0 = vmul.f32 0.2, %v1546_v59 }
 0x464   :  { %v1594_v11 = vsel %vm1562_vm3, %v1546_v59, %v1578_v0 }
 0x465   :  { %v1602_v3 = vpack.c.bf16 %v1594_v11, %v1593_v33 }
 0x466   :  { %v1708_v27 = vpop.f32.mrf.mxu2  ;;  %v1757_v46 = vpop.f32.mrf.mxu3 }
 0x467   :  { %1742 = vmatmul.bf16.gmra.mxu2 %v1602_v3  ;;  %1791 = vmatmul.bf16.gmra.mxu3 %v1602_v3  ;;  %v1797_v35 = vpack.c.bf16 %v1757_v46, %v1708_v27 }
 0x469   :  { %v1861_v4 = vunpack.c.l.b16 %v1797_v35  ;;  %v1862_v23 = vunpack.c.h.b16 %v1797_v35 }
 0x46e   :  { %v1710_v29 = vpop.f32.mrf.mxu2  ;;  %v1759_v18 = vpop.f32.mrf.mxu3 }
 0x46f   :  { %v1798_v54 = vpack.c.bf16 %v1759_v18, %v1710_v29 }
 0x471   :  { %v1863_v2 = vunpack.c.l.b16 %v1798_v54  ;;  %v1864_v32 = vunpack.c.h.b16 %v1798_v54 }
 0x473   :  { %v5141_v39 = vpack.c.b16 %v1863_v2, %v1861_v4  ;;  %v5143_v13 = vpack.c.b16 %v1864_v32, %v1862_v23 }
 0x475   :  { %2029 = vmatmul.bf16.vlgmr.msra.gmra.mxu0 %v5141_v39  ;;  %2078 = vmatmul.bf16.vlgmr.msra.gmra.mxu1 %v5143_v13 }
 0x476   :  { %v1713_v51 = vpop.f32.mrf.mxu2  ;;  %v1762_v56 = vpop.f32.mrf.mxu3 }
 0x477   :  { %v1799_v52 = vpack.c.bf16 %v1762_v56, %v1713_v51 }
 0x479   :  { %v1865_v1 = vunpack.c.l.b16 %v1799_v52  ;;  %v1866_v58 = vunpack.c.h.b16 %v1799_v52 }
 0x47e   :  { %v1715_v12 = vpop.f32.mrf.mxu2  ;;  %v1764_v21 = vpop.f32.mrf.mxu3 }
 0x47f   :  { %v1800_v26 = vpack.c.bf16 %v1764_v21, %v1715_v12 }
 0x481   :  { %v1867_v24 = vunpack.c.l.b16 %v1800_v26  ;;  %v1868_v25 = vunpack.c.h.b16 %v1800_v26 }
 0x483   :  { %v5147_v49 = vpack.c.b16 %v1867_v24, %v1865_v1  ;;  %v5149_v45 = vpack.c.b16 %v1868_v25, %v1866_v58 }
 0x485   :  { %2034 = vmatmul.bf16.gmra.mxu0 %v5147_v49  ;;  %2083 = vmatmul.bf16.gmra.mxu1 %v5149_v45 }
 0x486   :  { %v1718_v48 = vpop.f32.mrf.mxu2  ;;  %v1767_v62 = vpop.f32.mrf.mxu3 }
 0x487   :  { %v1801_v19 = vpack.c.bf16 %v1767_v62, %v1718_v48 }
 0x489   :  { %v1869_v41 = vunpack.c.l.b16 %v1801_v19  ;;  %v1870_v16 = vunpack.c.h.b16 %v1801_v19 }
 0x48e   :  { %v1720_v53 = vpop.f32.mrf.mxu2  ;;  %v1769_v36 = vpop.f32.mrf.mxu3 }
 0x48f   :  { %v1802_v44 = vpack.c.bf16 %v1769_v36, %v1720_v53 }
 0x491   :  { %v1871_v43 = vunpack.c.l.b16 %v1802_v44  ;;  %v1872_v57 = vunpack.c.h.b16 %v1802_v44 }
 0x493   :  { %v5153_v6 = vpack.c.b16 %v1871_v43, %v1869_v41  ;;  %v5155_v14 = vpack.c.b16 %v1872_v57, %v1870_v16 }
 0x495   :  { %2039 = vmatmul.bf16.gmra.mxu0 %v5153_v6  ;;  %2088 = vmatmul.bf16.gmra.mxu1 %v5155_v14 }
 0x4a0   :  { %v1723_v47 = vpop.f32.mrf.mxu2  ;;  %v1772_v20 = vpop.f32.mrf.mxu3 }
 0x4a1   :  { %v1803_v31 = vpack.c.bf16 %v1772_v20, %v1723_v47 }
 0x4a3   :  { %v1873_v34 = vunpack.c.l.b16 %v1803_v31  ;;  %v1874_v0 = vunpack.c.h.b16 %v1803_v31 }
 0x4a8   :  { %v1725_v60 = vpop.f32.mrf.mxu2  ;;  %v1774_v63 = vpop.f32.mrf.mxu3 }
 0x4a9   :  { %v1804_v59 = vpack.c.bf16 %v1774_v63, %v1725_v60 }
 0x4ab   :  { %v1875_v33 = vunpack.c.l.b16 %v1804_v59  ;;  %v1876_v11 = vunpack.c.h.b16 %v1804_v59 }
 0x4ad   :  { %v5159_v3 = vpack.c.b16 %v1875_v33, %v1873_v34  ;;  %v5161_v27 = vpack.c.b16 %v1876_v11, %v1874_v0 }
 0x4af   :  { %2044 = vmatmul.bf16.gmra.mxu0 %v5159_v3  ;;  %2093 = vmatmul.bf16.gmra.mxu1 %v5161_v27 }
 0x4b0   :  { %v1728_v46 = vpop.f32.mrf.mxu2  ;;  %v1777_v35 = vpop.f32.mrf.mxu3 }
 0x4b1   :  { %v1805_v29 = vpack.c.bf16 %v1777_v35, %v1728_v46 }
 0x4b3   :  { %v1877_v23 = vunpack.c.l.b16 %v1805_v29  ;;  %v1878_v2 = vunpack.c.h.b16 %v1805_v29 }
 0x4b8   :  { %v1730_v18 = vpop.f32.mrf.mxu2  ;;  %v1779_v54 = vpop.f32.mrf.mxu3 }
 0x4b9   :  { %v1806_v4 = vpack.c.bf16 %v1779_v54, %v1730_v18 }
 0x4bb   :  { %v1879_v32 = vunpack.c.l.b16 %v1806_v4  ;;  %v1880_v51 = vunpack.c.h.b16 %v1806_v4 }
 0x4bd   :  { %v5165_v56 = vpack.c.b16 %v1879_v32, %v1877_v23  ;;  %v5167_v52 = vpack.c.b16 %v1880_v51, %v1878_v2 }
 0x4bf   :  { %2049 = vmatmul.bf16.gmra.mxu0 %v5165_v56  ;;  %2098 = vmatmul.bf16.gmra.mxu1 %v5167_v52 }
 0x4c0   :  { %v1733_v12 = vpop.f32.mrf.mxu2  ;;  %v1782_v21 = vpop.f32.mrf.mxu3 }
 0x4c1   :  { %v1807_v26 = vpack.c.bf16 %v1782_v21, %v1733_v12 }
 0x4c3   :  { %v1881_v25 = vunpack.c.l.b16 %v1807_v26  ;;  %v1882_v48 = vunpack.c.h.b16 %v1807_v26 }
 0x4c8   :  { %v1735_v1 = vpop.f32.mrf.mxu2  ;;  %v1784_v58 = vpop.f32.mrf.mxu3 }
 0x4c9   :  { %v1808_v24 = vpack.c.bf16 %v1784_v58, %v1735_v1 }
 0x4cb   :  { %v1883_v62 = vunpack.c.l.b16 %v1808_v24  ;;  %v1884_v19 = vunpack.c.h.b16 %v1808_v24  ;;  %v5795_v24 = vmov 3  }
 0x4cd   :  { %v1903_v53 = vpack.c.b16 %v1883_v62, %v1881_v25  ;;  %v1904_v36 = vpack.c.b16 %v1884_v19, %v1882_v48 }
 0x4cf   :  { %2054 = vmatmul.bf16.gmra.mxu0 %v1903_v53  ;;  %2103 = vmatmul.bf16.gmra.mxu1 %v1904_v36 }
 0x4d0   :  { %v1738_v44 = vpop.f32.mrf.mxu2  ;;  %v1787_v41 = vpop.f32.mrf.mxu3 }
 0x4d1   :  { %v1809_v16 = vpack.c.bf16 %v1787_v41, %v1738_v44 }
 0x4d3   :  { %v1885_v20 = vunpack.c.l.b16 %v1809_v16  ;;  %v1886_v31 = vunpack.c.h.b16 %v1809_v16 }
 0x4d8   :  { %v1740_v43 = vpop.f32.mrf.mxu2  ;;  %v1789_v57 = vpop.f32.mrf.mxu3 }
 0x4d9   :  { %v1810_v47 = vpack.c.bf16 %v1789_v57, %v1740_v43 }
 0x4db   :  { %v1887_v60 = vunpack.c.l.b16 %v1810_v47  ;;  %v1888_v63 = vunpack.c.h.b16 %v1810_v47 }
 0x4dd   :  { %v1905_v59 = vpack.c.b16 %v1887_v60, %v1885_v20  ;;  %v1906_v34 = vpack.c.b16 %v1888_v63, %v1886_v31 }
 0x4df   :  { %2059 = vmatmul.bf16.gmra.mxu0 %v1905_v59  ;;  %2108 = vmatmul.bf16.gmra.mxu1 %v1906_v34 }
 0x4ea   :  { %v1743_v0 = vpop.f32.mrf.mxu2  ;;  %v1792_v33 = vpop.f32.mrf.mxu3 }
 0x4eb   :  { %v1811_v11 = vpack.c.bf16 %v1792_v33, %v1743_v0 }
 0x4ed   :  { %v1889_v23 = vunpack.c.l.b16 %v1811_v11  ;;  %v1890_v2 = vunpack.c.h.b16 %v1811_v11 }
 0x4f2   :  { %v1745_v46 = vpop.f32.mrf.mxu2  ;;  %v1794_v35 = vpop.f32.mrf.mxu3 }
 0x4f3   :  { %v1812_v29 = vpack.c.bf16 %v1794_v35, %v1745_v46  ;;  %v2030_v18 = vpop.f32.mrf.mxu0  ;;  %v2079_v54 = vpop.f32.mrf.mxu1 }
 0x4f4   :  { %v5171_v4 = vadd.f32 %v2079_v54, %v2030_v18 }
 0x4f5   :  { %v1891_v32 = vunpack.c.l.b16 %v1812_v29  ;;  %v1892_v51 = vunpack.c.h.b16 %v1812_v29 }
 0x4f6   :  { %2530 = vperm.xlu2 %3961, %v5171_v4   ;;  %2153 = vperm.xlu0 %3960, %v5171_v4  }
 0x4f7   :  { %v1907_v12 = vpack.c.b16 %v1891_v32, %v1889_v23  ;;  %v1908_v21 = vpack.c.b16 %v1892_v51, %v1890_v2 }
 0x4f9   :  { %2064 = vmatmul.bf16.gmra.mxu0 %v1907_v12  ;;  %2113 = vmatmul.bf16.gmra.mxu1 %v1908_v21 }
 0x4fa   :  { %2432 = vmatpush.bf16.msrb.mxu2 %v1907_v12  ;;  %2794 = vmatpush.bf16.msrb.mxu3 %v1908_v21 }
 0x4fb   :  { %v2032_v26 = vpop.f32.mrf.mxu0  ;;  %v2081_v1 = vpop.f32.mrf.mxu1 }
 0x4fc   :  { %v5175_v58 = vadd.f32 %v2081_v1, %v2032_v26 }
 0x4fe   :  { %2158 = vperm.xlu1 %3962, %v5175_v58   ;;  %2433 = vmatpush.bf16.msrb.mxu2 %v1905_v59 }
 0x4ff   :  { %2795 = vmatpush.bf16.msrb.mxu3 %v1906_v34  ;;  %3964 = vset.pattern.permute.xlu2 %v4547_v61 }
 0x500   :  { %3967 = vset.pattern.permute.xlu0 %v5795_v24 }
 0x502   :  { %2434 = vmatpush.bf16.msrb.mxu2 %v1903_v53 }
 0x503   :  { %2796 = vmatpush.bf16.msrb.mxu3 %v1904_v36  ;;  %v2035_v25 = vpop.f32.mrf.mxu0  ;;  %v2084_v48 = vpop.f32.mrf.mxu1 }
 0x504   :  { %v5180_v62 = vadd.f32 %v2084_v48, %v2035_v25 }
 0x506   :  { %3963 = vset.pattern.permute.xlu1 %v5795_v24  ;;  %2163 = vperm.xlu2 %3964, %v5180_v62  }
 0x507   :  { %2435 = vmatpush.bf16.msrb.mxu2 %v5165_v56  ;;  %2797 = vmatpush.bf16.msrb.mxu3 %v5167_v52 }
 0x508   :  { %2534 = vperm.xlu1 %3963, %v5175_v58  }
 0x50b   :  { %2436 = vmatpush.bf16.msrb.mxu2 %v5159_v3  ;;  %2798 = vmatpush.bf16.msrb.mxu3 %v5161_v27  ;;  %v2037_v19 = vpop.f32.mrf.mxu0  ;;  %v2086_v53 = vpop.f32.mrf.mxu1 }
 0x50c   :  { %v5189_v36 = vadd.f32 %v2086_v53, %v2037_v19 }
 0x50e   :  { %3965 = vset.pattern.permute.xlu2 %v5795_v24  ;;  %2542 = vperm.xlu0 %3967, %v5189_v36  }
 0x50f   :  { %2437 = vmatpush.bf16.msrb.mxu2 %v5153_v6  ;;  %2799 = vmatpush.bf16.msrb.mxu3 %v5155_v14 }
 0x510   :  { %3966 = vset.pattern.permute.xlu1 %v4547_v61  ;;  %2538 = vperm.xlu2 %3965, %v5180_v62  }
 0x511   :  { %2168 = vperm.xlu1 %3966, %v5189_v36  }
 0x513   :  { %2438 = vmatpush.bf16.msrb.mxu2 %v5147_v49  ;;  %2800 = vmatpush.bf16.msrb.mxu3 %v5149_v45  ;;  %v2040_v3 = vpop.f32.mrf.mxu0  ;;  %v2089_v27 = vpop.f32.mrf.mxu1 }
 0x514   :  { %v5200_v56 = vadd.f32 %v2089_v27, %v2040_v3 }
 0x516   :  { %2546 = vperm.xlu0 %3967, %v5200_v56  }
 0x517   :  { %2439 = vmatpush.bf16.msrb.mxu2 %v5141_v39  ;;  %2801 = vmatpush.bf16.msrb.mxu3 %v5143_v13 }
 0x518   :  { %3968 = vset.pattern.permute.xlu2 %v4547_v61 }
 0x519   :  { %2173 = vperm.xlu2 %3968, %v5200_v56   ;;  %3973 = vset.pattern.permute.xlu1 %v5795_v24 }
 0x51b   :  { %v2042_v6 = vpop.f32.mrf.mxu0  ;;  %v2091_v49 = vpop.f32.mrf.mxu1 }
 0x51c   :  { %v2092_v45 = vadd.f32 %v2091_v49, %v2042_v6 }
 0x51e   :  { %3970 = vset.pattern.permute.xlu0 %v4547_v61 }
 0x521   :  { %2178 = vperm.xlu2 %3968, %v2092_v45  }
 0x529   :  { %3969 = vset.pattern.permute.xlu2 %v5795_v24 }
 0x52a   :  { %2550 = vperm.xlu2 %3969, %v2092_v45  }
 0x52c   :  { %v2045_v14 = vpop.f32.mrf.mxu0  ;;  %v2094_v52 = vpop.f32.mrf.mxu1 }
 0x52d   :  { %v2095_v39 = vadd.f32 %v2094_v52, %v2045_v14 }
 0x52f   :  { %2183 = vperm.xlu0 %3970, %v2095_v39  }
 0x532   :  { %2554 = vperm.xlu2 %3969, %v2095_v39  }
 0x534   :  { %v2047_v13 = vpop.f32.mrf.mxu0  ;;  %v2096_v44 = vpop.f32.mrf.mxu1 }
 0x535   :  { %v2097_v41 = vadd.f32 %v2096_v44, %v2047_v13 }
 0x53a   :  { %3971 = vset.pattern.permute.xlu2 %v4547_v61 }
 0x53b   :  { %2188 = vperm.xlu2 %3971, %v2097_v41  }
 0x53c   :  { %v2050_v16 = vpop.f32.mrf.mxu0  ;;  %v2099_v43 = vpop.f32.mrf.mxu1 }
 0x53d   :  { %v2100_v57 = vadd.f32 %v2099_v43, %v2050_v16 }
 0x53f   :  { %2562 = vperm.xlu1 %3973, %v2100_v57   ;;  %2193 = vperm.xlu0 %3970, %v2100_v57  }
 0x543   :  { %3972 = vset.pattern.permute.xlu2 %v5795_v24 }
 0x544   :  { %2558 = vperm.xlu2 %3972, %v2097_v41   ;;  %v2052_v47 = vpop.f32.mrf.mxu0  ;;  %v2101_v20 = vpop.f32.mrf.mxu1 }
 0x545   :  { %v2102_v31 = vadd.f32 %v2101_v20, %v2052_v47 }
 0x547   :  { %3975 = vset.pattern.permute.xlu0 %v5795_v24 }
 0x548   :  { %2566 = vperm.xlu0 %3975, %v2102_v31  }
 0x54c   :  { %3974 = vset.pattern.permute.xlu2 %v4547_v61  ;;  %v2055_v60 = vpop.f32.mrf.mxu0  ;;  %v2104_v63 = vpop.f32.mrf.mxu1 }
 0x54d   :  { %2198 = vperm.xlu2 %3974, %v2102_v31   ;;  %v2105_v59 = vadd.f32 %v2104_v63, %v2055_v60 }
 0x54f   :  { %2570 = vperm.xlu1 %3973, %v2105_v59  }
 0x550   :  { %3976 = vset.pattern.permute.xlu0 %v4547_v61  ;;  %v2531_v1 = vpop.permute.xlu2 %2530 }
 0x551   :  { %2203 = vperm.xlu0 %3976, %v2105_v59  }
 0x554   :  { %v2057_v34 = vpop.f32.mrf.mxu0  ;;  %v2106_v0 = vpop.f32.mrf.mxu1 }
 0x555   :  { %v2107_v33 = vadd.f32 %v2106_v0, %v2057_v34 }
 0x557   :  { %2208 = vperm.xlu2 %3974, %v2107_v33  }
 0x55c   :  { %v2060_v11 = vpop.f32.mrf.mxu0  ;;  %v2109_v46 = vpop.f32.mrf.mxu1 }
 0x55d   :  { %v2110_v35 = vadd.f32 %v2109_v46, %v2060_v11 }
 0x55f   :  { %3977 = vset.pattern.permute.xlu2 %v5795_v24  ;;  %2578 = vperm.xlu1 %3973, %v2110_v35  }
 0x560   :  { %2574 = vperm.xlu2 %3977, %v2107_v33   ;;  %v2164_v25 = vpop.permute.xlu2 %2163 }
 0x564   :  { %v2062_v29 = vpop.f32.mrf.mxu0  ;;  %v2111_v18 = vpop.f32.mrf.mxu1 }
 0x565   :  { %v2112_v54 = vadd.f32 %v2111_v18, %v2062_v29 }
 0x567   :  { %2218 = vperm.xlu0 %3976, %v2112_v54   ;;  %3980 = vset.pattern.permute.xlu1 %v4547_v61 }
 0x568   :  { %3978 = vset.pattern.permute.xlu2 %v4547_v61  ;;  %v2154_v6 = vpop.permute.xlu0 %2153 }
 0x569   :  { %2213 = vperm.xlu2 %3978, %v2110_v35  }
 0x56a   :  { %v2539_v19 = vpop.permute.xlu2 %2538 }
 0x56f   :  { %3979 = vset.pattern.permute.xlu0 %v5795_v24 }
 0x570   :  { %2582 = vperm.xlu0 %3979, %v2112_v54   ;;  %v2159_v61 = vpop.permute.xlu1 %2158 }
 0x576   :  { %v2065_v23 = vpop.f32.mrf.mxu0  ;;  %v2114_v2 = vpop.f32.mrf.mxu1 }
 0x577   :  { %v5219_v32 = vadd.f32 %v2114_v2, %v2065_v23 }
 0x579   :  { %2223 = vperm.xlu1 %3980, %v5219_v32  }
 0x57e   :  { %v2067_v51 = vpop.f32.mrf.mxu0  ;;  %v2116_v12 = vpop.f32.mrf.mxu1 }
 0x57f   :  { %v5228_v21 = vadd.f32 %v2116_v12, %v2067_v51 }
 0x5ae   :  { %2119 = vxpose.xlu1.b32.start [1/16] (narrow) %v5171_v4, 8  ;;  %v2535_v4 = vpop.permute.xlu1 %2534 }
 0x5b6   :  { %2120 = vxpose.xlu1.b32.cont [2/16] (narrow) %v5175_v58, 8  ;;  %v2169_v26 = vpop.permute.xlu1 %2168 }
 0x5be   :  { %2121 = vxpose.xlu1.b32.cont [3/16] (narrow) %v5180_v62, 8  ;;  %v5231_v58 = vpop.permute.xlu1 %2562 }
 0x5c6   :  { %2122 = vxpose.xlu1.b32.cont [4/16] (narrow) %v5189_v36, 8  ;;  %v5233_v48 = vpop.permute.xlu1 %2570  ;;  %v2174_v36 = vpop.permute.xlu2 %2173 }
 0x5ce   :  { %2123 = vxpose.xlu1.b32.cont [5/16] (narrow) %v5200_v56, 8 }
 0x5d1   :  { %v5235_v62 = vpop.permute.xlu1 %2578 }
 0x5d6   :  { %2124 = vxpose.xlu1.b32.cont [6/16] (narrow) %v2092_v45, 8 }
 0x5de   :  { %2125 = vxpose.xlu1.b32.cont [7/16] (narrow) %v2095_v39, 8  ;;  %v2179_v39 = vpop.permute.xlu2 %2178 }
 0x5e6   :  { %2126 = vxpose.xlu1.b32.cont [8/16] (narrow) %v2097_v41, 8  ;;  %v2551_v34 = vpop.permute.xlu2 %2550 }
 0x5eb   :  { %v5237_v53 = vpop.permute.xlu1 %2223 }
 0x5ee   :  { %2127 = vxpose.xlu1.b32.cont [9/16] (narrow) %v2100_v57, 8  ;;  %v2555_v2 = vpop.permute.xlu2 %2554 }
 0x5f6   :  { %2128 = vxpose.xlu1.b32.cont [10/16] (narrow) %v2102_v31, 8 }
 0x5fe   :  { %2129 = vxpose.xlu1.b32.cont [11/16] (narrow) %v2105_v59, 8 }
 0x606   :  { %2130 = vxpose.xlu1.b32.cont [12/16] (narrow) %v2107_v33, 8 }
 0x60e   :  { %2131 = vxpose.xlu1.b32.cont [13/16] (narrow) %v2110_v35, 8  ;;  %v2543_v35 = vpop.permute.xlu0 %2542 }
 0x616   :  { %2132 = vxpose.xlu1.b32.cont [14/16] (narrow) %v2112_v54, 8 }
 0x61e   :  { %2133 = vxpose.xlu1.b32.cont [15/16] (narrow) %v5219_v32, 8 }
 0x626   :  { %2134 = vxpose.xlu1.b32.end [16/16] (narrow) %v5228_v21, 8 }
 0x652   :  { %v2135_v3 = vpop.trf.xlu1 }
 0x653   :  { %v5239_v27 = vperm.slane %v2135_v3, 0  ;;  %v5241_v56 = vperm.slane %v2135_v3, 1 }
 0x655   :  { %v2233_v49 = vadd.f32 %v5239_v27, %v2159_v61  ;;  %v2232_v45 = vadd.f32 %v5239_v27, %v2154_v6  ;;  %v2595_v14 = vadd.f32 %v5241_v56, %v2535_v4  ;;  %v2594_v52 = vadd.f32 %v5241_v56, %v2531_v1 }
 0x656   :  { %v2235_v63 = vadd.f32 %v5239_v27, %v2169_v26  ;;  %v2234_v59 = vadd.f32 %v5239_v27, %v2164_v25  ;;  %v2596_v54 = vadd.f32 %v5241_v56, %v2539_v19  ;;  %v2597_v37 = vadd.f32 %v5241_v56, %v2543_v35  ;;  %v2547_v25 = vpop.permute.xlu0 %2546 }
 0x657   :  { %vm2249_vm6 = vcmp.ge.f32.partialorder %v2233_v49, 0.0  ;;  %v2265_v13 = vmul.f32 0.2, %v2233_v49  ;;  %vm2248_vm11 = vcmp.ge.f32.partialorder %v2232_v45, 0.0  ;;  %v2264_v44 = vmul.f32 0.2, %v2232_v45 }
 0x658   :  { %v2627_v47 = vmul.f32 0.2, %v2595_v14  ;;  %v2626_v20 = vmul.f32 0.2, %v2594_v52  ;;  %vm2611_vm3 = vcmp.ge.f32.partialorder %v2595_v14, 0.0  ;;  %vm2610_vm5 = vcmp.ge.f32.partialorder %v2594_v52, 0.0 }
 0x659   :  { %v2281_v41 = vsel %vm2249_vm6, %v2233_v49, %v2265_v13  ;;  %v2280_v16 = vsel %vm2248_vm11, %v2232_v45, %v2264_v44  ;;  %v2267_v11 = vmul.f32 0.2, %v2235_v63  ;;  %v2266_v46 = vmul.f32 0.2, %v2234_v59  ;;  %v5293_v45 = vpop.permute.xlu2 %2188 }
 0x65a   :  { %v5249_v43 = vsel %vm184_vm0, %v2281_v41, -1e+30  ;;  %v5253_v57 = vsel %vm183_vm1, %v2280_v16, -1e+30  ;;  %v2643_v31 = vsel %vm2611_vm3, %v2595_v14, %v2627_v47  ;;  %v2642_v60 = vsel %vm2610_vm5, %v2594_v52, %v2626_v20 }
 0x65b   :  { %2314 = vmax.xlane.f32.xlu2 %v5249_v43  ;;  %2312 = vmax.xlane.f32.xlu0 %v5253_v57  ;;  %v5261_v0 = vsel %vm184_vm0, %v2643_v31, -1e+30  ;;  %v5265_v33 = vsel %vm183_vm1, %v2642_v60, -1e+30  ;;  %vm2251_vm5 = vcmp.ge.f32.partialorder %v2235_v63, 0.0  ;;  %vm2250_vm6 = vcmp.ge.f32.partialorder %v2234_v59, 0.0 }
 0x65c   :  { %v2283_v29 = vsel %vm2251_vm5, %v2235_v63, %v2267_v11  ;;  %v2282_v18 = vsel %vm2250_vm6, %v2234_v59, %v2266_v46  ;;  %v2628_v61 = vmul.f32 0.2, %v2596_v54  ;;  %v2629_v4 = vmul.f32 0.2, %v2597_v37 }
 0x65d   :  { %v5273_v40 = vsel %vm186_vm9, %v2283_v29, -1e+30  ;;  %v5277_v23 = vsel %vm185_vm8, %v2282_v18, -1e+30  ;;  %vm2612_vm0 = vcmp.ge.f32.partialorder %v2596_v54, 0.0  ;;  %vm2613_vm1 = vcmp.ge.f32.partialorder %v2597_v37, 0.0 }
 0x65e   :  { %v2644_v51 = vsel %vm2612_vm0, %v2596_v54, %v2628_v61  ;;  %v2645_v12 = vsel %vm2613_vm1, %v2597_v37, %v2629_v4  ;;  %v2237_v26 = vadd.f32 %v5239_v27, %v2179_v39  ;;  %v2236_v1 = vadd.f32 %v5239_v27, %v2174_v36  ;;  %v2184_v39 = vpop.permute.xlu0 %2183 }
 0x65f   :  { %v5285_v19 = vsel %vm185_vm8, %v2644_v51, -1e+30  ;;  %v5289_v3 = vsel %vm186_vm9, %v2645_v12, -1e+30  ;;  %v2600_v15 = vadd.f32 %v5241_v56, %v2555_v2  ;;  %v2598_v52 = vadd.f32 %v5241_v56, %v2547_v25 }
 0x660   :  { %v2269_v6 = vmul.f32 0.2, %v2237_v26  ;;  %v2268_v49 = vmul.f32 0.2, %v2236_v1  ;;  %vm2253_vm11 = vcmp.ge.f32.partialorder %v2237_v26, 0.0  ;;  %vm2252_vm3 = vcmp.ge.f32.partialorder %v2236_v1, 0.0 }
 0x661   :  { %v2238_v44 = vadd.f32 %v5239_v27, %v2184_v39  ;;  %v2632_v41 = vmul.f32 0.2, %v2600_v15  ;;  %v2630_v16 = vmul.f32 0.2, %v2598_v52  ;;  %vm2616_vm8 = vcmp.ge.f32.partialorder %v2600_v15, 0.0  ;;  %v2559_v20 = vpop.permute.xlu2 %2558 }
 0x662   :  { %v2285_v36 = vsel %vm2253_vm11, %v2237_v26, %v2269_v6  ;;  %v2284_v14 = vsel %vm2252_vm3, %v2236_v1, %v2268_v49  ;;  %vm2614_vm9 = vcmp.ge.f32.partialorder %v2598_v52, 0.0  ;;  %v2599_v63 = vadd.f32 %v5241_v56, %v2551_v34 }
 0x663   :  { %2676 = vmax.xlane.f32.xlu2 %v5261_v0  ;;  %2674 = vmax.xlane.f32.xlu0 %v5265_v33  ;;  %v5300_v17 = vsel %vm188_vm15, %v2285_v36, -1e+30  ;;  %v5304_v13 = vsel %vm187_vm12, %v2284_v14, -1e+30  ;;  %v2270_v47 = vmul.f32 0.2, %v2238_v44  ;;  %v2648_v31 = vsel %vm2616_vm8, %v2600_v15, %v2632_v41 }
 0x664   :  { %v2646_v60 = vsel %vm2614_vm9, %v2598_v52, %v2630_v16  ;;  %vm2254_vm5 = vcmp.ge.f32.partialorder %v2238_v44, 0.0  ;;  %v5314_v59 = vsel %vm189_vm7, %v2648_v31, -1e+30  ;;  %v2601_v35 = vadd.f32 %v5241_v56, %v2559_v20 }
 0x665   :  { %v5318_v11 = vsel %vm187_vm12, %v2646_v60, -1e+30  ;;  %v2286_v46 = vsel %vm2254_vm5, %v2238_v44, %v2270_v47  ;;  %v2631_v29 = vmul.f32 0.2, %v2599_v63  ;;  %vm2615_vm0 = vcmp.ge.f32.partialorder %v2599_v63, 0.0 }
 0x666   :  { %v5325_v34 = vsel %vm189_vm7, %v2286_v46, -1e+30  ;;  %v2633_v28 = vmul.f32 0.2, %v2601_v35  ;;  %vm2617_vm12 = vcmp.ge.f32.partialorder %v2601_v35, 0.0  ;;  %v2194_v1 = vpop.permute.xlu0 %2193  ;;  %v2239_v52 = vadd.f32 %v5239_v27, %v5293_v45 }
 0x667   :  { %v2647_v54 = vsel %vm2615_vm0, %v2599_v63, %v2631_v29  ;;  %v2240_v20 = vadd.f32 %v5239_v27, %v2194_v1  ;;  %v2604_v63 = vadd.f32 %v5241_v56, %v5233_v48  ;;  %vm5796_vm5 = vcmp.gt.f32.partialorder %v4912_v38, 0.0 }
 0x668   :  { %v5334_v61 = vsel %vm188_vm15, %v2647_v54, -1e+30  ;;  %v2649_v4 = vsel %vm2617_vm12, %v2601_v35, %v2633_v28  ;;  %v2271_v44 = vmul.f32 0.2, %v2239_v52  ;;  %vm2255_vm1 = vcmp.ge.f32.partialorder %v2239_v52, 0.0 }
 0x669   :  { %v2199_v37 = vpop.permute.xlu2 %2198  ;;  %v5341_v51 = vsel %vm190_vm4, %v2649_v4, -1e+30  ;;  %v2272_v60 = vmul.f32 0.2, %v2240_v20  ;;  %vm2256_vm3 = vcmp.ge.f32.partialorder %v2240_v20, 0.0  ;;  %v2246_v5 = vadd.f32 %v5239_v27, %v5237_v53 }
 0x66a   :  { %v2241_v7 = vadd.f32 %v5239_v27, %v2199_v37  ;;  %v2636_v37 = vmul.f32 0.2, %v2604_v63 }
 0x66b   :  { %2318 = vmax.xlane.f32.xlu2 %v5273_v40  ;;  %2316 = vmax.xlane.f32.xlu0 %v5277_v23  ;;  %v2288_v54 = vsel %vm2256_vm3, %v2240_v20, %v2272_v60 }
 0x66c   :  { %v2273_v12 = vmul.f32 0.2, %v2241_v7  ;;  %vm2257_vm7 = vcmp.ge.f32.partialorder %v2241_v7, 0.0 }
 0x66e   :  { %v2289_v26 = vsel %vm2257_vm7, %v2241_v7, %v2273_v12  ;;  %v2567_v25 = vpop.permute.xlu0 %2566  ;;  %vm2262_vm7 = vcmp.ge.f32.partialorder %v2246_v5, 0.0 }
 0x66f   :  { %v5346_v42 = vsel %vm192_vm14, %v2289_v26, -1e+30  ;;  %v2603_v4 = vadd.f32 %v5241_v56, %v2567_v25  ;;  %v2606_v25 = vadd.f32 %v5241_v56, %v5235_v62 }
 0x671   :  { %v2209_v6 = vpop.permute.xlu2 %2208  ;;  %vm2619_vm9 = vcmp.ge.f32.partialorder %v2603_v4, 0.0 }
 0x672   :  { %v2243_v15 = vadd.f32 %v5239_v27, %v2209_v6 }
 0x673   :  { %2678 = vmax.xlane.f32.xlu0 %v5285_v19  ;;  %2680 = vmax.xlane.f32.xlu2 %v5289_v3 }
 0x674   :  { %v2275_v39 = vmul.f32 0.2, %v2243_v15  ;;  %vm2259_vm15 = vcmp.ge.f32.partialorder %v2243_v15, 0.0 }
 0x676   :  { %v2204_v49 = vpop.permute.xlu0 %2203  ;;  %v2291_v41 = vsel %vm2259_vm15, %v2243_v15, %v2275_v39  ;;  %vm5800_vm15 = vcmp.gt.f32.partialorder %v4922_v8, 0.0 }
 0x677   :  { %v5362_v47 = vsel %vm194_vm2, %v2291_v41, -1e+30  ;;  %v2242_v41 = vadd.f32 %v5239_v27, %v2204_v49 }
 0x679   :  { %3981 = vset.pattern.permute.xlu1 %v5795_v24  ;;  %v2602_v24 = vadd.f32 %v5241_v56, %v5231_v58  ;;  %v5352_v36 = vpop.permute.xlu2 %2574  ;;  %v2274_v49 = vmul.f32 0.2, %v2242_v41  ;;  %vm2258_vm0 = vcmp.ge.f32.partialorder %v2242_v41, 0.0 }
 0x67b   :  { %2322 = vmax.xlane.f32.xlu0 %v5300_v17  ;;  %2320 = vmax.xlane.f32.xlu2 %v5304_v13  ;;  %v2634_v58 = vmul.f32 0.2, %v2602_v24  ;;  %vm2618_vm6 = vcmp.ge.f32.partialorder %v2602_v24, 0.0  ;;  %v2290_v30 = vsel %vm2258_vm0, %v2242_v41, %v2274_v49 }
 0x67d   :  { %v2650_v18 = vsel %vm2618_vm6, %v2602_v24, %v2634_v58  ;;  %v2287_v24 = vsel %vm2255_vm1, %v2239_v52, %v2271_v44  ;;  %vm2622_vm6 = vcmp.ge.f32.partialorder %v2606_v25, 0.0 }
 0x67e   :  { %v5330_v2 = vsel %vm191_vm10, %v2650_v18, -1e+30  ;;  %v5354_v14 = vpop.permute.xlu0 %2218  ;;  %v5368_v45 = vsel %vm190_vm4, %v2287_v24, -1e+30  ;;  %vm2620_vm4 = vcmp.ge.f32.partialorder %v2604_v63, 0.0 }
 0x67f   :  { %v2652_v26 = vsel %vm2620_vm4, %v2604_v63, %v2636_v37  ;;  %vm5802_vm4 = vmmov %vm5800_vm15 }
 0x680   :  { %v5393_v10 = vsel %vm5796_vm5, %v2652_v26, -1e+30 }
 0x683   :  { %2686 = vmax.xlane.f32.xlu0 %v5314_v59  ;;  %2682 = vmax.xlane.f32.xlu2 %v5318_v11 }
 0x686   :  { %2324 = vmax.xlane.f32.xlu1 %v5325_v34 }
 0x68b   :  { %2690 = vmax.xlane.f32.xlu0 %v5330_v2  ;;  %2684 = vmax.xlane.f32.xlu2 %v5334_v61 }
 0x68e   :  { %2688 = vmax.xlane.f32.xlu1 %v5341_v51 }
 0x696   :  { %2330 = vmax.xlane.f32.xlu1 %v5346_v42 }
 0x69f   :  { %2586 = vperm.xlu0 %3979, %v5219_v32   ;;  %v2214_v32 = vpop.permute.xlu2 %2213 }
 0x6a0   :  { %v2244_v16 = vadd.f32 %v5239_v27, %v2214_v32 }
 0x6a2   :  { %v2276_v31 = vmul.f32 0.2, %v2244_v16  ;;  %vm2260_vm11 = vcmp.ge.f32.partialorder %v2244_v16, 0.0 }
 0x6a3   :  { %2228 = vperm.xlu2 %3978, %v5228_v21  }
 0x6a4   :  { %v2292_v46 = vsel %vm2260_vm11, %v2244_v16, %v2276_v31  ;;  %vm5801_vm11 = vcmp.gt.f32.partialorder %v5064_v9, 0.0 }
 0x6a5   :  { %v5378_v55 = vsel %vm195_vm13, %v2292_v46, -1e+30 }
 0x6af   :  { %2590 = vperm.xlu1 %3981, %v5228_v21   ;;  %v2583_v21 = vpop.permute.xlu0 %2582 }
 0x6b0   :  { %v2607_v35 = vadd.f32 %v5241_v56, %v2583_v21 }
 0x6b2   :  { %v2639_v12 = vmul.f32 0.2, %v2607_v35  ;;  %vm2623_vm8 = vcmp.ge.f32.partialorder %v2607_v35, 0.0 }
 0x6b4   :  { %v2655_v1 = vsel %vm2623_vm8, %v2607_v35, %v2639_v12 }
 0x6c9   :  { %2334 = vmax.xlane.f32.xlu0 %v5362_v47 }
 0x6cc   :  { %2326 = vmax.xlane.f32.xlu2 %v5368_v45 }
 0x6ce   :  { %v2315_v58 = vpop.xlane.xlu2 %2314  ;;  %v2313_v29 = vpop.xlane.xlu0 %2312 }
 0x6cf   :  { %v2345_v28 = vsub.f32 %v5249_v43, %v2315_v58  ;;  %v2344_v18 = vsub.f32 %v5253_v57, %v2313_v29  ;;  %v5384_v43 = vsel %vm191_vm10, %v2288_v54, -1e+30  ;;  %v2635_v57 = vmul.f32 0.2, %v2603_v4 }
 0x6d0   :  { %vm5797_vm10 = vcmp.gt.f32.partialorder %v5030_v50, 0.0  ;;  %v2605_v29 = vadd.f32 %v5241_v56, %v5352_v36 }
 0x6d1   :  { %v2362_v7 = vmul.f32 1.442695, %v2345_v28  ;;  %v2360_v48 = vmul.f32 1.442695, %v2344_v18  ;;  %2336 = vmax.xlane.f32.xlu0 %v5378_v55  ;;  %v5397_v32 = vsel %vm5797_vm10, %v2655_v1, -1e+30  ;;  %v2651_v44 = vsel %vm2619_vm9, %v2603_v4, %v2635_v57  ;;  %vm5803_vm9 = vmmov %vm5801_vm11 }
 0x6d2   :  { %v5410_v20 = vsel %vm192_vm14, %v2651_v44, -1e+30  ;;  %vm5798_vm14 = vmmov %vm5796_vm5  ;;  %v2245_v57 = vadd.f32 %v5239_v27, %v5354_v14 }
 0x6d3   :  { %4114 = vpow2.f32 %v2362_v7  ;;  %v5430_v22 = vsel %vm5798_vm14, %v2290_v30, -1e+30 }
 0x6d4   :  { %4116 = vpow2.f32 %v2360_v48  ;;  %2328 = vmax.xlane.f32.xlu2 %v5384_v43  ;;  %vm2261_vm12 = vcmp.ge.f32.partialorder %v2245_v57, 0.0 }
 0x6d6   :  { %v2677_v6 = vpop.xlane.xlu2 %2676  ;;  %v2675_v15 = vpop.xlane.xlu0 %2674 }
 0x6d7   :  { %v2707_v52 = vsub.f32 %v5261_v0, %v2677_v6  ;;  %v2706_v39 = vsub.f32 %v5265_v33, %v2675_v15  ;;  %v2638_v0 = vmul.f32 0.2, %v2606_v25 }
 0x6d9   :  { %v5400_v16 = vpop.eup %4114  ;;  %v2724_v62 = vmul.f32 1.442695, %v2707_v52  ;;  %v2722_v21 = vmul.f32 1.442695, %v2706_v39  ;;  %2694 = vmax.xlane.f32.xlu1 %v5393_v10  ;;  %2700 = vmax.xlane.f32.xlu0 %v5397_v32  ;;  %v2654_v31 = vsel %vm2622_vm6, %v2606_v25, %v2638_v0 }
 0x6da   :  { %v5404_v33 = vpop.eup %4116  ;;  %v5417_v58 = vsel %vm195_vm13, %v2654_v31, -1e+30  ;;  %vm2621_vm13 = vcmp.ge.f32.partialorder %v2605_v29, 0.0 }
 0x6db   :  { %v2424_v24 = vpack.c.bf16 %v5400_v16, %v5404_v33  ;;  %4118 = vpow2.f32 %v2724_v62 }
 0x6dc   :  { %4120 = vpow2.f32 %v2722_v21  ;;  %2692 = vmax.xlane.f32.xlu2 %v5410_v20 }
 0x6dd   :  { %2440 = vmatmul.bf16.vlgmr.msrb.gmra.mxu2 %v2424_v24 }
 0x6de   :  { %v2319_v60 = vpop.xlane.xlu2 %2318  ;;  %v2317_v63 = vpop.xlane.xlu0 %2316 }
 0x6df   :  { %v2347_v46 = vsub.f32 %v5273_v40, %v2319_v60  ;;  %v2346_v35 = vsub.f32 %v5277_v23, %v2317_v63  ;;  %v2637_v23 = vmul.f32 0.2, %v2605_v29 }
 0x6e1   :  { %v5421_v28 = vpop.eup %4118  ;;  %v2366_v18 = vmul.f32 1.442695, %v2347_v46  ;;  %v2364_v54 = vmul.f32 1.442695, %v2346_v35  ;;  %2698 = vmax.xlane.f32.xlu1 %v5417_v58  ;;  %v2653_v12 = vsel %vm2621_vm13, %v2605_v29, %v2637_v23 }
 0x6e2   :  { %v5424_v37 = vpop.eup %4120  ;;  %v5443_v6 = vsel %vm194_vm2, %v2653_v12, -1e+30  ;;  %vm5799_vm2 = vmmov %vm5797_vm10 }
 0x6e3   :  { %v2786_v40 = vpack.c.bf16 %v5421_v28, %v5424_v37  ;;  %4122 = vpow2.f32 %v2366_v18 }
 0x6e4   :  { %4124 = vpow2.f32 %v2364_v54  ;;  %2332 = vmax.xlane.f32.xlu2 %v5430_v22 }
 0x6e5   :  { %2802 = vmatmul.bf16.vlgmr.msrb.gmra.mxu3 %v2786_v40 }
 0x6e6   :  { %v2681_v36 = vpop.xlane.xlu2 %2680  ;;  %v2679_v4 = vpop.xlane.xlu0 %2678 }
 0x6e7   :  { %v2709_v7 = vsub.f32 %v5289_v3, %v2681_v36  ;;  %v2708_v48 = vsub.f32 %v5285_v19, %v2679_v4  ;;  %v2277_v19 = vmul.f32 0.2, %v2245_v57 }
 0x6e9   :  { %v5437_v26 = vpop.eup %4122  ;;  %v2728_v38 = vmul.f32 1.442695, %v2709_v7  ;;  %v2726_v1 = vmul.f32 1.442695, %v2708_v48  ;;  %v2293_v44 = vsel %vm2261_vm12, %v2245_v57, %v2277_v19 }
 0x6ea   :  { %v5439_v25 = vpop.eup %4124  ;;  %v5458_v24 = vsel %vm5799_vm2, %v2293_v44, -1e+30 }
 0x6eb   :  { %4126 = vpow2.f32 %v2728_v38  ;;  %v2425_v3 = vpack.c.bf16 %v5437_v26, %v5439_v25 }
 0x6ec   :  { %4128 = vpow2.f32 %v2726_v1  ;;  %2696 = vmax.xlane.f32.xlu2 %v5443_v6 }
 0x6ed   :  { %2445 = vmatmul.bf16.gmra.mxu2 %v2425_v3 }
 0x6ee   :  { %v2321_v14 = vpop.xlane.xlu2 %2320  ;;  %v2323_v15 = vpop.xlane.xlu0 %2322 }
 0x6ef   :  { %v2348_v52 = vsub.f32 %v5304_v13, %v2321_v14  ;;  %v2349_v39 = vsub.f32 %v5300_v17, %v2323_v15  ;;  %v2278_v17 = vmul.f32 0.2, %v2246_v5 }
 0x6f1   :  { %v5452_v41 = vpop.eup %4126  ;;  %v2368_v62 = vmul.f32 1.442695, %v2348_v52  ;;  %v2370_v21 = vmul.f32 1.442695, %v2349_v39  ;;  %v2294_v49 = vsel %vm2262_vm7, %v2246_v5, %v2278_v17 }
 0x6f2   :  { %v5454_v0 = vpop.eup %4128  ;;  %v5468_v50 = vsel %vm5800_vm15, %v2294_v49, -1e+30 }
 0x6f3   :  { %4130 = vpow2.f32 %v2368_v62  ;;  %v2787_v13 = vpack.c.bf16 %v5452_v41, %v5454_v0 }
 0x6f4   :  { %4132 = vpow2.f32 %v2370_v21  ;;  %2338 = vmax.xlane.f32.xlu2 %v5458_v24 }
 0x6f5   :  { %2807 = vmatmul.bf16.gmra.mxu3 %v2787_v13 }
 0x6f6   :  { %v2683_v53 = vpop.xlane.xlu2 %2682  ;;  %v2687_v18 = vpop.xlane.xlu0 %2686 }
 0x6f7   :  { %v2710_v63 = vsub.f32 %v5318_v11, %v2683_v53  ;;  %v2712_v1 = vsub.f32 %v5314_v59, %v2687_v18 }
 0x6f9   :  { %v5463_v31 = vpop.eup %4130  ;;  %v2325_v35 = vpop.xlane.xlu1 %2324  ;;  %v2730_v30 = vmul.f32 1.442695, %v2710_v63 }
 0x6fa   :  { %v4133_v60 = vpop.eup %4132  ;;  %v2350_v8 = vsub.f32 %v5325_v34, %v2325_v35 }
 0x6fb   :  { %v2426_v46 = vpack.c.bf16 %v4133_v60, %v5463_v31  ;;  %4134 = vpow2.f32 %v2730_v30 }
 0x6fc   :  { %2340 = vmax.xlane.f32.xlu2 %v5468_v50 }
 0x6fd   :  { %2450 = vmatmul.bf16.gmra.mxu2 %v2426_v46  ;;  %v3897_v46 = vld [vmem:[#allocation13 + $0x30] sm:$0xff] }
 0x6fe   :  { %v2685_v29 = vpop.xlane.xlu2 %2684  ;;  %v2691_v48 = vpop.xlane.xlu0 %2690 }
 0x6ff   :  { %v2711_v54 = vsub.f32 %v5334_v61, %v2685_v29  ;;  %v2714_v34 = vsub.f32 %v5330_v2, %v2691_v48 }
 0x701   :  { %v2732_v40 = vmul.f32 1.442695, %v2711_v54  ;;  %v2689_v23 = vpop.xlane.xlu1 %2688  ;;  %v4135_v4 = vpop.eup %4134  ;;  %v2738_v9 = vmul.f32 1.442695, %v2714_v34 }
 0x702   :  { %v2713_v12 = vsub.f32 %v5341_v51, %v2689_v23 }
 0x703   :  { %4136 = vpow2.f32 %v2732_v40 }
 0x704   :  { %v2736_v19 = vmul.f32 1.442695, %v2713_v12 }
 0x706   :  { %v2229_v11 = vpop.permute.xlu2 %2228  ;;  %4138 = vpow2.f32 %v2736_v19 }
 0x707   :  { %v2247_v36 = vadd.f32 %v5239_v27, %v2229_v11  ;;  %v2734_v27 = vmul.f32 1.442695, %v2712_v1 }
 0x709   :  { %v5474_v7 = vpop.eup %4136  ;;  %v2279_v57 = vmul.f32 0.2, %v2247_v36  ;;  %vm2263_vm1 = vcmp.ge.f32.partialorder %v2247_v36, 0.0  ;;  %4140 = vpow2.f32 %v2734_v27  ;;  %v2331_v5 = vpop.xlane.xlu1 %2330 }
 0x70a   :  { %v2788_v38 = vpack.c.bf16 %v5474_v7, %v4135_v4 }
 0x70b   :  { %v2295_v61 = vsel %vm2263_vm1, %v2247_v36, %v2279_v57  ;;  %v3896_v57 = vld [vmem:[#allocation13 + $0x28] sm:$0xff] }
 0x70c   :  { %2812 = vmatmul.bf16.gmra.mxu3 %v2788_v38  ;;  %v5481_v3 = vsel %vm5801_vm11, %v2295_v61, -1e+30  ;;  %v4139_v52 = vpop.eup %4138 }
 0x70d   :  { %2342 = vmax.xlane.f32.xlu1 %v5481_v3 }
 0x70f   :  { %v5491_v44 = vpop.eup %4140 }
 0x710   :  { %v2789_v62 = vpack.c.bf16 %v4139_v52, %v5491_v44 }
 0x711   :  { %v2587_v14 = vpop.permute.xlu0 %2586 }
 0x712   :  { %v2608_v51 = vadd.f32 %v5241_v56, %v2587_v14 }
 0x714   :  { %v2640_v15 = vmul.f32 0.2, %v2608_v51  ;;  %vm2624_vm3 = vcmp.ge.f32.partialorder %v2608_v51, 0.0 }
 0x715   :  { %2392 = vadd.xlane.f32.xlu1 %v5404_v33 }
 0x716   :  { %v2656_v59 = vsel %vm2624_vm3, %v2608_v51, %v2640_v15 }
 0x717   :  { %v5488_v39 = vsel %vm5802_vm4, %v2656_v59, -1e+30 }
 0x718   :  { %2702 = vmax.xlane.f32.xlu0 %v5488_v39 }
 0x71c   :  { %2817 = vmatmul.bf16.gmra.mxu3 %v2789_v62  ;;  %v3895_v62 = vld [vmem:[#allocation13 + $0x20] sm:$0xff] }
 0x71d   :  { %2756 = vadd.xlane.f32.xlu1 %v5421_v28  ;;  %v2372_v28 = vmul.f32 1.442695, %v2350_v8 }
 0x71f   :  { %4142 = vpow2.f32 %v2372_v28 }
 0x720   :  { %2394 = vadd.xlane.f32.xlu0 %v5400_v16  ;;  %v3898_v16 = vld [vmem:[#allocation13 + $0x38] sm:$0xff]  ;;  %4144 = vpow2.f32 %v2738_v9 }
 0x721   :  { %v2591_v21 = vpop.permute.xlu1 %2590  ;;  %3051 = vmatpush.bf16.msrb.mxu0 %v3898_v16 }
 0x722   :  { %v2609_v33 = vadd.f32 %v5241_v56, %v2591_v21 }
 0x724   :  { %v2641_v13 = vmul.f32 0.2, %v2609_v33  ;;  %vm2625_vm8 = vcmp.ge.f32.partialorder %v2609_v33, 0.0 }
 0x725   :  { %2758 = vadd.xlane.f32.xlu1 %v5454_v0  ;;  %v4143_v56 = vpop.eup %4142  ;;  %3052 = vmatpush.bf16.msrb.mxu0 %v3897_v46 }
 0x726   :  { %v2657_v17 = vsel %vm2625_vm8, %v2609_v33, %v2641_v13  ;;  %v4145_v63 = vpop.eup %4144 }
 0x727   :  { %v5501_v53 = vsel %vm5803_vm9, %v2657_v17, -1e+30 }
 0x728   :  { %2704 = vmax.xlane.f32.xlu2 %v5501_v53  ;;  %2396 = vadd.xlane.f32.xlu0 %v5439_v25 }
 0x729   :  { %3053 = vmatpush.bf16.msrb.mxu0 %v3896_v57 }
 0x72d   :  { %2402 = vadd.xlane.f32.xlu1 %v4133_v60  ;;  %3054 = vmatpush.bf16.msrb.mxu0 %v3895_v62 }
 0x730   :  { %2754 = vadd.xlane.f32.xlu2 %v5424_v37  ;;  %2760 = vadd.xlane.f32.xlu0 %v5452_v41 }
 0x735   :  { %2404 = vadd.xlane.f32.xlu1 %v4143_v56 }
 0x738   :  { %2398 = vadd.xlane.f32.xlu2 %v5437_v26  ;;  %2762 = vadd.xlane.f32.xlu0 %v4135_v4 }
 0x73c   :  { %v2335_v0 = vpop.xlane.xlu0 %2334 }
 0x73d   :  { %2768 = vadd.xlane.f32.xlu1 %v4139_v52  ;;  %v2355_v25 = vsub.f32 %v5362_v47, %v2335_v0  ;;  %v2353_v47 = vsub.f32 %v5346_v42, %v2331_v5 }
 0x73f   :  { %v2327_v49 = vpop.xlane.xlu2 %2326  ;;  %v2382_v41 = vmul.f32 1.442695, %v2355_v25  ;;  %v2378_v23 = vmul.f32 1.442695, %v2353_v47 }
 0x740   :  { %v2351_v37 = vsub.f32 %v5368_v45, %v2327_v49  ;;  %2400 = vadd.xlane.f32.xlu2 %v5463_v31 }
 0x742   :  { %v2374_v60 = vmul.f32 1.442695, %v2351_v37 }
 0x744   :  { %4146 = vpow2.f32 %v2374_v60  ;;  %v2337_v2 = vpop.xlane.xlu0 %2336 }
 0x745   :  { %2770 = vadd.xlane.f32.xlu1 %v4145_v63  ;;  %4148 = vpow2.f32 %v2382_v41  ;;  %v2356_v26 = vsub.f32 %v5378_v55, %v2337_v2 }
 0x747   :  { %v2329_v35 = vpop.xlane.xlu2 %2328  ;;  %v2384_v31 = vmul.f32 1.442695, %v2356_v26 }
 0x748   :  { %v2352_v30 = vsub.f32 %v5384_v43, %v2329_v35  ;;  %2764 = vadd.xlane.f32.xlu2 %v5474_v7 }
 0x74a   :  { %v4147_v45 = vpop.eup %4146  ;;  %v2376_v29 = vmul.f32 1.442695, %v2352_v30 }
 0x74b   :  { %2406 = vadd.xlane.f32.xlu0 %v4147_v45  ;;  %v2427_v18 = vpack.c.bf16 %v4147_v45, %v4143_v56  ;;  %v4149_v54 = vpop.eup %4148 }
 0x74c   :  { %4150 = vpow2.f32 %v2376_v29  ;;  %v2701_v40 = vpop.xlane.xlu0 %2700  ;;  %v2695_v43 = vpop.xlane.xlu1 %2694 }
 0x74d   :  { %2455 = vmatmul.bf16.gmra.mxu2 %v2427_v18  ;;  %2414 = vadd.xlane.f32.xlu1 %v4149_v54  ;;  %4152 = vpow2.f32 %v2384_v31  ;;  %v2719_v55 = vsub.f32 %v5397_v32, %v2701_v40  ;;  %v2716_v7 = vsub.f32 %v5393_v10, %v2695_v43 }
 0x74e   :  { %4154 = vpow2.f32 %v2378_v23 }
 0x74f   :  { %v2693_v11 = vpop.xlane.xlu2 %2692  ;;  %v2748_v48 = vmul.f32 1.442695, %v2719_v55  ;;  %v2742_v32 = vmul.f32 1.442695, %v2716_v7 }
 0x750   :  { %v2715_v36 = vsub.f32 %v5410_v20, %v2693_v11  ;;  %2766 = vadd.xlane.f32.xlu2 %v5491_v44 }
 0x752   :  { %v4151_v42 = vpop.eup %4150  ;;  %v2740_v4 = vmul.f32 1.442695, %v2715_v36  ;;  %v3891_v36 = vld [vmem:[#allocation13] sm:$0xff] }
 0x753   :  { %2408 = vadd.xlane.f32.xlu0 %v4151_v42  ;;  %v4153_v12 = vpop.eup %4152 }
 0x754   :  { %4156 = vpow2.f32 %v2740_v4  ;;  %v4155_v38 = vpop.eup %4154  ;;  %v2699_v15 = vpop.xlane.xlu1 %2698 }
 0x755   :  { %2416 = vadd.xlane.f32.xlu1 %v4153_v12  ;;  %4158 = vpow2.f32 %v2748_v48  ;;  %v2428_v27 = vpack.c.bf16 %v4155_v38, %v4151_v42 }
 0x756   :  { %4160 = vpow2.f32 %v2742_v32 }
 0x757   :  { %v2333_v1 = vpop.xlane.xlu2 %2332 }
 0x758   :  { %v2354_v20 = vsub.f32 %v5430_v22, %v2333_v1  ;;  %2410 = vadd.xlane.f32.xlu2 %v4155_v38  ;;  %v2718_v22 = vsub.f32 %v5417_v58, %v2699_v15 }
 0x75a   :  { %v4157_v61 = vpop.eup %4156  ;;  %v2380_v19 = vmul.f32 1.442695, %v2354_v20  ;;  %v2746_v21 = vmul.f32 1.442695, %v2718_v22 }
 0x75b   :  { %2772 = vadd.xlane.f32.xlu0 %v4157_v61  ;;  %v2790_v10 = vpack.c.bf16 %v4157_v61, %v4145_v63  ;;  %v4159_v14 = vpop.eup %4158 }
 0x75c   :  { %4162 = vpow2.f32 %v2380_v19  ;;  %v4161_v52 = vpop.eup %4160  ;;  %v5531_v19 = vld [vmem:[%s5783_s7] ss:$0 sm:$0xff] }
 0x75d   :  { %2460 = vmatmul.bf16.gmra.mxu2 %v2428_v27  ;;  %2822 = vmatmul.bf16.gmra.mxu3 %v2790_v10 }
 0x75e   :  { %2780 = vadd.xlane.f32.xlu1 %v4159_v14 }
 0x75f   :  { %v2697_v51 = vpop.xlane.xlu2 %2696 }
 0x760   :  { %v2717_v59 = vsub.f32 %v5443_v6, %v2697_v51  ;;  %v2441_v47 = vpop.f32.mrf.mxu2 }
 0x762   :  { %v4163_v44 = vpop.eup %4162  ;;  %v2744_v5 = vmul.f32 1.442695, %v2717_v59 }
 0x763   :  { %2412 = vadd.xlane.f32.xlu2 %v4163_v44  ;;  %2774 = vadd.xlane.f32.xlu0 %v4161_v52  ;;  %v2429_v28 = vpack.c.bf16 %v4149_v54, %v4163_v44 }
 0x764   :  { %4164 = vpow2.f32 %v2744_v5 }
 0x765   :  { %4166 = vpow2.f32 %v2746_v21 }
 0x767   :  { %v2339_v33 = vpop.xlane.xlu2 %2338 }
 0x768   :  { %v2357_v13 = vsub.f32 %v5458_v24, %v2339_v33  ;;  %v3894_v24 = vld [vmem:[#allocation13 + $0x18] sm:$0xff]  ;;  %v2803_v45 = vpop.f32.mrf.mxu3  ;;  %v2443_v54 = vpop.f32.mrf.mxu2 }
 0x769   :  { %3055 = vmatpush.bf16.msrb.mxu0 %v3894_v24 }
 0x76a   :  { %v4165_v8 = vpop.eup %4164  ;;  %v2386_v17 = vmul.f32 1.442695, %v2357_v13 }
 0x76b   :  { %2776 = vadd.xlane.f32.xlu2 %v4165_v8  ;;  %v2791_v6 = vpack.c.bf16 %v4165_v8, %v4161_v52  ;;  %v4167_v16 = vpop.eup %4166 }
 0x76c   :  { %4168 = vpow2.f32 %v2386_v17  ;;  %v2792_v49 = vpack.c.bf16 %v4159_v14, %v4167_v16 }
 0x76d   :  { %2465 = vmatmul.bf16.gmra.mxu2 %v2429_v28  ;;  %2827 = vmatmul.bf16.gmra.mxu3 %v2791_v6 }
 0x76f   :  { %v2341_v56 = vpop.xlane.xlu2 %2340 }
 0x770   :  { %v2358_v58 = vsub.f32 %v5468_v50, %v2341_v56  ;;  %v3893_v50 = vld [vmem:[#allocation13 + $0x10] sm:$0xff]  ;;  %v2805_v23 = vpop.f32.mrf.mxu3  ;;  %v2446_v7 = vpop.f32.mrf.mxu2 }
 0x771   :  { %3056 = vmatpush.bf16.msrb.mxu0 %v3893_v50 }
 0x772   :  { %v4169_v34 = vpop.eup %4168  ;;  %v2388_v9 = vmul.f32 1.442695, %v2358_v58 }
 0x773   :  { %2778 = vadd.xlane.f32.xlu2 %v4167_v16  ;;  %2418 = vadd.xlane.f32.xlu0 %v4169_v34  ;;  %v2430_v25 = vpack.c.bf16 %v4169_v34, %v4153_v12 }
 0x774   :  { %4170 = vpow2.f32 %v2388_v9 }
 0x778   :  { %v2808_v32 = vpop.f32.mrf.mxu3  ;;  %v2448_v59 = vpop.f32.mrf.mxu2 }
 0x77a   :  { %v4171_v0 = vpop.eup %4170 }
 0x77b   :  { %2420 = vadd.xlane.f32.xlu0 %v4171_v0 }
 0x77d   :  { %2470 = vmatmul.bf16.gmra.mxu2 %v2430_v25  ;;  %2832 = vmatmul.bf16.gmra.mxu3 %v2792_v49 }
 0x780   :  { %v2343_v37 = vpop.xlane.xlu1 %2342  ;;  %v2810_v33 = vpop.f32.mrf.mxu3 }
 0x781   :  { %v2359_v41 = vsub.f32 %v5481_v3, %v2343_v37  ;;  %v3892_v3 = vld [vmem:[#allocation13 + $0x8] sm:$0xff] }
 0x782   :  { %3057 = vmatpush.bf16.msrb.mxu0 %v3892_v3 }
 0x783   :  { %v2390_v60 = vmul.f32 1.442695, %v2359_v41  ;;  %v2451_v41 = vpop.f32.mrf.mxu2 }
 0x785   :  { %4172 = vpow2.f32 %v2390_v60 }
 0x786   :  { %3058 = vmatpush.bf16.msrb.mxu0 %v3891_v36 }
 0x788   :  { %v2393_v26 = vpop.xlane.xlu1 %2392 }
 0x78b   :  { %v2703_v63 = vpop.xlane.xlu0 %2702  ;;  %v4173_v2 = vpop.eup %4172 }
 0x78c   :  { %v2720_v46 = vsub.f32 %v5488_v39, %v2703_v63  ;;  %2422 = vadd.xlane.f32.xlu2 %v4173_v2  ;;  %v2431_v35 = vpack.c.bf16 %v4173_v2, %v4171_v0 }
 0x78e   :  { %v2750_v30 = vmul.f32 1.442695, %v2720_v46  ;;  %2475 = vmatmul.bf16.gmra.mxu2 %v2431_v35 }
 0x78f   :  { %v2813_v63 = vpop.f32.mrf.mxu3 }
 0x790   :  { %4174 = vpow2.f32 %v2750_v30  ;;  %v2757_v18 = vpop.xlane.xlu1 %2756 }
 0x793   :  { %v2395_v31 = vpop.xlane.xlu0 %2394 }
 0x794   :  { %4176 = vrcp.f32 %v2395_v31  ;;  %v3906_v31 = vld [vmem:[#allocation14 + $0x38] sm:$0xff] }
 0x795   :  { %4178 = vrcp.f32 %v2757_v18  ;;  %v2453_v18 = vpop.f32.mrf.mxu2  ;;  %3224 = vmatpush.bf16.msrb.mxu1 %v3906_v31 }
 0x796   :  { %v4175_v29 = vpop.eup %4174 }
 0x797   :  { %2782 = vadd.xlane.f32.xlu1 %v4175_v29 }
 0x798   :  { %v2759_v1 = vpop.xlane.xlu1 %2758 }
 0x79a   :  { %v4177_v11 = vpop.eup %4176 }
 0x79b   :  { %v2705_v40 = vpop.xlane.xlu2 %2704  ;;  %v2397_v55 = vpop.xlane.xlu0 %2396  ;;  %v2498_v4 = vmul.f32 %v4177_v11, %v2443_v54 }
 0x79c   :  { %v2721_v39 = vsub.f32 %v5501_v53, %v2705_v40  ;;  %v4179_v42 = vpop.eup %4178 }
 0x79d   :  { %v2860_v48 = vmul.f32 %v4179_v42, %v2805_v23  ;;  %v2815_v23 = vpop.f32.mrf.mxu3 }
 0x79e   :  { %v2752_v43 = vmul.f32 1.442695, %v2721_v39 }
 0x79f   :  { %v2876_v57 = vadd.f32 %v2860_v48, %v2498_v4 }
 0x7a0   :  { %4180 = vpow2.f32 %v2752_v43  ;;  %v2403_v49 = vpop.xlane.xlu1 %2402 }
 0x7a1   :  { %4182 = vrcp.f32 %v2393_v26  ;;  %v2892_v27 = vmul.f32 0.5, %v2876_v57 }
 0x7a3   :  { %v2755_v12 = vpop.xlane.xlu2 %2754  ;;  %v2761_v20 = vpop.xlane.xlu0 %2760  ;;  %v2912_v52 = vadd.f32 %v5531_v19, %v2892_v27 }
 0x7a4   :  { %4184 = vrcp.f32 %v2755_v12 }
 0x7a5   :  { %4186 = vrcp.f32 %v2397_v55  ;;  %v2944_v13 = vmul.f32 0.01, %v2912_v52  ;;  %vm2928_vm5 = vcmp.ge.f32.partialorder %v2912_v52, 0.0 }
 0x7a6   :  { %v4181_v38 = vpop.eup %4180  ;;  %4188 = vrcp.f32 %v2759_v1 }
 0x7a7   :  { %2784 = vadd.xlane.f32.xlu0 %v4181_v38  ;;  %v2793_v53 = vpack.c.bf16 %v4181_v38, %v4175_v29  ;;  %v4183_v61 = vpop.eup %4182  ;;  %4190 = vrcp.f32 %v2761_v20  ;;  %v2960_v25 = vsel %vm2928_vm5, %v2912_v52, %v2944_v13 }
 0x7a8   :  { %v2497_v14 = vmul.f32 %v4183_v61, %v2441_v47  ;;  %v2405_v39 = vpop.xlane.xlu1 %2404  ;;  %v2818_v61 = vpop.f32.mrf.mxu3 }
 0x7a9   :  { %2837 = vmatmul.bf16.gmra.mxu3 %v2793_v53 }
 0x7aa   :  { %v4185_v10 = vpop.eup %4184 }
 0x7ab   :  { %v2859_v51 = vmul.f32 %v4185_v10, %v2803_v45  ;;  %v2399_v15 = vpop.xlane.xlu2 %2398  ;;  %v4187_v5 = vpop.eup %4186 }
 0x7ac   :  { %4192 = vrcp.f32 %v2399_v15  ;;  %v4189_v22 = vpop.eup %4188  ;;  %v2499_v8 = vmul.f32 %v4187_v5, %v2446_v7  ;;  %v2763_v50 = vpop.xlane.xlu0 %2762 }
 0x7ad   :  { %v2875_v44 = vadd.f32 %v2859_v51, %v2497_v14  ;;  %v4191_v21 = vpop.eup %4190  ;;  %v2861_v6 = vmul.f32 %v4189_v22, %v2808_v32  ;;  %v3905_v14 = vld [vmem:[#allocation14 + $0x30] sm:$0xff] }
 0x7ae   :  { %v2862_v58 = vmul.f32 %v4191_v21, %v2810_v33  ;;  %3225 = vmatpush.bf16.msrb.mxu1 %v3905_v14 }
 0x7af   :  { %v2891_v62 = vmul.f32 0.5, %v2875_v44  ;;  %v2877_v9 = vadd.f32 %v2861_v6, %v2499_v8 }
 0x7b0   :  { %v2769_v20 = vpop.xlane.xlu1 %2768 }
 0x7b1   :  { %v2911_v17 = vadd.f32 %v5531_v19, %v2891_v62  ;;  %v2893_v2 = vmul.f32 0.5, %v2877_v9 }
 0x7b2   :  { %v4193_v28 = vpop.eup %4192 }
 0x7b3   :  { %v2943_v56 = vmul.f32 0.01, %v2911_v17  ;;  %v2500_v16 = vmul.f32 %v4193_v28, %v2448_v59  ;;  %v2401_v34 = vpop.xlane.xlu2 %2400  ;;  %vm2927_vm10 = vcmp.ge.f32.partialorder %v2911_v17, 0.0  ;;  %v2913_v35 = vadd.f32 %v5531_v19, %v2893_v2  ;;  %v2820_v28 = vpop.f32.mrf.mxu3 }
 0x7b4   :  { %4194 = vrcp.f32 %v2401_v34 }
 0x7b5   :  { %v2878_v24 = vadd.f32 %v2862_v58, %v2500_v16  ;;  %v2959_v0 = vsel %vm2927_vm10, %v2911_v17, %v2943_v56  ;;  %4196 = vrcp.f32 %v2403_v49  ;;  %v2945_v54 = vmul.f32 0.01, %v2913_v35 }
 0x7b6   :  { %v2975_v37 = vpack.c.bf16 %v2960_v25, %v2959_v0  ;;  %4198 = vrcp.f32 %v2763_v50  ;;  %vm2929_vm0 = vcmp.ge.f32.partialorder %v2913_v35, 0.0 }
 0x7b7   :  { %v2894_v60 = vmul.f32 0.5, %v2878_v24  ;;  %v2961_v7 = vsel %vm2929_vm0, %v2913_v35, %v2945_v54 }
 0x7b8   :  { %3059 = vmatmul.bf16.vlgmr.msrb.gmra.mxu0 %v2975_v37  ;;  %v2771_v13 = vpop.xlane.xlu1 %2770 }
 0x7b9   :  { %v2914_v26 = vadd.f32 %v5531_v19, %v2894_v60 }
 0x7ba   :  { %v4195_v30 = vpop.eup %4194 }
 0x7bb   :  { %v2765_v46 = vpop.xlane.xlu2 %2764  ;;  %v4197_v47 = vpop.eup %4196  ;;  %v2946_v45 = vmul.f32 0.01, %v2914_v26  ;;  %vm2930_vm6 = vcmp.ge.f32.partialorder %v2914_v26, 0.0  ;;  %v2501_v3 = vmul.f32 %v4195_v30, %v2451_v41  ;;  %v3904_v41 = vld [vmem:[#allocation14 + $0x28] sm:$0xff] }
 0x7bc   :  { %4200 = vrcp.f32 %v2765_v46  ;;  %v4199_v29 = vpop.eup %4198  ;;  %v2502_v55 = vmul.f32 %v4197_v47, %v2453_v18  ;;  %3226 = vmatpush.bf16.msrb.mxu1 %v3904_v41 }
 0x7bd   :  { %v2863_v11 = vmul.f32 %v4199_v29, %v2813_v63  ;;  %v2962_v36 = vsel %vm2930_vm6, %v2914_v26, %v2946_v45 }
 0x7be   :  { %v2976_v12 = vpack.c.bf16 %v2962_v36, %v2961_v7  ;;  %v2407_v32 = vpop.xlane.xlu0 %2406 }
 0x7bf   :  { %v2879_v42 = vadd.f32 %v2863_v11, %v2501_v3 }
 0x7c0   :  { %v2415_v36 = vpop.xlane.xlu1 %2414 }
 0x7c1   :  { %v2895_v38 = vmul.f32 0.5, %v2879_v42 }
 0x7c2   :  { %v4201_v40 = vpop.eup %4200 }
 0x7c3   :  { %v2864_v43 = vmul.f32 %v4201_v40, %v2815_v23  ;;  %v2767_v48 = vpop.xlane.xlu2 %2766  ;;  %v2915_v53 = vadd.f32 %v5531_v19, %v2895_v38 }
 0x7c4   :  { %4202 = vrcp.f32 %v2767_v48 }
 0x7c5   :  { %v2880_v4 = vadd.f32 %v2864_v43, %v2502_v55  ;;  %4204 = vrcp.f32 %v2405_v39  ;;  %v2947_v52 = vmul.f32 0.01, %v2915_v53  ;;  %vm2931_vm13 = vcmp.ge.f32.partialorder %v2915_v53, 0.0 }
 0x7c6   :  { %4206 = vrcp.f32 %v2769_v20  ;;  %v2409_v5 = vpop.xlane.xlu0 %2408  ;;  %v3903_v20 = vld [vmem:[#allocation14 + $0x20] sm:$0xff] }
 0x7c7   :  { %v2896_v57 = vmul.f32 0.5, %v2880_v4  ;;  %4208 = vrcp.f32 %v2407_v32  ;;  %v2963_v21 = vsel %vm2931_vm13, %v2915_v53, %v2947_v52  ;;  %3227 = vmatpush.bf16.msrb.mxu1 %v3903_v20 }
 0x7c8   :  { %3064 = vmatmul.bf16.gmra.mxu0 %v2976_v12  ;;  %4210 = vrcp.f32 %v2771_v13 }
 0x7c9   :  { %v2916_v1 = vadd.f32 %v5531_v19, %v2896_v57  ;;  %4212 = vrcp.f32 %v2409_v5 }
 0x7ca   :  { %v4203_v27 = vpop.eup %4202 }
 0x7cb   :  { %v2948_v10 = vmul.f32 0.01, %v2916_v1  ;;  %v4205_v51 = vpop.eup %4204  ;;  %vm2932_vm14 = vcmp.ge.f32.partialorder %v2916_v1, 0.0  ;;  %v2865_v44 = vmul.f32 %v4203_v27, %v2818_v61  ;;  %v2411_v34 = vpop.xlane.xlu2 %2410 }
 0x7cc   :  { %v4207_v33 = vpop.eup %4206  ;;  %4214 = vrcp.f32 %v2411_v34 }
 0x7cd   :  { %v2964_v22 = vsel %vm2932_vm14, %v2916_v1, %v2948_v10  ;;  %v4209_v17 = vpop.eup %4208  ;;  %v2866_v16 = vmul.f32 %v4207_v33, %v2820_v28 }
 0x7ce   :  { %v2977_v8 = vpack.c.bf16 %v2964_v22, %v2963_v21  ;;  %v2773_v0 = vpop.xlane.xlu0 %2772  ;;  %v4211_v49 = vpop.eup %4210 }
 0x7cf   :  { %v4213_v60 = vpop.eup %4212  ;;  %4216 = vrcp.f32 %v2773_v0 }
 0x7d0   :  { %v2456_v15 = vpop.f32.mrf.mxu2 }
 0x7d1   :  { %v2503_v59 = vmul.f32 %v4205_v51, %v2456_v15 }
 0x7d2   :  { %v4215_v29 = vpop.eup %4214 }
 0x7d3   :  { %v2881_v62 = vadd.f32 %v2865_v44, %v2503_v59  ;;  %v2417_v59 = vpop.xlane.xlu1 %2416 }
 0x7d5   :  { %v2897_v6 = vmul.f32 0.5, %v2881_v62  ;;  %v4217_v54 = vpop.eup %4216 }
 0x7d6   :  { %v2413_v30 = vpop.xlane.xlu2 %2412  ;;  %v2775_v3 = vpop.xlane.xlu0 %2774 }
 0x7d7   :  { %v2917_v24 = vadd.f32 %v5531_v19, %v2897_v6  ;;  %4218 = vrcp.f32 %v2413_v30 }
 0x7d8   :  { %v2458_v56 = vpop.f32.mrf.mxu2  ;;  %3069 = vmatmul.bf16.gmra.mxu0 %v2977_v8  ;;  %4220 = vrcp.f32 %v2775_v3 }
 0x7d9   :  { %v2504_v58 = vmul.f32 %v4209_v17, %v2458_v56  ;;  %v2949_v2 = vmul.f32 0.01, %v2917_v24  ;;  %vm2933_vm2 = vcmp.ge.f32.partialorder %v2917_v24, 0.0  ;;  %4222 = vrcp.f32 %v2415_v36  ;;  %v3902_v17 = vld [vmem:[#allocation14 + $0x18] sm:$0xff] }
 0x7da   :  { %3228 = vmatpush.bf16.msrb.mxu1 %v3902_v17 }
 0x7db   :  { %v2882_v9 = vadd.f32 %v2866_v16, %v2504_v58  ;;  %v2965_v31 = vsel %vm2933_vm2, %v2917_v24, %v2949_v2  ;;  %v2781_v34 = vpop.xlane.xlu1 %2780 }
 0x7dd   :  { %v2898_v25 = vmul.f32 0.5, %v2882_v9  ;;  %v4219_v48 = vpop.eup %4218 }
 0x7de   :  { %v2777_v4 = vpop.xlane.xlu2 %2776  ;;  %v4221_v57 = vpop.eup %4220 }
 0x7df   :  { %v2918_v37 = vadd.f32 %v5531_v19, %v2898_v25  ;;  %4224 = vrcp.f32 %v2777_v4  ;;  %v4223_v15 = vpop.eup %4222  ;;  %v3900_v4 = vld [vmem:[#allocation14 + $0x8] sm:$0xff] }
 0x7e0   :  { %v2461_v50 = vpop.f32.mrf.mxu2  ;;  %v2823_v63 = vpop.f32.mrf.mxu3  ;;  %4226 = vrcp.f32 %v2417_v59 }
 0x7e1   :  { %v2505_v46 = vmul.f32 %v4213_v60, %v2461_v50  ;;  %v2867_v26 = vmul.f32 %v4211_v49, %v2823_v63  ;;  %vm2934_vm12 = vcmp.ge.f32.partialorder %v2918_v37, 0.0  ;;  %v2950_v35 = vmul.f32 0.01, %v2918_v37 }
 0x7e3   :  { %v2966_v47 = vsel %vm2934_vm12, %v2918_v37, %v2950_v35  ;;  %v2883_v45 = vadd.f32 %v2867_v26, %v2505_v46 }
 0x7e4   :  { %v2978_v18 = vpack.c.bf16 %v2966_v47, %v2965_v31 }
 0x7e5   :  { %v2899_v40 = vmul.f32 0.5, %v2883_v45  ;;  %v4225_v5 = vpop.eup %4224 }
 0x7e6   :  { %v2779_v44 = vpop.xlane.xlu2 %2778  ;;  %v2419_v56 = vpop.xlane.xlu0 %2418 }
 0x7e7   :  { %v2919_v42 = vadd.f32 %v5531_v19, %v2899_v40  ;;  %4228 = vrcp.f32 %v2779_v44  ;;  %v4227_v16 = vpop.eup %4226 }
 0x7e8   :  { %v2463_v23 = vpop.f32.mrf.mxu2  ;;  %v2825_v39 = vpop.f32.mrf.mxu3  ;;  %3074 = vmatmul.bf16.gmra.mxu0 %v2978_v18  ;;  %4230 = vrcp.f32 %v2419_v56 }
 0x7e9   :  { %v2506_v55 = vmul.f32 %v4215_v29, %v2463_v23  ;;  %v2868_v11 = vmul.f32 %v4217_v54, %v2825_v39  ;;  %v2951_v1 = vmul.f32 0.01, %v2919_v42  ;;  %vm2935_vm15 = vcmp.ge.f32.partialorder %v2919_v42, 0.0  ;;  %v3901_v39 = vld [vmem:[#allocation14 + $0x10] sm:$0xff] }
 0x7ea   :  { %4232 = vrcp.f32 %v2781_v34  ;;  %3229 = vmatpush.bf16.msrb.mxu1 %v3901_v39 }
 0x7eb   :  { %v2884_v43 = vadd.f32 %v2868_v11, %v2506_v55  ;;  %v2967_v51 = vsel %vm2935_vm15, %v2919_v42, %v2951_v1 }
 0x7ed   :  { %v2900_v7 = vmul.f32 0.5, %v2884_v43  ;;  %v4229_v24 = vpop.eup %4228 }
 0x7ee   :  { %v4231_v46 = vpop.eup %4230  ;;  %v2421_v36 = vpop.xlane.xlu0 %2420  ;;  %3230 = vmatpush.bf16.msrb.mxu1 %v3900_v4 }
 0x7ef   :  { %v2920_v12 = vadd.f32 %v5531_v19, %v2900_v7  ;;  %4234 = vrcp.f32 %v2421_v36  ;;  %v3899_v7 = vld [vmem:[#allocation14] sm:$0xff] }
 0x7f0   :  { %v2466_v38 = vpop.f32.mrf.mxu2  ;;  %v2828_v32 = vpop.f32.mrf.mxu3 }
 0x7f1   :  { %v2507_v53 = vmul.f32 %v4219_v48, %v2466_v38  ;;  %v2869_v61 = vmul.f32 %v4221_v57, %v2828_v32  ;;  %vm2936_vm7 = vcmp.ge.f32.partialorder %v2920_v12, 0.0  ;;  %v2952_v27 = vmul.f32 0.01, %v2920_v12  ;;  %v4233_v35 = vpop.eup %4232 }
 0x7f2   :  { %3231 = vmatpush.bf16.msrb.mxu1 %v3899_v7 }
 0x7f3   :  { %v2968_v10 = vsel %vm2936_vm7, %v2920_v12, %v2952_v27  ;;  %v2885_v14 = vadd.f32 %v2869_v61, %v2507_v53 }
 0x7f4   :  { %v2979_v52 = vpack.c.bf16 %v2968_v10, %v2967_v51 }
 0x7f5   :  { %v2901_v21 = vmul.f32 0.5, %v2885_v14  ;;  %v4235_v57 = vpop.eup %4234 }
 0x7f7   :  { %v2921_v28 = vadd.f32 %v5531_v19, %v2901_v21 }
 0x7f8   :  { %v2468_v22 = vpop.f32.mrf.mxu2  ;;  %v2830_v62 = vpop.f32.mrf.mxu3  ;;  %3079 = vmatmul.bf16.gmra.mxu0 %v2979_v52 }
 0x7f9   :  { %v2508_v33 = vmul.f32 %v4223_v15, %v2468_v22  ;;  %v2870_v13 = vmul.f32 %v4225_v5, %v2830_v62  ;;  %v2953_v49 = vmul.f32 0.01, %v2921_v28  ;;  %vm2937_vm11 = vcmp.ge.f32.partialorder %v2921_v28, 0.0  ;;  %v5550_v5 = vld [vmem:[%s5785_s9] ss:$0 sm:$0xff] }
 0x7fb   :  { %v2886_v8 = vadd.f32 %v2870_v13, %v2508_v33  ;;  %v2969_v63 = vsel %vm2937_vm11, %v2921_v28, %v2953_v49 }
 0x7fd   :  { %v2902_v6 = vmul.f32 0.5, %v2886_v8 }
 0x7ff   :  { %v2922_v58 = vadd.f32 %v5531_v19, %v2902_v6  ;;  %v2423_v12 = vpop.xlane.xlu2 %2422 }
 0x800   :  { %v2471_v9 = vpop.f32.mrf.mxu2  ;;  %v2833_v25 = vpop.f32.mrf.mxu3 }
 0x801   :  { %v2509_v0 = vmul.f32 %v4227_v16, %v2471_v9  ;;  %vm2938_vm1 = vcmp.ge.f32.partialorder %v2922_v58, 0.0  ;;  %v2954_v37 = vmul.f32 0.01, %v2922_v58  ;;  %v2871_v41 = vmul.f32 %v4229_v24, %v2833_v25 }
 0x803   :  { %v2970_v60 = vsel %vm2938_vm1, %v2922_v58, %v2954_v37  ;;  %v2887_v50 = vadd.f32 %v2871_v41, %v2509_v0 }
 0x804   :  { %v2980_v2 = vpack.c.bf16 %v2970_v60, %v2969_v63 }
 0x805   :  { %v2903_v30 = vmul.f32 0.5, %v2887_v50 }
 0x807   :  { %v2923_v18 = vadd.f32 %v5531_v19, %v2903_v30 }
 0x808   :  { %v2473_v26 = vpop.f32.mrf.mxu2  ;;  %3084 = vmatmul.bf16.gmra.mxu0 %v2980_v2  ;;  %v2835_v45 = vpop.f32.mrf.mxu3 }
 0x809   :  { %v2510_v47 = vmul.f32 %v4231_v46, %v2473_v26  ;;  %v2872_v31 = vmul.f32 %v4233_v35, %v2835_v45  ;;  %v2955_v40 = vmul.f32 0.01, %v2923_v18  ;;  %vm2939_vm3 = vcmp.ge.f32.partialorder %v2923_v18, 0.0 }
 0x80a   :  { %v2783_v42 = vpop.xlane.xlu1 %2782 }
 0x80b   :  { %v2888_v29 = vadd.f32 %v2872_v31, %v2510_v47  ;;  %v2971_v11 = vsel %vm2939_vm3, %v2923_v18, %v2955_v40  ;;  %4236 = vrcp.f32 %v2783_v42 }
 0x80c   :  { %4238 = vrcp.f32 %v2423_v12 }
 0x80d   :  { %v2904_v3 = vmul.f32 0.5, %v2888_v29 }
 0x80f   :  { %v2924_v54 = vadd.f32 %v5531_v19, %v2904_v3 }
 0x811   :  { %vm2940_vm4 = vcmp.ge.f32.partialorder %v2924_v54, 0.0  ;;  %v2956_v23 = vmul.f32 0.01, %v2924_v54  ;;  %v2476_v48 = vpop.f32.mrf.mxu2  ;;  %v4237_v32 = vpop.eup %4236 }
 0x812   :  { %v2511_v20 = vmul.f32 %v4235_v57, %v2476_v48  ;;  %v4239_v10 = vpop.eup %4238 }
 0x813   :  { %v2972_v55 = vsel %vm2940_vm4, %v2924_v54, %v2956_v23 }
 0x814   :  { %v2981_v43 = vpack.c.bf16 %v2972_v55, %v2971_v11 }
 0x818   :  { %3089 = vmatmul.bf16.gmra.mxu0 %v2981_v43 }
 0x819   :  { %v2478_v27 = vpop.f32.mrf.mxu2 }
 0x81a   :  { %v2785_v38 = vpop.xlane.xlu0 %2784  ;;  %v2512_v59 = vmul.f32 %v4239_v10, %v2478_v27 }
 0x81b   :  { %4240 = vrcp.f32 %v2785_v38 }
 0x821   :  { %v4241_v51 = vpop.eup %4240 }
 0x82c   :  { %v2838_v1 = vpop.f32.mrf.mxu3 }
 0x82d   :  { %v2873_v53 = vmul.f32 %v4237_v32, %v2838_v1 }
 0x82f   :  { %v2889_v61 = vadd.f32 %v2873_v53, %v2511_v20 }
 0x831   :  { %v2905_v14 = vmul.f32 0.5, %v2889_v61 }
 0x833   :  { %v2925_v22 = vadd.f32 %v5531_v19, %v2905_v14 }
 0x834   :  { %v2840_v15 = vpop.f32.mrf.mxu3 }
 0x835   :  { %v2874_v52 = vmul.f32 %v4241_v51, %v2840_v15  ;;  %v3060_v44 = vpop.f32.mrf.mxu0  ;;  %v2957_v8 = vmul.f32 0.01, %v2925_v22  ;;  %vm2941_vm8 = vcmp.ge.f32.partialorder %v2925_v22, 0.0 }
 0x836   :  { %v3061_v33 = vadd.f32 %v5550_v5, %v3060_v44 }
 0x837   :  { %v2890_v62 = vadd.f32 %v2874_v52, %v2512_v59  ;;  %v2973_v58 = vsel %vm2941_vm8, %v2925_v22, %v2957_v8 }
 0x838   :  { %v3116_v6 = vmul.f32 0.2, %v3061_v33  ;;  %vm3100_vm5 = vcmp.ge.f32.partialorder %v3061_v33, 0.0 }
 0x839   :  { %v2906_v21 = vmul.f32 0.5, %v2890_v62 }
 0x83a   :  { %v3132_v24 = vsel %vm3100_vm5, %v3061_v33, %v3116_v6  ;;  %v3273_v6 = vlaneseq }
 0x83b   :  { %v2926_v13 = vadd.f32 %v5531_v19, %v2906_v21 }
 0x83d   :  { %v3062_v17 = vpop.f32.mrf.mxu0  ;;  %vm2942_vm9 = vcmp.ge.f32.partialorder %v2926_v13, 0.0  ;;  %v2958_v28 = vmul.f32 0.01, %v2926_v13 }
 0x83e   :  { %v3063_v56 = vadd.f32 %v5550_v5, %v3062_v17 }
 0x83f   :  { %v2974_v16 = vsel %vm2942_vm9, %v2926_v13, %v2958_v28 }
 0x840   :  { %vm3101_vm10 = vcmp.ge.f32.partialorder %v3063_v56, 0.0  ;;  %v3117_v34 = vmul.f32 0.2, %v3063_v56  ;;  %v2982_v9 = vpack.c.bf16 %v2974_v16, %v2973_v58  ;;  %v5573_v16 = vld [vmem:[%s5787_s11] ss:$0 sm:$0xff]  ;;  %s4548_s11 = smov [#allocation16]  }
 0x841   :  { %s3488_s26 = sshll.u32 %s4548_s11, 4  ;;  %s3489_s26 = int_to_ptr.vmem [resolvable:$true] %s3488_s26 }
 0x842   :  { %v3133_v0 = vsel %vm3101_vm10, %v3063_v56, %v3117_v34  ;;  %3094 = vmatmul.bf16.gmra.mxu0 %v2982_v9  ;;  %v5568_v56 = vand.u32 127, %v3273_v6 }
 0x843   :  { %v3148_v25 = vpack.c.bf16 %v3133_v0, %v3132_v24 }
 0x844   :  { %vm3275_vm8 = vcmp.lt.s32.totalorder %v5568_v56, 4 }
 0x845   :  { %v3065_v49 = vpop.f32.mrf.mxu0  ;;  %3232 = vmatmul.bf16.vlgmr.msrb.gmra.mxu1 %v3148_v25 }
 0x846   :  { %v3066_v19 = vadd.f32 %v5550_v5, %v3065_v49 }
 0x848   :  { %v3118_v41 = vmul.f32 0.2, %v3066_v19  ;;  %vm3102_vm6 = vcmp.ge.f32.partialorder %v3066_v19, 0.0 }
 0x84a   :  { %v3134_v63 = vsel %vm3102_vm6, %v3066_v19, %v3118_v41 }
 0x84d   :  { %v3067_v37 = vpop.f32.mrf.mxu0 }
 0x84e   :  { %v3068_v60 = vadd.f32 %v5550_v5, %v3067_v37 }
 0x850   :  { %vm3103_vm0 = vcmp.ge.f32.partialorder %v3068_v60, 0.0  ;;  %v3119_v50 = vmul.f32 0.2, %v3068_v60 }
 0x852   :  { %v3135_v2 = vsel %vm3103_vm0, %v3068_v60, %v3119_v50 }
 0x853   :  { %v3149_v46 = vpack.c.bf16 %v3135_v2, %v3134_v63 }
 0x855   :  { %v3070_v26 = vpop.f32.mrf.mxu0  ;;  %3237 = vmatmul.bf16.gmra.mxu1 %v3149_v46 }
 0x856   :  { %v3071_v35 = vadd.f32 %v5550_v5, %v3070_v26 }
 0x858   :  { %v3120_v47 = vmul.f32 0.2, %v3071_v35  ;;  %vm3104_vm14 = vcmp.ge.f32.partialorder %v3071_v35, 0.0 }
 0x85a   :  { %v3136_v29 = vsel %vm3104_vm14, %v3071_v35, %v3120_v47 }
 0x85d   :  { %v3072_v30 = vpop.f32.mrf.mxu0 }
 0x85e   :  { %v3073_v45 = vadd.f32 %v5550_v5, %v3072_v30 }
 0x860   :  { %vm3105_vm13 = vcmp.ge.f32.partialorder %v3073_v45, 0.0  ;;  %v3121_v31 = vmul.f32 0.2, %v3073_v45 }
 0x862   :  { %v3137_v18 = vsel %vm3105_vm13, %v3073_v45, %v3121_v31 }
 0x863   :  { %v3150_v3 = vpack.c.bf16 %v3137_v18, %v3136_v29 }
 0x865   :  { %v3075_v54 = vpop.f32.mrf.mxu0  ;;  %3242 = vmatmul.bf16.gmra.mxu1 %v3150_v3 }
 0x866   :  { %v3076_v40 = vadd.f32 %v5550_v5, %v3075_v54 }
 0x868   :  { %v3122_v39 = vmul.f32 0.2, %v3076_v40  ;;  %vm3106_vm12 = vcmp.ge.f32.partialorder %v3076_v40, 0.0 }
 0x86a   :  { %v3138_v43 = vsel %vm3106_vm12, %v3076_v40, %v3122_v39 }
 0x86d   :  { %v3077_v23 = vpop.f32.mrf.mxu0 }
 0x86e   :  { %v3078_v55 = vadd.f32 %v5550_v5, %v3077_v23 }
 0x870   :  { %vm3107_vm2 = vcmp.ge.f32.partialorder %v3078_v55, 0.0  ;;  %v3123_v11 = vmul.f32 0.2, %v3078_v55 }
 0x872   :  { %v3139_v36 = vsel %vm3107_vm2, %v3078_v55, %v3123_v11 }
 0x873   :  { %v3151_v42 = vpack.c.bf16 %v3139_v36, %v3138_v43 }
 0x875   :  { %v3080_v4 = vpop.f32.mrf.mxu0  ;;  %3247 = vmatmul.bf16.gmra.mxu1 %v3151_v42 }
 0x876   :  { %v3081_v7 = vadd.f32 %v5550_v5, %v3080_v4 }
 0x878   :  { %v3124_v12 = vmul.f32 0.2, %v3081_v7  ;;  %vm3108_vm7 = vcmp.ge.f32.partialorder %v3081_v7, 0.0 }
 0x87a   :  { %v3140_v32 = vsel %vm3108_vm7, %v3081_v7, %v3124_v12 }
 0x87d   :  { %v3082_v48 = vpop.f32.mrf.mxu0 }
 0x87e   :  { %v3083_v57 = vadd.f32 %v5550_v5, %v3082_v48 }
 0x880   :  { %vm3109_vm15 = vcmp.ge.f32.partialorder %v3083_v57, 0.0  ;;  %v3125_v38 = vmul.f32 0.2, %v3083_v57 }
 0x882   :  { %v3141_v1 = vsel %vm3109_vm15, %v3083_v57, %v3125_v38 }
 0x883   :  { %v3152_v20 = vpack.c.bf16 %v3141_v1, %v3140_v32 }
 0x885   :  { %v3085_v53 = vpop.f32.mrf.mxu0  ;;  %3252 = vmatmul.bf16.gmra.mxu1 %v3152_v20 }
 0x886   :  { %v3086_v61 = vadd.f32 %v5550_v5, %v3085_v53 }
 0x888   :  { %v3126_v10 = vmul.f32 0.2, %v3086_v61  ;;  %vm3110_vm1 = vcmp.ge.f32.partialorder %v3086_v61, 0.0 }
 0x88a   :  { %v3142_v15 = vsel %vm3110_vm1, %v3086_v61, %v3126_v10 }
 0x88d   :  { %v3087_v27 = vpop.f32.mrf.mxu0 }
 0x88e   :  { %v3088_v14 = vadd.f32 %v5550_v5, %v3087_v27 }
 0x890   :  { %vm3111_vm11 = vcmp.ge.f32.partialorder %v3088_v14, 0.0  ;;  %v3127_v51 = vmul.f32 0.2, %v3088_v14 }
 0x892   :  { %v3143_v59 = vsel %vm3111_vm11, %v3088_v14, %v3127_v51 }
 0x893   :  { %v3153_v52 = vpack.c.bf16 %v3143_v59, %v3142_v15 }
 0x895   :  { %v3090_v44 = vpop.f32.mrf.mxu0  ;;  %3257 = vmatmul.bf16.gmra.mxu1 %v3153_v52 }
 0x896   :  { %v3091_v22 = vadd.f32 %v5550_v5, %v3090_v44 }
 0x898   :  { %v3128_v21 = vmul.f32 0.2, %v3091_v22  ;;  %vm3112_vm3 = vcmp.ge.f32.partialorder %v3091_v22, 0.0 }
 0x89a   :  { %v3144_v8 = vsel %vm3112_vm3, %v3091_v22, %v3128_v21 }
 0x89d   :  { %v3092_v62 = vpop.f32.mrf.mxu0 }
 0x89e   :  { %v3093_v33 = vadd.f32 %v5550_v5, %v3092_v62 }
 0x8a0   :  { %vm3113_vm4 = vcmp.ge.f32.partialorder %v3093_v33, 0.0  ;;  %v3129_v13 = vmul.f32 0.2, %v3093_v33 }
 0x8a2   :  { %v3145_v17 = vsel %vm3113_vm4, %v3093_v33, %v3129_v13 }
 0x8a3   :  { %v3154_v28 = vpack.c.bf16 %v3145_v17, %v3144_v8 }
 0x8a5   :  { %3262 = vmatmul.bf16.gmra.mxu1 %v3154_v28 }
 0x8bf   :  { %v3095_v58 = vpop.f32.mrf.mxu0 }
 0x8c0   :  { %v3096_v24 = vadd.f32 %v5550_v5, %v3095_v58 }
 0x8c2   :  { %v3233_v34 = vpop.f32.mrf.mxu1  ;;  %v3130_v49 = vmul.f32 0.2, %v3096_v24  ;;  %vm3114_vm9 = vcmp.ge.f32.partialorder %v3096_v24, 0.0 }
 0x8c3   :  { %v3234_v9 = vadd.f32 %v5573_v16, %v3233_v34 }
 0x8c4   :  { %v3146_v50 = vsel %vm3114_vm9, %v3096_v24, %v3130_v49 }
 0x8c5   :  { %v5580_v0 = vsel %vm3275_vm8, %v3234_v9, -1e+30 }
 0x8c6   :  { %3292 = vmax.xlane.f32.xlu2 %v5580_v0 }
 0x8c7   :  { %v3097_v25 = vpop.f32.mrf.mxu0 }
 0x8c8   :  { %v3098_v19 = vadd.f32 %v5550_v5, %v3097_v25 }
 0x8ca   :  { %vm3115_vm5 = vcmp.ge.f32.partialorder %v3098_v19, 0.0  ;;  %v3131_v37 = vmul.f32 0.2, %v3098_v19  ;;  %v3235_v41 = vpop.f32.mrf.mxu1 }
 0x8cb   :  { %v3236_v60 = vadd.f32 %v5573_v16, %v3235_v41 }
 0x8cc   :  { %v3147_v63 = vsel %vm3115_vm5, %v3098_v19, %v3131_v37 }
 0x8cd   :  { %v5587_v2 = vsel %vm3275_vm8, %v3236_v60, -1e+30  ;;  %v3155_v46 = vpack.c.bf16 %v3147_v63, %v3146_v50 }
 0x8ce   :  { %3294 = vmax.xlane.f32.xlu1 %v5587_v2 }
 0x8cf   :  { %3267 = vmatmul.bf16.gmra.mxu1 %v3155_v46 }
 0x8d2   :  { %v3238_v26 = vpop.f32.mrf.mxu1 }
 0x8d3   :  { %v3239_v35 = vadd.f32 %v5573_v16, %v3238_v26 }
 0x8d5   :  { %v5593_v5 = vsel %vm3275_vm8, %v3239_v35, -1e+30 }
 0x8d6   :  { %3296 = vmax.xlane.f32.xlu0 %v5593_v5 }
 0x8da   :  { %v3240_v30 = vpop.f32.mrf.mxu1 }
 0x8db   :  { %v3241_v47 = vadd.f32 %v5573_v16, %v3240_v30 }
 0x8dd   :  { %v5599_v45 = vsel %vm3275_vm8, %v3241_v47, -1e+30 }
 0x8de   :  { %3298 = vmax.xlane.f32.xlu2 %v5599_v45 }
 0x8e2   :  { %v3243_v31 = vpop.f32.mrf.mxu1 }
 0x8e3   :  { %v3244_v29 = vadd.f32 %v5573_v16, %v3243_v31 }
 0x8e5   :  { %v5605_v18 = vsel %vm3275_vm8, %v3244_v29, -1e+30 }
 0x8e6   :  { %3300 = vmax.xlane.f32.xlu1 %v5605_v18 }
 0x8ea   :  { %v3245_v3 = vpop.f32.mrf.mxu1 }
 0x8eb   :  { %v3246_v54 = vadd.f32 %v5573_v16, %v3245_v3 }
 0x8ed   :  { %v5611_v40 = vsel %vm3275_vm8, %v3246_v54, -1e+30 }
 0x8ee   :  { %3302 = vmax.xlane.f32.xlu0 %v5611_v40 }
 0x8f2   :  { %v3248_v23 = vpop.f32.mrf.mxu1 }
 0x8f3   :  { %v3249_v39 = vadd.f32 %v5573_v16, %v3248_v23 }
 0x8f5   :  { %v5617_v55 = vsel %vm3275_vm8, %v3249_v39, -1e+30 }
 0x8f6   :  { %3304 = vmax.xlane.f32.xlu2 %v5617_v55 }
 0x8fa   :  { %v3250_v11 = vpop.f32.mrf.mxu1 }
 0x8fb   :  { %v3251_v43 = vadd.f32 %v5573_v16, %v3250_v11 }
 0x8fd   :  { %v5623_v36 = vsel %vm3275_vm8, %v3251_v43, -1e+30 }
 0x8fe   :  { %3306 = vmax.xlane.f32.xlu1 %v5623_v36 }
 0x902   :  { %v3253_v42 = vpop.f32.mrf.mxu1 }
 0x903   :  { %v3254_v4 = vadd.f32 %v5573_v16, %v3253_v42 }
 0x905   :  { %v5629_v7 = vsel %vm3275_vm8, %v3254_v4, -1e+30 }
 0x906   :  { %3308 = vmax.xlane.f32.xlu0 %v5629_v7 }
 0x90a   :  { %v3255_v48 = vpop.f32.mrf.mxu1 }
 0x90b   :  { %v3256_v12 = vadd.f32 %v5573_v16, %v3255_v48 }
 0x90d   :  { %v5635_v57 = vsel %vm3275_vm8, %v3256_v12, -1e+30 }
 0x90e   :  { %3310 = vmax.xlane.f32.xlu2 %v5635_v57 }
 0x912   :  { %v3258_v38 = vpop.f32.mrf.mxu1 }
 0x913   :  { %v3259_v32 = vadd.f32 %v5573_v16, %v3258_v38 }
 0x915   :  { %v5641_v1 = vsel %vm3275_vm8, %v3259_v32, -1e+30 }
 0x916   :  { %3312 = vmax.xlane.f32.xlu1 %v5641_v1 }
 0x91a   :  { %v3260_v20 = vpop.f32.mrf.mxu1 }
 0x91b   :  { %v3261_v53 = vadd.f32 %v5573_v16, %v3260_v20 }
 0x91d   :  { %v5647_v61 = vsel %vm3275_vm8, %v3261_v53, -1e+30 }
 0x91e   :  { %3314 = vmax.xlane.f32.xlu0 %v5647_v61 }
 0x922   :  { %v3263_v27 = vpop.f32.mrf.mxu1 }
 0x923   :  { %v3264_v10 = vadd.f32 %v5573_v16, %v3263_v27 }
 0x925   :  { %v5653_v14 = vsel %vm3275_vm8, %v3264_v10, -1e+30 }
 0x926   :  { %3316 = vmax.xlane.f32.xlu2 %v5653_v14 }
 0x92a   :  { %v3265_v51 = vpop.f32.mrf.mxu1 }
 0x92b   :  { %v3266_v15 = vadd.f32 %v5573_v16, %v3265_v51 }
 0x92d   :  { %v5659_v59 = vsel %vm3275_vm8, %v3266_v15, -1e+30 }
 0x92e   :  { %3318 = vmax.xlane.f32.xlu1 %v5659_v59 }
 0x939   :  { %v5662_v52 = vpop.xlane.xlu2 %3292 }
 0x93a   :  { %v3324_v44 = vsub.f32 %v5580_v0, %v5662_v52 }
 0x93c   :  { %v3340_v22 = vmul.f32 1.442695, %v3324_v44 }
 0x93e   :  { %4242 = vpow2.f32 %v3340_v22 }
 0x941   :  { %v5666_v21 = vpop.xlane.xlu1 %3294 }
 0x942   :  { %v3325_v33 = vsub.f32 %v5587_v2, %v5666_v21 }
 0x944   :  { %v4243_v62 = vpop.eup %4242  ;;  %v3342_v8 = vmul.f32 1.442695, %v3325_v33 }
 0x945   :  { %3372 = vadd.xlane.f32.xlu1 %v4243_v62 }
 0x946   :  { %4244 = vpow2.f32 %v3342_v8 }
 0x949   :  { %v5671_v28 = vpop.xlane.xlu0 %3296 }
 0x94a   :  { %v3326_v58 = vsub.f32 %v5593_v5, %v5671_v28 }
 0x94c   :  { %v3268_v13 = vpop.f32.mrf.mxu1  ;;  %v3344_v49 = vmul.f32 1.442695, %v3326_v58  ;;  %v4245_v37 = vpop.eup %4244 }
 0x94d   :  { %v3269_v17 = vadd.f32 %v5573_v16, %v3268_v13 }
 0x94f   :  { %v5675_v6 = vsel %vm3275_vm8, %v3269_v17, -1e+30 }
 0x950   :  { %3320 = vmax.xlane.f32.xlu0 %v5675_v6 }
 0x951   :  { %v5680_v34 = vpop.xlane.xlu2 %3298 }
 0x952   :  { %v3327_v9 = vsub.f32 %v5599_v45, %v5680_v34 }
 0x954   :  { %v3346_v24 = vmul.f32 1.442695, %v3327_v9  ;;  %v3270_v25 = vpop.f32.mrf.mxu1 }
 0x955   :  { %v3271_v19 = vadd.f32 %v5573_v16, %v3270_v25 }
 0x956   :  { %4246 = vpow2.f32 %v3346_v24 }
 0x957   :  { %v5687_v41 = vsel %vm3275_vm8, %v3271_v19, -1e+30  ;;  %4248 = vpow2.f32 %v3344_v49 }
 0x958   :  { %3322 = vmax.xlane.f32.xlu2 %v5687_v41  ;;  %3374 = vadd.xlane.f32.xlu0 %v4245_v37 }
 0x959   :  { %v5690_v60 = vpop.xlane.xlu1 %3300 }
 0x95a   :  { %v3328_v50 = vsub.f32 %v5605_v18, %v5690_v60 }
 0x95c   :  { %v4247_v63 = vpop.eup %4246  ;;  %v3348_v46 = vmul.f32 1.442695, %v3328_v50 }
 0x95d   :  { %3378 = vadd.xlane.f32.xlu1 %v4247_v63  ;;  %v4249_v16 = vpop.eup %4248 }
 0x95e   :  { %4250 = vpow2.f32 %v3348_v46 }
 0x960   :  { %3376 = vadd.xlane.f32.xlu2 %v4249_v16 }
 0x961   :  { %v5694_v26 = vpop.xlane.xlu0 %3302 }
 0x962   :  { %v3329_v56 = vsub.f32 %v5611_v40, %v5694_v26 }
 0x964   :  { %v4251_v35 = vpop.eup %4250  ;;  %v3350_v30 = vmul.f32 1.442695, %v3329_v56 }
 0x965   :  { %3380 = vadd.xlane.f32.xlu0 %v4251_v35 }
 0x966   :  { %4252 = vpow2.f32 %v3350_v30 }
 0x969   :  { %v5698_v47 = vpop.xlane.xlu2 %3304 }
 0x96a   :  { %v3330_v31 = vsub.f32 %v5617_v55, %v5698_v47 }
 0x96c   :  { %v4253_v29 = vpop.eup %4252  ;;  %v3352_v3 = vmul.f32 1.442695, %v3330_v31 }
 0x96d   :  { %3382 = vadd.xlane.f32.xlu2 %v4253_v29 }
 0x96e   :  { %4254 = vpow2.f32 %v3352_v3 }
 0x971   :  { %v5702_v54 = vpop.xlane.xlu1 %3306 }
 0x972   :  { %v3331_v23 = vsub.f32 %v5623_v36, %v5702_v54 }
 0x974   :  { %v4255_v39 = vpop.eup %4254  ;;  %v3354_v11 = vmul.f32 1.442695, %v3331_v23 }
 0x975   :  { %3384 = vadd.xlane.f32.xlu1 %v4255_v39 }
 0x976   :  { %4256 = vpow2.f32 %v3354_v11 }
 0x979   :  { %v5706_v43 = vpop.xlane.xlu0 %3308 }
 0x97a   :  { %v3332_v42 = vsub.f32 %v5629_v7, %v5706_v43 }
 0x97c   :  { %v4257_v4 = vpop.eup %4256  ;;  %v3356_v48 = vmul.f32 1.442695, %v3332_v42 }
 0x97d   :  { %3386 = vadd.xlane.f32.xlu0 %v4257_v4 }
 0x97e   :  { %4258 = vpow2.f32 %v3356_v48 }
 0x981   :  { %v5710_v12 = vpop.xlane.xlu2 %3310 }
 0x982   :  { %v3333_v38 = vsub.f32 %v5635_v57, %v5710_v12 }
 0x984   :  { %v4259_v32 = vpop.eup %4258  ;;  %v3358_v20 = vmul.f32 1.442695, %v3333_v38 }
 0x985   :  { %3388 = vadd.xlane.f32.xlu2 %v4259_v32 }
 0x986   :  { %4260 = vpow2.f32 %v3358_v20 }
 0x989   :  { %v5714_v53 = vpop.xlane.xlu1 %3312 }
 0x98a   :  { %v3334_v27 = vsub.f32 %v5641_v1, %v5714_v53 }
 0x98c   :  { %v4261_v10 = vpop.eup %4260  ;;  %v3360_v51 = vmul.f32 1.442695, %v3334_v27 }
 0x98d   :  { %3390 = vadd.xlane.f32.xlu1 %v4261_v10 }
 0x98e   :  { %4262 = vpow2.f32 %v3360_v51 }
 0x991   :  { %v5718_v15 = vpop.xlane.xlu0 %3314 }
 0x992   :  { %v3335_v44 = vsub.f32 %v5647_v61, %v5718_v15 }
 0x994   :  { %v4263_v22 = vpop.eup %4262  ;;  %v3362_v62 = vmul.f32 1.442695, %v3335_v44 }
 0x995   :  { %3392 = vadd.xlane.f32.xlu0 %v4263_v22 }
 0x996   :  { %4264 = vpow2.f32 %v3362_v62 }
 0x999   :  { %v5722_v33 = vpop.xlane.xlu2 %3316 }
 0x99a   :  { %v3336_v13 = vsub.f32 %v5653_v14, %v5722_v33 }
 0x99c   :  { %v4265_v8 = vpop.eup %4264  ;;  %v3364_v17 = vmul.f32 1.442695, %v3336_v13 }
 0x99d   :  { %3394 = vadd.xlane.f32.xlu2 %v4265_v8 }
 0x99e   :  { %4266 = vpow2.f32 %v3364_v17 }
 0x9a1   :  { %v5726_v58 = vpop.xlane.xlu1 %3318 }
 0x9a2   :  { %v3337_v9 = vsub.f32 %v5659_v59, %v5726_v58 }
 0x9a4   :  { %v4267_v24 = vpop.eup %4266  ;;  %v3366_v25 = vmul.f32 1.442695, %v3337_v9 }
 0x9a5   :  { %3396 = vadd.xlane.f32.xlu1 %v4267_v24 }
 0x9a6   :  { %4268 = vpow2.f32 %v3366_v25 }
 0x9ac   :  { %v4269_v49 = vpop.eup %4268 }
 0x9ad   :  { %3398 = vadd.xlane.f32.xlu0 %v4269_v49 }
 0x9b8   :  { %v3373_v19 = vpop.xlane.xlu1 %3372 }
 0x9b9   :  { %4270 = vlog2.f32 %v3373_v19 }
 0x9bf   :  { %v4271_v37 = vpop.eup %4270 }
 0x9c0   :  { %v3405_v50 = vmul.f32 0.6931472, %v4271_v37 }
 0x9c2   :  { %v3436_v63 = vadd.f32 %v3405_v50, %v5662_v52 }
 0x9c3   :  { %v5731_v46 = vpop.xlane.xlu0 %3320 }
 0x9c4   :  { %v3452_v16 = vsub.f32 %v5580_v0, %v3436_v63  ;;  %v3338_v56 = vsub.f32 %v5675_v6, %v5731_v46 }
 0x9c6   :  { %3468 = vst [vmem:[#allocation16] sm:$0xff] %v3452_v16  ;;  %v3368_v35 = vmul.f32 1.442695, %v3338_v56 }
 0x9c8   :  { %4272 = vpow2.f32 %v3368_v35 }
 0x9cb   :  { %v5736_v30 = vpop.xlane.xlu2 %3322  ;;  %v3375_v31 = vpop.xlane.xlu0 %3374 }
 0x9cc   :  { %v3339_v29 = vsub.f32 %v5687_v41, %v5736_v30  ;;  %4274 = vlog2.f32 %v3375_v31 }
 0x9ce   :  { %v4273_v3 = vpop.eup %4272  ;;  %v3370_v23 = vmul.f32 1.442695, %v3339_v29 }
 0x9cf   :  { %3400 = vadd.xlane.f32.xlu2 %v4273_v3 }
 0x9d0   :  { %4276 = vpow2.f32 %v3370_v23  ;;  %v3379_v52 = vpop.xlane.xlu1 %3378 }
 0x9d1   :  { %4278 = vlog2.f32 %v3379_v52 }
 0x9d2   :  { %v4275_v0 = vpop.eup %4274 }
 0x9d3   :  { %v3407_v39 = vmul.f32 0.6931472, %v4275_v0  ;;  %v3377_v11 = vpop.xlane.xlu2 %3376 }
 0x9d4   :  { %4280 = vlog2.f32 %v3377_v11 }
 0x9d5   :  { %v3437_v42 = vadd.f32 %v3407_v39, %v5666_v21 }
 0x9d6   :  { %v4277_v4 = vpop.eup %4276 }
 0x9d7   :  { %v4279_v48 = vpop.eup %4278  ;;  %v3453_v38 = vsub.f32 %v5587_v2, %v3437_v42  ;;  %3402 = vadd.xlane.f32.xlu1 %v4277_v4 }
 0x9d8   :  { %v3411_v32 = vmul.f32 0.6931472, %v4279_v48  ;;  %v3381_v20 = vpop.xlane.xlu0 %3380 }
 0x9d9   :  { %3469 = vst [vmem:[#allocation16 + $0x8] sm:$0xff] %v3453_v38  ;;  %4282 = vlog2.f32 %v3381_v20 }
 0x9da   :  { %v4281_v27 = vpop.eup %4280  ;;  %v3439_v10 = vadd.f32 %v3411_v32, %v5680_v34 }
 0x9db   :  { %v3409_v51 = vmul.f32 0.6931472, %v4281_v27 }
 0x9dc   :  { %v3455_v44 = vsub.f32 %v5599_v45, %v3439_v10 }
 0x9dd   :  { %v3438_v22 = vadd.f32 %v3409_v51, %v5671_v28 }
 0x9de   :  { %3471 = vst [vmem:[#allocation16 + $0x18] sm:$0xff] %v3455_v44 }
 0x9df   :  { %v4283_v62 = vpop.eup %4282  ;;  %v3454_v21 = vsub.f32 %v5593_v5, %v3438_v22 }
 0x9e0   :  { %v3413_v13 = vmul.f32 0.6931472, %v4283_v62  ;;  %v3383_v8 = vpop.xlane.xlu2 %3382 }
 0x9e1   :  { %3470 = vst [vmem:[#allocation16 + $0x10] sm:$0xff] %v3454_v21  ;;  %4284 = vlog2.f32 %v3383_v8 }
 0x9e2   :  { %v3440_v2 = vadd.f32 %v3413_v13, %v5690_v60 }
 0x9e4   :  { %v3456_v17 = vsub.f32 %v5605_v18, %v3440_v2 }
 0x9e6   :  { %3472 = vst [vmem:[#allocation16 + $0x20] sm:$0xff] %v3456_v17 }
 0x9e7   :  { %v4285_v9 = vpop.eup %4284 }
 0x9e8   :  { %v3415_v34 = vmul.f32 0.6931472, %v4285_v9  ;;  %v3385_v24 = vpop.xlane.xlu1 %3384 }
 0x9e9   :  { %4286 = vlog2.f32 %v3385_v24 }
 0x9ea   :  { %v3441_v45 = vadd.f32 %v3415_v34, %v5694_v26 }
 0x9ec   :  { %v3457_v28 = vsub.f32 %v5611_v40, %v3441_v45 }
 0x9ee   :  { %3473 = vst [vmem:[#allocation16 + $0x28] sm:$0xff] %v3457_v28 }
 0x9ef   :  { %v4287_v25 = vpop.eup %4286 }
 0x9f0   :  { %v3417_v5 = vmul.f32 0.6931472, %v4287_v25  ;;  %v3387_v49 = vpop.xlane.xlu0 %3386 }
 0x9f1   :  { %4288 = vlog2.f32 %v3387_v49 }
 0x9f2   :  { %v3442_v19 = vadd.f32 %v3417_v5, %v5698_v47 }
 0x9f4   :  { %v3458_v60 = vsub.f32 %v5617_v55, %v3442_v19 }
 0x9f6   :  { %3474 = vst [vmem:[#allocation16 + $0x30] sm:$0xff] %v3458_v60 }
 0x9f7   :  { %v4289_v18 = vpop.eup %4288 }
 0x9f8   :  { %v3419_v37 = vmul.f32 0.6931472, %v4289_v18  ;;  %v3389_v50 = vpop.xlane.xlu2 %3388 }
 0x9f9   :  { %4290 = vlog2.f32 %v3389_v50 }
 0x9fa   :  { %v3443_v63 = vadd.f32 %v3419_v37, %v5702_v54 }
 0x9fc   :  { %v3459_v26 = vsub.f32 %v5623_v36, %v3443_v63 }
 0x9fe   :  { %3475 = vst [vmem:[#allocation16 + $0x38] sm:$0xff] %v3459_v26 }
 0x9ff   :  { %v4291_v40 = vpop.eup %4290 }
 0xa00   :  { %v3421_v16 = vmul.f32 0.6931472, %v4291_v40  ;;  %v3391_v56 = vpop.xlane.xlu1 %3390 }
 0xa01   :  { %4292 = vlog2.f32 %v3391_v56 }
 0xa02   :  { %v3444_v35 = vadd.f32 %v3421_v16, %v5706_v43 }
 0xa04   :  { %v3460_v47 = vsub.f32 %v5629_v7, %v3444_v35 }
 0xa06   :  { %3476 = vst [vmem:[#allocation16 + $0x40] sm:$0xff] %v3460_v47 }
 0xa07   :  { %v4293_v55 = vpop.eup %4292 }
 0xa08   :  { %v3423_v31 = vmul.f32 0.6931472, %v4293_v55  ;;  %v3393_v29 = vpop.xlane.xlu0 %3392 }
 0xa09   :  { %4294 = vlog2.f32 %v3393_v29 }
 0xa0a   :  { %v3445_v3 = vadd.f32 %v3423_v31, %v5710_v12 }
 0xa0c   :  { %v3461_v54 = vsub.f32 %v5635_v57, %v3445_v3 }
 0xa0e   :  { %3477 = vst [vmem:[#allocation16 + $0x48] sm:$0xff] %v3461_v54 }
 0xa0f   :  { %v4295_v36 = vpop.eup %4294 }
 0xa10   :  { %v3425_v23 = vmul.f32 0.6931472, %v4295_v36  ;;  %v3395_v52 = vpop.xlane.xlu2 %3394 }
 0xa11   :  { %4296 = vlog2.f32 %v3395_v52 }
 0xa12   :  { %v3446_v0 = vadd.f32 %v3425_v23, %v5714_v53 }
 0xa14   :  { %v3462_v43 = vsub.f32 %v5641_v1, %v3446_v0 }
 0xa16   :  { %3478 = vst [vmem:[#allocation16 + $0x50] sm:$0xff] %v3462_v43 }
 0xa17   :  { %v4297_v7 = vpop.eup %4296 }
 0xa18   :  { %v3427_v39 = vmul.f32 0.6931472, %v4297_v7  ;;  %v3397_v11 = vpop.xlane.xlu1 %3396 }
 0xa19   :  { %4298 = vlog2.f32 %v3397_v11 }
 0xa1a   :  { %v3447_v42 = vadd.f32 %v3427_v39, %v5718_v15 }
 0xa1c   :  { %v3463_v12 = vsub.f32 %v5647_v61, %v3447_v42 }
 0xa1e   :  { %3479 = vst [vmem:[#allocation16 + $0x58] sm:$0xff] %v3463_v12 }
 0xa1f   :  { %v4299_v57 = vpop.eup %4298 }
 0xa20   :  { %v3429_v4 = vmul.f32 0.6931472, %v4299_v57  ;;  %v3399_v48 = vpop.xlane.xlu0 %3398 }
 0xa21   :  { %4300 = vlog2.f32 %v3399_v48 }
 0xa22   :  { %v3448_v38 = vadd.f32 %v3429_v4, %v5722_v33 }
 0xa24   :  { %v3464_v53 = vsub.f32 %v5653_v14, %v3448_v38 }
 0xa26   :  { %3480 = vst [vmem:[#allocation16 + $0x60] sm:$0xff] %v3464_v53 }
 0xa27   :  { %v4301_v1 = vpop.eup %4300 }
 0xa28   :  { %v3431_v32 = vmul.f32 0.6931472, %v4301_v1 }
 0xa2a   :  { %v3449_v20 = vadd.f32 %v3431_v32, %v5726_v58 }
 0xa2c   :  { %v3465_v27 = vsub.f32 %v5659_v59, %v3449_v20 }
 0xa2e   :  { %3481 = vst [vmem:[#allocation16 + $0x68] sm:$0xff] %v3465_v27 }
 0xa42   :  { %v3401_v15 = vpop.xlane.xlu2 %3400 }
 0xa43   :  { %4302 = vlog2.f32 %v3401_v15 }
 0xa49   :  { %v4303_v61 = vpop.eup %4302 }
 0xa4a   :  { %v3433_v10 = vmul.f32 0.6931472, %v4303_v61  ;;  %v3403_v51 = vpop.xlane.xlu1 %3402 }
 0xa4b   :  { %4304 = vlog2.f32 %v3403_v51 }
 0xa4c   :  { %v3450_v44 = vadd.f32 %v3433_v10, %v5731_v46 }
 0xa4e   :  { %v3466_v33 = vsub.f32 %v5675_v6, %v3450_v44 }
 0xa50   :  { %3482 = vst [vmem:[#allocation16 + $0x70] sm:$0xff] %v3466_v33 }
 0xa51   :  { %v4305_v14 = vpop.eup %4304 }
 0xa52   :  { %v3435_v22 = vmul.f32 0.6931472, %v4305_v14 }
 0xa54   :  { %v3451_v59 = vadd.f32 %v3435_v22, %v5736_v30 }
 0xa56   :  { %v3467_v58 = vsub.f32 %v5687_v41, %v3451_v59 }
 0xa58   :  { %3483 = vst [vmem:[#allocation16 + $0x78] sm:$0xff] %v3467_v58 }
 0xa59   :  { %3496 = dma.vmem_to_hbm [thread:$0]  %s3489_s26, 2048, %s3491_s28, [#allocation4], %s4535_s29, %s4535_s29, %s4536_s30  }
 0xa5a   :  { %4532 = dma.done.wait [#allocation4], 2048  }
 0xa5b   :  { %4533 = vsyncadd [#allocation4], 4294965248 }
 0xa5c   :  { %3501 = vsyncpa [#allocation3], 1 }
 0xa5d   :  { %3502 = vsyncpa [#allocation6], 1 }
 0xa5e   :  { %3503 = vsyncpa [#allocation9], 1 }
 0xa5f   :  { %3504 = vsyncpa [#allocation12], 1 }
 0xa60   :  { %3505 = vsyncpa [#allocation15], 1 }
 0xa61   :  { %3506 = vsyncpa [#allocation4], 1 }

</bundles_post_ra>
